<compile_context>
chip_gen: v7x
topology: tpu7x:2x2x1
jax: 0.10.0
libtpu: 0.0.40
codegen_flags: <defaults>
</compile_context>

<pallas_src>
import functools

import numpy as np
import jax
import jax.numpy as jnp
from jax.experimental import pallas as pl
from jax.experimental.pallas import tpu as pltpu


# ----------------------------- Pallas kernel --------------------------------

def fused_disc_kernel(x_cols_ref, w0_ref, b0_ref, w1_ref, b1_ref, w2_ref,
                      b2_ref, w3_ref, b3_ref, alpha_ref, o_ref, h_ref,
                      *, B, T, KL, OFF, D2):
    """Both 4-layer conv stacks (PReLU x3 + Sigmoid), whole batch, one body.

    x_cols_ref: (B*T, KL*d_motion)  wrapper-built layer-0 im2col (shared input)
    w0_ref:     (KL*d_motion, D2)   layer-0 weights, short|long fused on Cout
    w1/2_ref:   (KL, D2, D2)        per-tap block-diagonal conv weights
    w3_ref:     (KL, D2, 2)         per-tap final weights (col0=short, col1=long)
    b*_ref:     (1, Cout)           biases (short|long concatenated)
    alpha_ref:  (3, D2)             per-channel PReLU slopes for layers 0..2
    o_ref:      (B*T, 2)            sigmoid scores (col0=short, col1=long)
    h_ref:      (B, TP, D2)         zero-halo padded-activation scratch
    """
    TP = h_ref.shape[1]

    # Zero ONLY the halo rows, once.  Rows [OFF, OFF+T) are fully overwritten
    # by every layer, so re-zeroing them would be wasted store bandwidth.
    # NOTE: correctness relies on the halo rows never being written after this
    # point — all stores below target exactly rows [OFF, OFF+T).
    h_ref[:, 0:OFF, :] = jnp.zeros((B, OFF, D2), jnp.float32)
    h_ref[:, OFF + T:TP, :] = jnp.zeros((B, TP - OFF - T, D2), jnp.float32)

    base = OFF - (KL - 1) // 2  # window start of tap 0 (static, = 1 here)

    def prelu(y, li):
        a = alpha_ref[li:li + 1, :]            # (1, D2) per-channel slopes
        return jnp.where(y > 0, y, a * y)

    # ---- layer 0: one MXU matmul on the wrapper im2col, both stacks (N=D2) --
    y = jnp.dot(x_cols_ref[...], w0_ref[...], preferred_element_type=jnp.float32)
    y = prelu(y + b0_ref[...], 0)                               # (B*T, D2)
    h_ref[:, OFF:OFF + T, :] = y.reshape(B, T, D2)

    # ---- layers 1, 2: shifted-matmul conv over the zero-halo scratch --------
    # KL static unrolled taps; every slice start is static, no lane concat.
    for li, (w_ref, b_ref) in ((1, (w1_ref, b1_ref)), (2, (w2_ref, b2_ref))):
        acc = jnp.zeros((B * T, D2), jnp.float32)
        for k in range(KL):
            win = h_ref[:, base + k:base + k + T, :].reshape(B * T, D2)
            acc = acc + jnp.dot(win, w_ref[k],
                                preferred_element_type=jnp.float32)
        y = prelu(acc + b_ref[...], li)
        h_ref[:, OFF:OFF + T, :] = y.reshape(B, T, D2)

    # ---- layer 3: fused over all B*T rows, both stacks, single store --------
    acc = jnp.zeros((B * T, 2), jnp.float32)
    for k in range(KL):
        win = h_ref[:, base + k:base + k + T, :].reshape(B * T, D2)
        acc = acc + jnp.dot(win, w3_ref[k], preferred_element_type=jnp.float32)
    o_ref[...] = jax.nn.sigmoid(acc + b3_ref[...]).astype(o_ref.dtype)


# --------------------------- parameter handling ------------------------------

def init_conv_stack_params(key, d_motion, d_model, K):
    """Deterministic synthetic params for one 4-layer conv stack.

    Each layer: (w (K, Cin, Cout), b (Cout,), alpha scalar).
    (PyTorch stores Conv1d weights as (Cout, Cin, K); we keep tap-major.)
    """
    dims = [(d_motion, d_model), (d_model, d_model),
            (d_model, d_model), (d_model, 1)]
    params = []
    for (cin, cout) in dims:
        key, kw, kb, ka = jax.random.split(key, 4)
        bound = 1.0 / np.sqrt(cin * K)  # PyTorch Conv1d default-like scale
        w = jax.random.uniform(kw, (K, cin, cout), jnp.float32, -bound, bound)
        b = jax.random.uniform(kb, (cout,), jnp.float32, -bound, bound)
        alpha = jax.random.uniform(ka, (), jnp.float32, 0.1, 0.4)  # PReLU slope
        params.append((w, b, alpha))
    return params


def pack_params(short_params, long_params):
    """Fuse both stacks' params into the joint layout used by the kernel."""
    (ws0, bs0, as0), (ws1, bs1, as1), (ws2, bs2, as2), (ws3, bs3, _) = short_params
    (wl0, bl0, al0), (wl1, bl1, al1), (wl2, bl2, al2), (wl3, bl3, _) = long_params
    KS, KL = ws0.shape[0], wl0.shape[0]
    dm, d_model = ws0.shape[1], ws0.shape[2]
    pad = (KL - KS) // 2          # centre the K=5 taps inside the K=15 window

    # Layer 0: short taps centred in KL, fused with long along Cout (N = 2*dm).
    ws0p = jnp.pad(ws0, ((pad, pad), (0, 0), (0, 0)))            # (KL, dm, C)
    w0 = jnp.concatenate([ws0p.reshape(KL * dm, d_model),
                          wl0.reshape(KL * dm, d_model)], axis=1)  # (KL*dm, 2C)
    b0 = jnp.concatenate([bs0, bl0]).reshape(1, 2 * d_model)

    def blockdiag(ws, wl):
        # ws (KS, C, C), wl (KL, C, C) -> (KL, 2C, 2C) block-diagonal taps.
        C = ws.shape[1]
        z = jnp.zeros((KL, C, C), jnp.float32)
        wsp = jnp.pad(ws, ((pad, pad), (0, 0), (0, 0)))
        top = jnp.concatenate([wsp, z], axis=2)    # short in -> short out
        bot = jnp.concatenate([z, wl], axis=2)     # long  in -> long  out
        return jnp.concatenate([top, bot], axis=1)

    w1 = blockdiag(ws1, wl1)
    b1 = jnp.concatenate([bs1, bl1]).reshape(1, 2 * d_model)
    w2 = blockdiag(ws2, wl2)
    b2 = jnp.concatenate([bs2, bl2]).reshape(1, 2 * d_model)

    # Layer 3: Cout = 1 per stack -> (KL, 2C, 2); col 0 = short, col 1 = long.
    ws3p = jnp.pad(ws3, ((pad, pad), (0, 0), (0, 0)))            # (KL, C, 1)
    c0 = jnp.concatenate([ws3p, jnp.zeros_like(wl3)], axis=1)    # (KL, 2C, 1)
    c1 = jnp.concatenate([jnp.zeros_like(wl3), wl3], axis=1)     # (KL, 2C, 1)
    w3 = jnp.concatenate([c0, c1], axis=2)                       # (KL, 2C, 2)
    b3 = jnp.concatenate([bs3, bl3]).reshape(1, 2)

    def avec(a_s, a_l):
        return jnp.concatenate([
            jnp.broadcast_to(a_s.astype(jnp.float32), (d_model,)),
            jnp.broadcast_to(a_l.astype(jnp.float32), (d_model,))])
    alphas = jnp.stack([avec(as0, al0), avec(as1, al1), avec(as2, al2)])  # (3, 2C)

    return w0, b0, w1, b1, w2, b2, w3, b3, alphas


# ------------------------------- forward -------------------------------------

def keyframe_discriminator(x, short_params, long_params):
    """x: (B, T, d_motion) -> (short_scores, long_scores), each (B, 1, T)."""
    B, T, d_motion = x.shape
    d_model = short_params[0][0].shape[2]
    KS, KL = short_params[0][0].shape[0], long_params[0][0].shape[0]
    assert (KL - KS) % 2 == 0 and KL >= KS
    PL = (KL - 1) // 2
    D2 = 2 * d_model

    # 8-aligned scratch geometry: data rows live at [OFF, OFF+T), halos outside.
    OFF = ((PL + 7) // 8) * 8                 # multiple of 8, >= PL  (-> 8)
    TP = ((OFF + T + PL + 7) // 8) * 8        # total scratch rows     (-> 32)

    w0, b0, w1, b1, w2, b2, w3, b3, alphas = pack_params(short_params, long_params)

    # Layer-0 im2col built once in the wrapper (tiny; the K=15 windows are
    # needed by the long stack anyway, the short stack rides in zero taps).
    xp = jnp.pad(x, ((0, 0), (PL, PL), (0, 0)))
    x_cols = jnp.concatenate([xp[:, k:k + T, :] for k in range(KL)], axis=-1)
    x_cols = x_cols.reshape(B * T, KL * d_motion)

    kernel = functools.partial(fused_disc_kernel,
                               B=B, T=T, KL=KL, OFF=OFF, D2=D2)
    vmem_spec = pl.BlockSpec(memory_space=pltpu.MemorySpace.VMEM)

    out = pl.pallas_call(
        kernel,
        out_shape=jax.ShapeDtypeStruct((B * T, 2), jnp.float32),
        in_specs=[vmem_spec] * 10,
        out_specs=vmem_spec,
        scratch_shapes=[pltpu.VMEM((B, TP, D2), jnp.float32)],
    )(x_cols, w0, b0, w1, b1, w2, b2, w3, b3, alphas)

    short_scores = out[:, 0].reshape(B, 1, T)   # (B, 1, T) — matches PyTorch
    long_scores = out[:, 1].reshape(B, 1, T)
    return short_scores, long_scores


# ------------------------------- reference -----------------------------------

def ref_conv_stack(x, params):
    """Pure-JAX reference using lax.conv_general_dilated (NWC layout)."""
    h = x
    n = len(params)
    for i, (w, b, alpha) in enumerate(params):
        K = w.shape[0]
        P = (K - 1) // 2
        y = jax.lax.conv_general_dilated(
            h, w, window_strides=(1,), padding=[(P, P)],
            dimension_numbers=("NWC", "WIO", "NWC"))
        y = y + b
        if i == n - 1:
            y = jax.nn.sigmoid(y)
        else:
            y = jnp.where(y > 0, y, alpha * y)
        h = y
    return jnp.transpose(h, (0, 2, 1))          # (B, 1, T)


# --------------------------------- main ---------------------------------------

if __name__ == "__main__":
    B, T = 2, 16
    d_motion = 8
    d_model = 32

    key = jax.random.PRNGKey(0)
    kx, ks, kl = jax.random.split(key, 3)

    x = jax.random.normal(kx, (B, T, d_motion), jnp.float32)

    short_params = init_conv_stack_params(ks, d_motion, d_model, K=5)
    long_params = init_conv_stack_params(kl, d_motion, d_model, K=15)

    short_scores, long_scores = keyframe_discriminator(x, short_params, long_params)
    jax.block_until_ready(short_scores)
    jax.block_until_ready(long_scores)

    assert short_scores.shape == (B, 1, T)
    assert long_scores.shape == (B, 1, T)

    # Cross-check against a pure-JAX reference (original K=5 / K=15 convs).
    ref_short = ref_conv_stack(x, short_params)
    ref_long = ref_conv_stack(x, long_params)
    np.testing.assert_allclose(np.asarray(short_scores), np.asarray(ref_short),
                               rtol=1e-4, atol=1e-5)
    np.testing.assert_allclose(np.asarray(long_scores), np.asarray(ref_long),
                               rtol=1e-4, atol=1e-5)

    print("KERNEL_OK")
</pallas_src>

<mosaic_0001>
module attributes {stable_mosaic.version = 11 : i64} {
  func.func @fused_disc_kernel(%arg0: memref<32x120xf32, #tpu.memory_space<vmem>>, %arg1: memref<120x64xf32, #tpu.memory_space<vmem>>, %arg2: memref<1x64xf32, #tpu.memory_space<vmem>>, %arg3: memref<15x64x64xf32, #tpu.memory_space<vmem>>, %arg4: memref<1x64xf32, #tpu.memory_space<vmem>>, %arg5: memref<15x64x64xf32, #tpu.memory_space<vmem>>, %arg6: memref<1x64xf32, #tpu.memory_space<vmem>>, %arg7: memref<15x64x2xf32, #tpu.memory_space<vmem>>, %arg8: memref<1x2xf32, #tpu.memory_space<vmem>>, %arg9: memref<3x64xf32, #tpu.memory_space<vmem>>, %arg10: memref<32x2xf32, #tpu.memory_space<vmem>>, %arg11: memref<2x32x64xf32, #tpu.memory_space<vmem>>) attributes {dimension_semantics = [], scalar_prefetch = 0 : i64, scratch_operands = 1 : i64, tpu.core_type = #tpu.core_type<tc>} {
    %cst = arith.constant 0.000000e+00 : f32
    %0 = vector.broadcast %cst : f32 to vector<2x8x64xf32>
    %c0 = arith.constant 0 : index
    %c0_0 = arith.constant 0 : index
    %c0_1 = arith.constant 0 : index
    %1 = vector.load %arg11[%c0, %c0_0, %c0_1] : memref<2x32x64xf32, #tpu.memory_space<vmem>>, vector<2x8x64xf32>
    tpu.vector_store %arg11[%c0, %c0_0, %c0_1], %0 {strides = array<i32>} : memref<2x32x64xf32, #tpu.memory_space<vmem>>, vector<2x8x64xf32>,
    %cst_2 = arith.constant 0.000000e+00 : f32
    %2 = vector.broadcast %cst_2 : f32 to vector<2x8x64xf32>
    %c0_3 = arith.constant 0 : index
    %c24 = arith.constant 24 : index
    %c0_4 = arith.constant 0 : index
    %3 = vector.load %arg11[%c0_3, %c24, %c0_4] : memref<2x32x64xf32, #tpu.memory_space<vmem>>, vector<2x8x64xf32>
    tpu.vector_store %arg11[%c0_3, %c24, %c0_4], %2 {strides = array<i32>} : memref<2x32x64xf32, #tpu.memory_space<vmem>>, vector<2x8x64xf32>,
    %c0_5 = arith.constant 0 : index
    %c0_6 = arith.constant 0 : index
    %4 = vector.load %arg0[%c0_5, %c0_6] : memref<32x120xf32, #tpu.memory_space<vmem>>, vector<32x120xf32>
    %c0_7 = arith.constant 0 : index
    %c0_8 = arith.constant 0 : index
    %5 = vector.load %arg1[%c0_7, %c0_8] : memref<120x64xf32, #tpu.memory_space<vmem>>, vector<120x64xf32>
    %cst_9 = arith.constant dense<0.000000e+00> : vector<32x64xf32>
    %6 = tpu.matmul %4, %5, %cst_9 {dimension_numbers = #tpu.dot_dimension_numbers<[1], [0], [0], [1], [0, 0, 1, 1], [], []>} : vector<32x120xf32>, vector<120x64xf32>, vector<32x64xf32> -> vector<32x64xf32>
    %c0_10 = arith.constant 0 : index
    %c0_11 = arith.constant 0 : index
    %7 = vector.load %arg2[%c0_10, %c0_11] : memref<1x64xf32, #tpu.memory_space<vmem>>, vector<1x64xf32>
    %8 = vector.broadcast %7 : vector<1x64xf32> to vector<32x64xf32>
    %9 = arith.addf %6, %8 : vector<32x64xf32>
    %c0_12 = arith.constant 0 : index
    %c0_13 = arith.constant 0 : index
    %10 = vector.load %arg9[%c0_12, %c0_13] : memref<3x64xf32, #tpu.memory_space<vmem>>, vector<1x64xf32>
    %cst_14 = arith.constant 0.000000e+00 : f32
    %11 = vector.broadcast %cst_14 : f32 to vector<32x64xf32>
    %12 = arith.cmpf ogt, %9, %11 : vector<32x64xf32>
    %13 = vector.broadcast %10 : vector<1x64xf32> to vector<32x64xf32>
    %14 = arith.mulf %13, %9 : vector<32x64xf32>
    %15 = arith.select %12, %9, %14 : vector<32x64xi1>, vector<32x64xf32>
    %16 = vector.shape_cast %15 : vector<32x64xf32> to vector<2x16x64xf32>
    %c0_15 = arith.constant 0 : index
    %c8 = arith.constant 8 : index
    %c0_16 = arith.constant 0 : index
    %17 = vector.load %arg11[%c0_15, %c8, %c0_16] : memref<2x32x64xf32, #tpu.memory_space<vmem>>, vector<2x16x64xf32>
    tpu.vector_store %arg11[%c0_15, %c8, %c0_16], %16 {strides = array<i32>} : memref<2x32x64xf32, #tpu.memory_space<vmem>>, vector<2x16x64xf32>,
    %cst_17 = arith.constant 0.000000e+00 : f32
    %18 = vector.broadcast %cst_17 : f32 to vector<32x64xf32>
    %c0_18 = arith.constant 0 : index
    %c1 = arith.constant 1 : index
    %c0_19 = arith.constant 0 : index
    %19 = vector.load %arg11[%c0_18, %c1, %c0_19] : memref<2x32x64xf32, #tpu.memory_space<vmem>>, vector<2x16x64xf32>
    %20 = vector.shape_cast %19 : vector<2x16x64xf32> to vector<32x64xf32>
    %c0_20 = arith.constant 0 : index
    %c0_21 = arith.constant 0 : index
    %c0_22 = arith.constant 0 : index
    %21 = vector.load %arg3[%c0_20, %c0_21, %c0_22] : memref<15x64x64xf32, #tpu.memory_space<vmem>>, vector<1x64x64xf32>
    %22 = vector.shape_cast %21 : vector<1x64x64xf32> to vector<64x64xf32>
    %cst_23 = arith.constant dense<0.000000e+00> : vector<32x64xf32>
    %23 = tpu.matmul %20, %22, %cst_23 {dimension_numbers = #tpu.dot_dimension_numbers<[1], [0], [0], [1], [0, 0, 1, 1], [], []>} : vector<32x64xf32>, vector<64x64xf32>, vector<32x64xf32> -> vector<32x64xf32>
    %24 = arith.addf %18, %23 : vector<32x64xf32>
    %c0_24 = arith.constant 0 : index
    %c2 = arith.constant 2 : index
    %c0_25 = arith.constant 0 : index
    %25 = vector.load %arg11[%c0_24, %c2, %c0_25] : memref<2x32x64xf32, #tpu.memory_space<vmem>>, vector<2x16x64xf32>
    %26 = vector.shape_cast %25 : vector<2x16x64xf32> to vector<32x64xf32>
    %c1_26 = arith.constant 1 : index
    %c0_27 = arith.constant 0 : index
    %c0_28 = arith.constant 0 : index
    %27 = vector.load %arg3[%c1_26, %c0_27, %c0_28] : memref<15x64x64xf32, #tpu.memory_space<vmem>>, vector<1x64x64xf32>
    %28 = vector.shape_cast %27 : vector<1x64x64xf32> to vector<64x64xf32>
    %cst_29 = arith.constant dense<0.000000e+00> : vector<32x64xf32>
    %29 = tpu.matmul %26, %28, %cst_29 {dimension_numbers = #tpu.dot_dimension_numbers<[1], [0], [0], [1], [0, 0, 1, 1], [], []>} : vector<32x64xf32>, vector<64x64xf32>, vector<32x64xf32> -> vector<32x64xf32>
    %30 = arith.addf %24, %29 : vector<32x64xf32>
    %c0_30 = arith.constant 0 : index
    %c3 = arith.constant 3 : index
    %c0_31 = arith.constant 0 : index
    %31 = vector.load %arg11[%c0_30, %c3, %c0_31] : memref<2x32x64xf32, #tpu.memory_space<vmem>>, vector<2x16x64xf32>
    %32 = vector.shape_cast %31 : vector<2x16x64xf32> to vector<32x64xf32>
    %c2_32 = arith.constant 2 : index
    %c0_33 = arith.constant 0 : index
    %c0_34 = arith.constant 0 : index
    %33 = vector.load %arg3[%c2_32, %c0_33, %c0_34] : memref<15x64x64xf32, #tpu.memory_space<vmem>>, vector<1x64x64xf32>
    %34 = vector.shape_cast %33 : vector<1x64x64xf32> to vector<64x64xf32>
    %cst_35 = arith.constant dense<0.000000e+00> : vector<32x64xf32>
    %35 = tpu.matmul %32, %34, %cst_35 {dimension_numbers = #tpu.dot_dimension_numbers<[1], [0], [0], [1], [0, 0, 1, 1], [], []>} : vector<32x64xf32>, vector<64x64xf32>, vector<32x64xf32> -> vector<32x64xf32>
    %36 = arith.addf %30, %35 : vector<32x64xf32>
    %c0_36 = arith.constant 0 : index
    %c4 = arith.constant 4 : index
    %c0_37 = arith.constant 0 : index
    %37 = vector.load %arg11[%c0_36, %c4, %c0_37] : memref<2x32x64xf32, #tpu.memory_space<vmem>>, vector<2x16x64xf32>
    %38 = vector.shape_cast %37 : vector<2x16x64xf32> to vector<32x64xf32>
    %c3_38 = arith.constant 3 : index
    %c0_39 = arith.constant 0 : index
    %c0_40 = arith.constant 0 : index
    %39 = vector.load %arg3[%c3_38, %c0_39, %c0_40] : memref<15x64x64xf32, #tpu.memory_space<vmem>>, vector<1x64x64xf32>
    %40 = vector.shape_cast %39 : vector<1x64x64xf32> to vector<64x64xf32>
    %cst_41 = arith.constant dense<0.000000e+00> : vector<32x64xf32>
    %41 = tpu.matmul %38, %40, %cst_41 {dimension_numbers = #tpu.dot_dimension_numbers<[1], [0], [0], [1], [0, 0, 1, 1], [], []>} : vector<32x64xf32>, vector<64x64xf32>, vector<32x64xf32> -> vector<32x64xf32>
    %42 = arith.addf %36, %41 : vector<32x64xf32>
    %c0_42 = arith.constant 0 : index
    %c5 = arith.constant 5 : index
    %c0_43 = arith.constant 0 : index
    %43 = vector.load %arg11[%c0_42, %c5, %c0_43] : memref<2x32x64xf32, #tpu.memory_space<vmem>>, vector<2x16x64xf32>
    %44 = vector.shape_cast %43 : vector<2x16x64xf32> to vector<32x64xf32>
    %c4_44 = arith.constant 4 : index
    %c0_45 = arith.constant 0 : index
    %c0_46 = arith.constant 0 : index
    %45 = vector.load %arg3[%c4_44, %c0_45, %c0_46] : memref<15x64x64xf32, #tpu.memory_space<vmem>>, vector<1x64x64xf32>
    %46 = vector.shape_cast %45 : vector<1x64x64xf32> to vector<64x64xf32>
    %cst_47 = arith.constant dense<0.000000e+00> : vector<32x64xf32>
    %47 = tpu.matmul %44, %46, %cst_47 {dimension_numbers = #tpu.dot_dimension_numbers<[1], [0], [0], [1], [0, 0, 1, 1], [], []>} : vector<32x64xf32>, vector<64x64xf32>, vector<32x64xf32> -> vector<32x64xf32>
    %48 = arith.addf %42, %47 : vector<32x64xf32>
    %c0_48 = arith.constant 0 : index
    %c6 = arith.constant 6 : index
    %c0_49 = arith.constant 0 : index
    %49 = vector.load %arg11[%c0_48, %c6, %c0_49] : memref<2x32x64xf32, #tpu.memory_space<vmem>>, vector<2x16x64xf32>
    %50 = vector.shape_cast %49 : vector<2x16x64xf32> to vector<32x64xf32>
    %c5_50 = arith.constant 5 : index
    %c0_51 = arith.constant 0 : index
    %c0_52 = arith.constant 0 : index
    %51 = vector.load %arg3[%c5_50, %c0_51, %c0_52] : memref<15x64x64xf32, #tpu.memory_space<vmem>>, vector<1x64x64xf32>
    %52 = vector.shape_cast %51 : vector<1x64x64xf32> to vector<64x64xf32>
    %cst_53 = arith.constant dense<0.000000e+00> : vector<32x64xf32>
    %53 = tpu.matmul %50, %52, %cst_53 {dimension_numbers = #tpu.dot_dimension_numbers<[1], [0], [0], [1], [0, 0, 1, 1], [], []>} : vector<32x64xf32>, vector<64x64xf32>, vector<32x64xf32> -> vector<32x64xf32>
    %54 = arith.addf %48, %53 : vector<32x64xf32>
    %c0_54 = arith.constant 0 : index
    %c7 = arith.constant 7 : index
    %c0_55 = arith.constant 0 : index
    %55 = vector.load %arg11[%c0_54, %c7, %c0_55] : memref<2x32x64xf32, #tpu.memory_space<vmem>>, vector<2x16x64xf32>
    %56 = vector.shape_cast %55 : vector<2x16x64xf32> to vector<32x64xf32>
    %c6_56 = arith.constant 6 : index
    %c0_57 = arith.constant 0 : index
    %c0_58 = arith.constant 0 : index
    %57 = vector.load %arg3[%c6_56, %c0_57, %c0_58] : memref<15x64x64xf32, #tpu.memory_space<vmem>>, vector<1x64x64xf32>
    %58 = vector.shape_cast %57 : vector<1x64x64xf32> to vector<64x64xf32>
    %cst_59 = arith.constant dense<0.000000e+00> : vector<32x64xf32>
    %59 = tpu.matmul %56, %58, %cst_59 {dimension_numbers = #tpu.dot_dimension_numbers<[1], [0], [0], [1], [0, 0, 1, 1], [], []>} : vector<32x64xf32>, vector<64x64xf32>, vector<32x64xf32> -> vector<32x64xf32>
    %60 = arith.addf %54, %59 : vector<32x64xf32>
    %c0_60 = arith.constant 0 : index
    %c8_61 = arith.constant 8 : index
    %c0_62 = arith.constant 0 : index
    %61 = vector.load %arg11[%c0_60, %c8_61, %c0_62] : memref<2x32x64xf32, #tpu.memory_space<vmem>>, vector<2x16x64xf32>
    %62 = vector.shape_cast %61 : vector<2x16x64xf32> to vector<32x64xf32>
    %c7_63 = arith.constant 7 : index
    %c0_64 = arith.constant 0 : index
    %c0_65 = arith.constant 0 : index
    %63 = vector.load %arg3[%c7_63, %c0_64, %c0_65] : memref<15x64x64xf32, #tpu.memory_space<vmem>>, vector<1x64x64xf32>
    %64 = vector.shape_cast %63 : vector<1x64x64xf32> to vector<64x64xf32>
    %cst_66 = arith.constant dense<0.000000e+00> : vector<32x64xf32>
    %65 = tpu.matmul %62, %64, %cst_66 {dimension_numbers = #tpu.dot_dimension_numbers<[1], [0], [0], [1], [0, 0, 1, 1], [], []>} : vector<32x64xf32>, vector<64x64xf32>, vector<32x64xf32> -> vector<32x64xf32>
    %66 = arith.addf %60, %65 : vector<32x64xf32>
    %c0_67 = arith.constant 0 : index
    %c9 = arith.constant 9 : index
    %c0_68 = arith.constant 0 : index
    %67 = vector.load %arg11[%c0_67, %c9, %c0_68] : memref<2x32x64xf32, #tpu.memory_space<vmem>>, vector<2x16x64xf32>
    %68 = vector.shape_cast %67 : vector<2x16x64xf32> to vector<32x64xf32>
    %c8_69 = arith.constant 8 : index
    %c0_70 = arith.constant 0 : index
    %c0_71 = arith.constant 0 : index
    %69 = vector.load %arg3[%c8_69, %c0_70, %c0_71] : memref<15x64x64xf32, #tpu.memory_space<vmem>>, vector<1x64x64xf32>
    %70 = vector.shape_cast %69 : vector<1x64x64xf32> to vector<64x64xf32>
    %cst_72 = arith.constant dense<0.000000e+00> : vector<32x64xf32>
    %71 = tpu.matmul %68, %70, %cst_72 {dimension_numbers = #tpu.dot_dimension_numbers<[1], [0], [0], [1], [0, 0, 1, 1], [], []>} : vector<32x64xf32>, vector<64x64xf32>, vector<32x64xf32> -> vector<32x64xf32>
    %72 = arith.addf %66, %71 : vector<32x64xf32>
    %c0_73 = arith.constant 0 : index
    %c10 = arith.constant 10 : index
    %c0_74 = arith.constant 0 : index
    %73 = vector.load %arg11[%c0_73, %c10, %c0_74] : memref<2x32x64xf32, #tpu.memory_space<vmem>>, vector<2x16x64xf32>
    %74 = vector.shape_cast %73 : vector<2x16x64xf32> to vector<32x64xf32>
    %c9_75 = arith.constant 9 : index
    %c0_76 = arith.constant 0 : index
    %c0_77 = arith.constant 0 : index
    %75 = vector.load %arg3[%c9_75, %c0_76, %c0_77] : memref<15x64x64xf32, #tpu.memory_space<vmem>>, vector<1x64x64xf32>
    %76 = vector.shape_cast %75 : vector<1x64x64xf32> to vector<64x64xf32>
    %cst_78 = arith.constant dense<0.000000e+00> : vector<32x64xf32>
    %77 = tpu.matmul %74, %76, %cst_78 {dimension_numbers = #tpu.dot_dimension_numbers<[1], [0], [0], [1], [0, 0, 1, 1], [], []>} : vector<32x64xf32>, vector<64x64xf32>, vector<32x64xf32> -> vector<32x64xf32>
    %78 = arith.addf %72, %77 : vector<32x64xf32>
    %c0_79 = arith.constant 0 : index
    %c11 = arith.constant 11 : index
    %c0_80 = arith.constant 0 : index
    %79 = vector.load %arg11[%c0_79, %c11, %c0_80] : memref<2x32x64xf32, #tpu.memory_space<vmem>>, vector<2x16x64xf32>
    %80 = vector.shape_cast %79 : vector<2x16x64xf32> to vector<32x64xf32>
    %c10_81 = arith.constant 10 : index
    %c0_82 = arith.constant 0 : index
    %c0_83 = arith.constant 0 : index
    %81 = vector.load %arg3[%c10_81, %c0_82, %c0_83] : memref<15x64x64xf32, #tpu.memory_space<vmem>>, vector<1x64x64xf32>
    %82 = vector.shape_cast %81 : vector<1x64x64xf32> to vector<64x64xf32>
    %cst_84 = arith.constant dense<0.000000e+00> : vector<32x64xf32>
    %83 = tpu.matmul %80, %82, %cst_84 {dimension_numbers = #tpu.dot_dimension_numbers<[1], [0], [0], [1], [0, 0, 1, 1], [], []>} : vector<32x64xf32>, vector<64x64xf32>, vector<32x64xf32> -> vector<32x64xf32>
    %84 = arith.addf %78, %83 : vector<32x64xf32>
    %c0_85 = arith.constant 0 : index
    %c12 = arith.constant 12 : index
    %c0_86 = arith.constant 0 : index
    %85 = vector.load %arg11[%c0_85, %c12, %c0_86] : memref<2x32x64xf32, #tpu.memory_space<vmem>>, vector<2x16x64xf32>
    %86 = vector.shape_cast %85 : vector<2x16x64xf32> to vector<32x64xf32>
    %c11_87 = arith.constant 11 : index
    %c0_88 = arith.constant 0 : index
    %c0_89 = arith.constant 0 : index
    %87 = vector.load %arg3[%c11_87, %c0_88, %c0_89] : memref<15x64x64xf32, #tpu.memory_space<vmem>>, vector<1x64x64xf32>
    %88 = vector.shape_cast %87 : vector<1x64x64xf32> to vector<64x64xf32>
    %cst_90 = arith.constant dense<0.000000e+00> : vector<32x64xf32>
    %89 = tpu.matmul %86, %88, %cst_90 {dimension_numbers = #tpu.dot_dimension_numbers<[1], [0], [0], [1], [0, 0, 1, 1], [], []>} : vector<32x64xf32>, vector<64x64xf32>, vector<32x64xf32> -> vector<32x64xf32>
    %90 = arith.addf %84, %89 : vector<32x64xf32>
    %c0_91 = arith.constant 0 : index
    %c13 = arith.constant 13 : index
    %c0_92 = arith.constant 0 : index
    %91 = vector.load %arg11[%c0_91, %c13, %c0_92] : memref<2x32x64xf32, #tpu.memory_space<vmem>>, vector<2x16x64xf32>
    %92 = vector.shape_cast %91 : vector<2x16x64xf32> to vector<32x64xf32>
    %c12_93 = arith.constant 12 : index
    %c0_94 = arith.constant 0 : index
    %c0_95 = arith.constant 0 : index
    %93 = vector.load %arg3[%c12_93, %c0_94, %c0_95] : memref<15x64x64xf32, #tpu.memory_space<vmem>>, vector<1x64x64xf32>
    %94 = vector.shape_cast %93 : vector<1x64x64xf32> to vector<64x64xf32>
    %cst_96 = arith.constant dense<0.000000e+00> : vector<32x64xf32>
    %95 = tpu.matmul %92, %94, %cst_96 {dimension_numbers = #tpu.dot_dimension_numbers<[1], [0], [0], [1], [0, 0, 1, 1], [], []>} : vector<32x64xf32>, vector<64x64xf32>, vector<32x64xf32> -> vector<32x64xf32>
    %96 = arith.addf %90, %95 : vector<32x64xf32>
    %c0_97 = arith.constant 0 : index
    %c14 = arith.constant 14 : index
    %c0_98 = arith.constant 0 : index
    %97 = vector.load %arg11[%c0_97, %c14, %c0_98] : memref<2x32x64xf32, #tpu.memory_space<vmem>>, vector<2x16x64xf32>
    %98 = vector.shape_cast %97 : vector<2x16x64xf32> to vector<32x64xf32>
    %c13_99 = arith.constant 13 : index
    %c0_100 = arith.constant 0 : index
    %c0_101 = arith.constant 0 : index
    %99 = vector.load %arg3[%c13_99, %c0_100, %c0_101] : memref<15x64x64xf32, #tpu.memory_space<vmem>>, vector<1x64x64xf32>
    %100 = vector.shape_cast %99 : vector<1x64x64xf32> to vector<64x64xf32>
    %cst_102 = arith.constant dense<0.000000e+00> : vector<32x64xf32>
    %101 = tpu.matmul %98, %100, %cst_102 {dimension_numbers = #tpu.dot_dimension_numbers<[1], [0], [0], [1], [0, 0, 1, 1], [], []>} : vector<32x64xf32>, vector<64x64xf32>, vector<32x64xf32> -> vector<32x64xf32>
    %102 = arith.addf %96, %101 : vector<32x64xf32>
    %c0_103 = arith.constant 0 : index
    %c15 = arith.constant 15 : index
    %c0_104 = arith.constant 0 : index
    %103 = vector.load %arg11[%c0_103, %c15, %c0_104] : memref<2x32x64xf32, #tpu.memory_space<vmem>>, vector<2x16x64xf32>
    %104 = vector.shape_cast %103 : vector<2x16x64xf32> to vector<32x64xf32>
    %c14_105 = arith.constant 14 : index
    %c0_106 = arith.constant 0 : index
    %c0_107 = arith.constant 0 : index
    %105 = vector.load %arg3[%c14_105, %c0_106, %c0_107] : memref<15x64x64xf32, #tpu.memory_space<vmem>>, vector<1x64x64xf32>
    %106 = vector.shape_cast %105 : vector<1x64x64xf32> to vector<64x64xf32>
    %cst_108 = arith.constant dense<0.000000e+00> : vector<32x64xf32>
    %107 = tpu.matmul %104, %106, %cst_108 {dimension_numbers = #tpu.dot_dimension_numbers<[1], [0], [0], [1], [0, 0, 1, 1], [], []>} : vector<32x64xf32>, vector<64x64xf32>, vector<32x64xf32> -> vector<32x64xf32>
    %108 = arith.addf %102, %107 : vector<32x64xf32>
    %c0_109 = arith.constant 0 : index
    %c0_110 = arith.constant 0 : index
    %109 = vector.load %arg4[%c0_109, %c0_110] : memref<1x64xf32, #tpu.memory_space<vmem>>, vector<1x64xf32>
    %110 = vector.broadcast %109 : vector<1x64xf32> to vector<32x64xf32>
    %111 = arith.addf %108, %110 : vector<32x64xf32>
    %c1_111 = arith.constant 1 : index
    %c0_112 = arith.constant 0 : index
    %112 = vector.load %arg9[%c1_111, %c0_112] : memref<3x64xf32, #tpu.memory_space<vmem>>, vector<1x64xf32>
    %cst_113 = arith.constant 0.000000e+00 : f32
    %113 = vector.broadcast %cst_113 : f32 to vector<32x64xf32>
    %114 = arith.cmpf ogt, %111, %113 : vector<32x64xf32>
    %115 = vector.broadcast %112 : vector<1x64xf32> to vector<32x64xf32>
    %116 = arith.mulf %115, %111 : vector<32x64xf32>
    %117 = arith.select %114, %111, %116 : vector<32x64xi1>, vector<32x64xf32>
    %118 = vector.shape_cast %117 : vector<32x64xf32> to vector<2x16x64xf32>
    %c0_114 = arith.constant 0 : index
    %c8_115 = arith.constant 8 : index
    %c0_116 = arith.constant 0 : index
    %119 = vector.load %arg11[%c0_114, %c8_115, %c0_116] : memref<2x32x64xf32, #tpu.memory_space<vmem>>, vector<2x16x64xf32>
    tpu.vector_store %arg11[%c0_114, %c8_115, %c0_116], %118 {strides = array<i32>} : memref<2x32x64xf32, #tpu.memory_space<vmem>>, vector<2x16x64xf32>,
    %cst_117 = arith.constant 0.000000e+00 : f32
    %120 = vector.broadcast %cst_117 : f32 to vector<32x64xf32>
    %c0_118 = arith.constant 0 : index
    %c1_119 = arith.constant 1 : index
    %c0_120 = arith.constant 0 : index
    %121 = vector.load %arg11[%c0_118, %c1_119, %c0_120] : memref<2x32x64xf32, #tpu.memory_space<vmem>>, vector<2x16x64xf32>
    %122 = vector.shape_cast %121 : vector<2x16x64xf32> to vector<32x64xf32>
    %c0_121 = arith.constant 0 : index
    %c0_122 = arith.constant 0 : index
    %c0_123 = arith.constant 0 : index
    %123 = vector.load %arg5[%c0_121, %c0_122, %c0_123] : memref<15x64x64xf32, #tpu.memory_space<vmem>>, vector<1x64x64xf32>
    %124 = vector.shape_cast %123 : vector<1x64x64xf32> to vector<64x64xf32>
    %cst_124 = arith.constant dense<0.000000e+00> : vector<32x64xf32>
    %125 = tpu.matmul %122, %124, %cst_124 {dimension_numbers = #tpu.dot_dimension_numbers<[1], [0], [0], [1], [0, 0, 1, 1], [], []>} : vector<32x64xf32>, vector<64x64xf32>, vector<32x64xf32> -> vector<32x64xf32>
    %126 = arith.addf %120, %125 : vector<32x64xf32>
    %c0_125 = arith.constant 0 : index
    %c2_126 = arith.constant 2 : index
    %c0_127 = arith.constant 0 : index
    %127 = vector.load %arg11[%c0_125, %c2_126, %c0_127] : memref<2x32x64xf32, #tpu.memory_space<vmem>>, vector<2x16x64xf32>
    %128 = vector.shape_cast %127 : vector<2x16x64xf32> to vector<32x64xf32>
    %c1_128 = arith.constant 1 : index
    %c0_129 = arith.constant 0 : index
    %c0_130 = arith.constant 0 : index
    %129 = vector.load %arg5[%c1_128, %c0_129, %c0_130] : memref<15x64x64xf32, #tpu.memory_space<vmem>>, vector<1x64x64xf32>
    %130 = vector.shape_cast %129 : vector<1x64x64xf32> to vector<64x64xf32>
    %cst_131 = arith.constant dense<0.000000e+00> : vector<32x64xf32>
    %131 = tpu.matmul %128, %130, %cst_131 {dimension_numbers = #tpu.dot_dimension_numbers<[1], [0], [0], [1], [0, 0, 1, 1], [], []>} : vector<32x64xf32>, vector<64x64xf32>, vector<32x64xf32> -> vector<32x64xf32>
    %132 = arith.addf %126, %131 : vector<32x64xf32>
    %c0_132 = arith.constant 0 : index
    %c3_133 = arith.constant 3 : index
    %c0_134 = arith.constant 0 : index
    %133 = vector.load %arg11[%c0_132, %c3_133, %c0_134] : memref<2x32x64xf32, #tpu.memory_space<vmem>>, vector<2x16x64xf32>
    %134 = vector.shape_cast %133 : vector<2x16x64xf32> to vector<32x64xf32>
    %c2_135 = arith.constant 2 : index
    %c0_136 = arith.constant 0 : index
    %c0_137 = arith.constant 0 : index
    %135 = vector.load %arg5[%c2_135, %c0_136, %c0_137] : memref<15x64x64xf32, #tpu.memory_space<vmem>>, vector<1x64x64xf32>
    %136 = vector.shape_cast %135 : vector<1x64x64xf32> to vector<64x64xf32>
    %cst_138 = arith.constant dense<0.000000e+00> : vector<32x64xf32>
    %137 = tpu.matmul %134, %136, %cst_138 {dimension_numbers = #tpu.dot_dimension_numbers<[1], [0], [0], [1], [0, 0, 1, 1], [], []>} : vector<32x64xf32>, vector<64x64xf32>, vector<32x64xf32> -> vector<32x64xf32>
    %138 = arith.addf %132, %137 : vector<32x64xf32>
    %c0_139 = arith.constant 0 : index
    %c4_140 = arith.constant 4 : index
    %c0_141 = arith.constant 0 : index
    %139 = vector.load %arg11[%c0_139, %c4_140, %c0_141] : memref<2x32x64xf32, #tpu.memory_space<vmem>>, vector<2x16x64xf32>
    %140 = vector.shape_cast %139 : vector<2x16x64xf32> to vector<32x64xf32>
    %c3_142 = arith.constant 3 : index
    %c0_143 = arith.constant 0 : index
    %c0_144 = arith.constant 0 : index
    %141 = vector.load %arg5[%c3_142, %c0_143, %c0_144] : memref<15x64x64xf32, #tpu.memory_space<vmem>>, vector<1x64x64xf32>
    %142 = vector.shape_cast %141 : vector<1x64x64xf32> to vector<64x64xf32>
    %cst_145 = arith.constant dense<0.000000e+00> : vector<32x64xf32>
    %143 = tpu.matmul %140, %142, %cst_145 {dimension_numbers = #tpu.dot_dimension_numbers<[1], [0], [0], [1], [0, 0, 1, 1], [], []>} : vector<32x64xf32>, vector<64x64xf32>, vector<32x64xf32> -> vector<32x64xf32>
    %144 = arith.addf %138, %143 : vector<32x64xf32>
    %c0_146 = arith.constant 0 : index
    %c5_147 = arith.constant 5 : index
    %c0_148 = arith.constant 0 : index
    %145 = vector.load %arg11[%c0_146, %c5_147, %c0_148] : memref<2x32x64xf32, #tpu.memory_space<vmem>>, vector<2x16x64xf32>
    %146 = vector.shape_cast %145 : vector<2x16x64xf32> to vector<32x64xf32>
    %c4_149 = arith.constant 4 : index
    %c0_150 = arith.constant 0 : index
    %c0_151 = arith.constant 0 : index
    %147 = vector.load %arg5[%c4_149, %c0_150, %c0_151] : memref<15x64x64xf32, #tpu.memory_space<vmem>>, vector<1x64x64xf32>
    %148 = vector.shape_cast %147 : vector<1x64x64xf32> to vector<64x64xf32>
    %cst_152 = arith.constant dense<0.000000e+00> : vector<32x64xf32>
    %149 = tpu.matmul %146, %148, %cst_152 {dimension_numbers = #tpu.dot_dimension_numbers<[1], [0], [0], [1], [0, 0, 1, 1], [], []>} : vector<32x64xf32>, vector<64x64xf32>, vector<32x64xf32> -> vector<32x64xf32>
    %150 = arith.addf %144, %149 : vector<32x64xf32>
    %c0_153 = arith.constant 0 : index
    %c6_154 = arith.constant 6 : index
    %c0_155 = arith.constant 0 : index
    %151 = vector.load %arg11[%c0_153, %c6_154, %c0_155] : memref<2x32x64xf32, #tpu.memory_space<vmem>>, vector<2x16x64xf32>
    %152 = vector.shape_cast %151 : vector<2x16x64xf32> to vector<32x64xf32>
    %c5_156 = arith.constant 5 : index
    %c0_157 = arith.constant 0 : index
    %c0_158 = arith.constant 0 : index
    %153 = vector.load %arg5[%c5_156, %c0_157, %c0_158] : memref<15x64x64xf32, #tpu.memory_space<vmem>>, vector<1x64x64xf32>
    %154 = vector.shape_cast %153 : vector<1x64x64xf32> to vector<64x64xf32>
    %cst_159 = arith.constant dense<0.000000e+00> : vector<32x64xf32>
    %155 = tpu.matmul %152, %154, %cst_159 {dimension_numbers = #tpu.dot_dimension_numbers<[1], [0], [0], [1], [0, 0, 1, 1], [], []>} : vector<32x64xf32>, vector<64x64xf32>, vector<32x64xf32> -> vector<32x64xf32>
    %156 = arith.addf %150, %155 : vector<32x64xf32>
    %c0_160 = arith.constant 0 : index
    %c7_161 = arith.constant 7 : index
    %c0_162 = arith.constant 0 : index
    %157 = vector.load %arg11[%c0_160, %c7_161, %c0_162] : memref<2x32x64xf32, #tpu.memory_space<vmem>>, vector<2x16x64xf32>
    %158 = vector.shape_cast %157 : vector<2x16x64xf32> to vector<32x64xf32>
    %c6_163 = arith.constant 6 : index
    %c0_164 = arith.constant 0 : index
    %c0_165 = arith.constant 0 : index
    %159 = vector.load %arg5[%c6_163, %c0_164, %c0_165] : memref<15x64x64xf32, #tpu.memory_space<vmem>>, vector<1x64x64xf32>
    %160 = vector.shape_cast %159 : vector<1x64x64xf32> to vector<64x64xf32>
    %cst_166 = arith.constant dense<0.000000e+00> : vector<32x64xf32>
    %161 = tpu.matmul %158, %160, %cst_166 {dimension_numbers = #tpu.dot_dimension_numbers<[1], [0], [0], [1], [0, 0, 1, 1], [], []>} : vector<32x64xf32>, vector<64x64xf32>, vector<32x64xf32> -> vector<32x64xf32>
    %162 = arith.addf %156, %161 : vector<32x64xf32>
    %c0_167 = arith.constant 0 : index
    %c8_168 = arith.constant 8 : index
    %c0_169 = arith.constant 0 : index
    %163 = vector.load %arg11[%c0_167, %c8_168, %c0_169] : memref<2x32x64xf32, #tpu.memory_space<vmem>>, vector<2x16x64xf32>
    %164 = vector.shape_cast %163 : vector<2x16x64xf32> to vector<32x64xf32>
    %c7_170 = arith.constant 7 : index
    %c0_171 = arith.constant 0 : index
    %c0_172 = arith.constant 0 : index
    %165 = vector.load %arg5[%c7_170, %c0_171, %c0_172] : memref<15x64x64xf32, #tpu.memory_space<vmem>>, vector<1x64x64xf32>
    %166 = vector.shape_cast %165 : vector<1x64x64xf32> to vector<64x64xf32>
    %cst_173 = arith.constant dense<0.000000e+00> : vector<32x64xf32>
    %167 = tpu.matmul %164, %166, %cst_173 {dimension_numbers = #tpu.dot_dimension_numbers<[1], [0], [0], [1], [0, 0, 1, 1], [], []>} : vector<32x64xf32>, vector<64x64xf32>, vector<32x64xf32> -> vector<32x64xf32>
    %168 = arith.addf %162, %167 : vector<32x64xf32>
    %c0_174 = arith.constant 0 : index
    %c9_175 = arith.constant 9 : index
    %c0_176 = arith.constant 0 : index
    %169 = vector.load %arg11[%c0_174, %c9_175, %c0_176] : memref<2x32x64xf32, #tpu.memory_space<vmem>>, vector<2x16x64xf32>
    %170 = vector.shape_cast %169 : vector<2x16x64xf32> to vector<32x64xf32>
    %c8_177 = arith.constant 8 : index
    %c0_178 = arith.constant 0 : index
    %c0_179 = arith.constant 0 : index
    %171 = vector.load %arg5[%c8_177, %c0_178, %c0_179] : memref<15x64x64xf32, #tpu.memory_space<vmem>>, vector<1x64x64xf32>
    %172 = vector.shape_cast %171 : vector<1x64x64xf32> to vector<64x64xf32>
    %cst_180 = arith.constant dense<0.000000e+00> : vector<32x64xf32>
    %173 = tpu.matmul %170, %172, %cst_180 {dimension_numbers = #tpu.dot_dimension_numbers<[1], [0], [0], [1], [0, 0, 1, 1], [], []>} : vector<32x64xf32>, vector<64x64xf32>, vector<32x64xf32> -> vector<32x64xf32>
    %174 = arith.addf %168, %173 : vector<32x64xf32>
    %c0_181 = arith.constant 0 : index
    %c10_182 = arith.constant 10 : index
    %c0_183 = arith.constant 0 : index
    %175 = vector.load %arg11[%c0_181, %c10_182, %c0_183] : memref<2x32x64xf32, #tpu.memory_space<vmem>>, vector<2x16x64xf32>
    %176 = vector.shape_cast %175 : vector<2x16x64xf32> to vector<32x64xf32>
    %c9_184 = arith.constant 9 : index
    %c0_185 = arith.constant 0 : index
    %c0_186 = arith.constant 0 : index
    %177 = vector.load %arg5[%c9_184, %c0_185, %c0_186] : memref<15x64x64xf32, #tpu.memory_space<vmem>>, vector<1x64x64xf32>
    %178 = vector.shape_cast %177 : vector<1x64x64xf32> to vector<64x64xf32>
    %cst_187 = arith.constant dense<0.000000e+00> : vector<32x64xf32>
    %179 = tpu.matmul %176, %178, %cst_187 {dimension_numbers = #tpu.dot_dimension_numbers<[1], [0], [0], [1], [0, 0, 1, 1], [], []>} : vector<32x64xf32>, vector<64x64xf32>, vector<32x64xf32> -> vector<32x64xf32>
    %180 = arith.addf %174, %179 : vector<32x64xf32>
    %c0_188 = arith.constant 0 : index
    %c11_189 = arith.constant 11 : index
    %c0_190 = arith.constant 0 : index
    %181 = vector.load %arg11[%c0_188, %c11_189, %c0_190] : memref<2x32x64xf32, #tpu.memory_space<vmem>>, vector<2x16x64xf32>
    %182 = vector.shape_cast %181 : vector<2x16x64xf32> to vector<32x64xf32>
    %c10_191 = arith.constant 10 : index
    %c0_192 = arith.constant 0 : index
    %c0_193 = arith.constant 0 : index
    %183 = vector.load %arg5[%c10_191, %c0_192, %c0_193] : memref<15x64x64xf32, #tpu.memory_space<vmem>>, vector<1x64x64xf32>
    %184 = vector.shape_cast %183 : vector<1x64x64xf32> to vector<64x64xf32>
    %cst_194 = arith.constant dense<0.000000e+00> : vector<32x64xf32>
    %185 = tpu.matmul %182, %184, %cst_194 {dimension_numbers = #tpu.dot_dimension_numbers<[1], [0], [0], [1], [0, 0, 1, 1], [], []>} : vector<32x64xf32>, vector<64x64xf32>, vector<32x64xf32> -> vector<32x64xf32>
    %186 = arith.addf %180, %185 : vector<32x64xf32>
    %c0_195 = arith.constant 0 : index
    %c12_196 = arith.constant 12 : index
    %c0_197 = arith.constant 0 : index
    %187 = vector.load %arg11[%c0_195, %c12_196, %c0_197] : memref<2x32x64xf32, #tpu.memory_space<vmem>>, vector<2x16x64xf32>
    %188 = vector.shape_cast %187 : vector<2x16x64xf32> to vector<32x64xf32>
    %c11_198 = arith.constant 11 : index
    %c0_199 = arith.constant 0 : index
    %c0_200 = arith.constant 0 : index
    %189 = vector.load %arg5[%c11_198, %c0_199, %c0_200] : memref<15x64x64xf32, #tpu.memory_space<vmem>>, vector<1x64x64xf32>
    %190 = vector.shape_cast %189 : vector<1x64x64xf32> to vector<64x64xf32>
    %cst_201 = arith.constant dense<0.000000e+00> : vector<32x64xf32>
    %191 = tpu.matmul %188, %190, %cst_201 {dimension_numbers = #tpu.dot_dimension_numbers<[1], [0], [0], [1], [0, 0, 1, 1], [], []>} : vector<32x64xf32>, vector<64x64xf32>, vector<32x64xf32> -> vector<32x64xf32>
    %192 = arith.addf %186, %191 : vector<32x64xf32>
    %c0_202 = arith.constant 0 : index
    %c13_203 = arith.constant 13 : index
    %c0_204 = arith.constant 0 : index
    %193 = vector.load %arg11[%c0_202, %c13_203, %c0_204] : memref<2x32x64xf32, #tpu.memory_space<vmem>>, vector<2x16x64xf32>
    %194 = vector.shape_cast %193 : vector<2x16x64xf32> to vector<32x64xf32>
    %c12_205 = arith.constant 12 : index
    %c0_206 = arith.constant 0 : index
    %c0_207 = arith.constant 0 : index
    %195 = vector.load %arg5[%c12_205, %c0_206, %c0_207] : memref<15x64x64xf32, #tpu.memory_space<vmem>>, vector<1x64x64xf32>
    %196 = vector.shape_cast %195 : vector<1x64x64xf32> to vector<64x64xf32>
    %cst_208 = arith.constant dense<0.000000e+00> : vector<32x64xf32>
    %197 = tpu.matmul %194, %196, %cst_208 {dimension_numbers = #tpu.dot_dimension_numbers<[1], [0], [0], [1], [0, 0, 1, 1], [], []>} : vector<32x64xf32>, vector<64x64xf32>, vector<32x64xf32> -> vector<32x64xf32>
    %198 = arith.addf %192, %197 : vector<32x64xf32>
    %c0_209 = arith.constant 0 : index
    %c14_210 = arith.constant 14 : index
    %c0_211 = arith.constant 0 : index
    %199 = vector.load %arg11[%c0_209, %c14_210, %c0_211] : memref<2x32x64xf32, #tpu.memory_space<vmem>>, vector<2x16x64xf32>
    %200 = vector.shape_cast %199 : vector<2x16x64xf32> to vector<32x64xf32>
    %c13_212 = arith.constant 13 : index
    %c0_213 = arith.constant 0 : index
    %c0_214 = arith.constant 0 : index
    %201 = vector.load %arg5[%c13_212, %c0_213, %c0_214] : memref<15x64x64xf32, #tpu.memory_space<vmem>>, vector<1x64x64xf32>
    %202 = vector.shape_cast %201 : vector<1x64x64xf32> to vector<64x64xf32>
    %cst_215 = arith.constant dense<0.000000e+00> : vector<32x64xf32>
    %203 = tpu.matmul %200, %202, %cst_215 {dimension_numbers = #tpu.dot_dimension_numbers<[1], [0], [0], [1], [0, 0, 1, 1], [], []>} : vector<32x64xf32>, vector<64x64xf32>, vector<32x64xf32> -> vector<32x64xf32>
    %204 = arith.addf %198, %203 : vector<32x64xf32>
    %c0_216 = arith.constant 0 : index
    %c15_217 = arith.constant 15 : index
    %c0_218 = arith.constant 0 : index
    %205 = vector.load %arg11[%c0_216, %c15_217, %c0_218] : memref<2x32x64xf32, #tpu.memory_space<vmem>>, vector<2x16x64xf32>
    %206 = vector.shape_cast %205 : vector<2x16x64xf32> to vector<32x64xf32>
    %c14_219 = arith.constant 14 : index
    %c0_220 = arith.constant 0 : index
    %c0_221 = arith.constant 0 : index
    %207 = vector.load %arg5[%c14_219, %c0_220, %c0_221] : memref<15x64x64xf32, #tpu.memory_space<vmem>>, vector<1x64x64xf32>
    %208 = vector.shape_cast %207 : vector<1x64x64xf32> to vector<64x64xf32>
    %cst_222 = arith.constant dense<0.000000e+00> : vector<32x64xf32>
    %209 = tpu.matmul %206, %208, %cst_222 {dimension_numbers = #tpu.dot_dimension_numbers<[1], [0], [0], [1], [0, 0, 1, 1], [], []>} : vector<32x64xf32>, vector<64x64xf32>, vector<32x64xf32> -> vector<32x64xf32>
    %210 = arith.addf %204, %209 : vector<32x64xf32>
    %c0_223 = arith.constant 0 : index
    %c0_224 = arith.constant 0 : index
    %211 = vector.load %arg6[%c0_223, %c0_224] : memref<1x64xf32, #tpu.memory_space<vmem>>, vector<1x64xf32>
    %212 = vector.broadcast %211 : vector<1x64xf32> to vector<32x64xf32>
    %213 = arith.addf %210, %212 : vector<32x64xf32>
    %c2_225 = arith.constant 2 : index
    %c0_226 = arith.constant 0 : index
    %214 = vector.load %arg9[%c2_225, %c0_226] : memref<3x64xf32, #tpu.memory_space<vmem>>, vector<1x64xf32>
    %cst_227 = arith.constant 0.000000e+00 : f32
    %215 = vector.broadcast %cst_227 : f32 to vector<32x64xf32>
    %216 = arith.cmpf ogt, %213, %215 : vector<32x64xf32>
    %217 = vector.broadcast %214 : vector<1x64xf32> to vector<32x64xf32>
    %218 = arith.mulf %217, %213 : vector<32x64xf32>
    %219 = arith.select %216, %213, %218 : vector<32x64xi1>, vector<32x64xf32>
    %220 = vector.shape_cast %219 : vector<32x64xf32> to vector<2x16x64xf32>
    %c0_228 = arith.constant 0 : index
    %c8_229 = arith.constant 8 : index
    %c0_230 = arith.constant 0 : index
    %221 = vector.load %arg11[%c0_228, %c8_229, %c0_230] : memref<2x32x64xf32, #tpu.memory_space<vmem>>, vector<2x16x64xf32>
    tpu.vector_store %arg11[%c0_228, %c8_229, %c0_230], %220 {strides = array<i32>} : memref<2x32x64xf32, #tpu.memory_space<vmem>>, vector<2x16x64xf32>,
    %cst_231 = arith.constant 0.000000e+00 : f32
    %222 = vector.broadcast %cst_231 : f32 to vector<32x2xf32>
    %c0_232 = arith.constant 0 : index
    %c1_233 = arith.constant 1 : index
    %c0_234 = arith.constant 0 : index
    %223 = vector.load %arg11[%c0_232, %c1_233, %c0_234] : memref<2x32x64xf32, #tpu.memory_space<vmem>>, vector<2x16x64xf32>
    %224 = vector.shape_cast %223 : vector<2x16x64xf32> to vector<32x64xf32>
    %c0_235 = arith.constant 0 : index
    %c0_236 = arith.constant 0 : index
    %c0_237 = arith.constant 0 : index
    %225 = vector.load %arg7[%c0_235, %c0_236, %c0_237] : memref<15x64x2xf32, #tpu.memory_space<vmem>>, vector<1x64x2xf32>
    %226 = vector.shape_cast %225 : vector<1x64x2xf32> to vector<64x2xf32>
    %cst_238 = arith.constant dense<0.000000e+00> : vector<32x2xf32>
    %227 = tpu.matmul %224, %226, %cst_238 {dimension_numbers = #tpu.dot_dimension_numbers<[1], [0], [0], [1], [0, 0, 1, 1], [], []>} : vector<32x64xf32>, vector<64x2xf32>, vector<32x2xf32> -> vector<32x2xf32>
    %228 = arith.addf %222, %227 : vector<32x2xf32>
    %c0_239 = arith.constant 0 : index
    %c2_240 = arith.constant 2 : index
    %c0_241 = arith.constant 0 : index
    %229 = vector.load %arg11[%c0_239, %c2_240, %c0_241] : memref<2x32x64xf32, #tpu.memory_space<vmem>>, vector<2x16x64xf32>
    %230 = vector.shape_cast %229 : vector<2x16x64xf32> to vector<32x64xf32>
    %c1_242 = arith.constant 1 : index
    %c0_243 = arith.constant 0 : index
    %c0_244 = arith.constant 0 : index
    %231 = vector.load %arg7[%c1_242, %c0_243, %c0_244] : memref<15x64x2xf32, #tpu.memory_space<vmem>>, vector<1x64x2xf32>
    %232 = vector.shape_cast %231 : vector<1x64x2xf32> to vector<64x2xf32>
    %cst_245 = arith.constant dense<0.000000e+00> : vector<32x2xf32>
    %233 = tpu.matmul %230, %232, %cst_245 {dimension_numbers = #tpu.dot_dimension_numbers<[1], [0], [0], [1], [0, 0, 1, 1], [], []>} : vector<32x64xf32>, vector<64x2xf32>, vector<32x2xf32> -> vector<32x2xf32>
    %234 = arith.addf %228, %233 : vector<32x2xf32>
    %c0_246 = arith.constant 0 : index
    %c3_247 = arith.constant 3 : index
    %c0_248 = arith.constant 0 : index
    %235 = vector.load %arg11[%c0_246, %c3_247, %c0_248] : memref<2x32x64xf32, #tpu.memory_space<vmem>>, vector<2x16x64xf32>
    %236 = vector.shape_cast %235 : vector<2x16x64xf32> to vector<32x64xf32>
    %c2_249 = arith.constant 2 : index
    %c0_250 = arith.constant 0 : index
    %c0_251 = arith.constant 0 : index
    %237 = vector.load %arg7[%c2_249, %c0_250, %c0_251] : memref<15x64x2xf32, #tpu.memory_space<vmem>>, vector<1x64x2xf32>
    %238 = vector.shape_cast %237 : vector<1x64x2xf32> to vector<64x2xf32>
    %cst_252 = arith.constant dense<0.000000e+00> : vector<32x2xf32>
    %239 = tpu.matmul %236, %238, %cst_252 {dimension_numbers = #tpu.dot_dimension_numbers<[1], [0], [0], [1], [0, 0, 1, 1], [], []>} : vector<32x64xf32>, vector<64x2xf32>, vector<32x2xf32> -> vector<32x2xf32>
    %240 = arith.addf %234, %239 : vector<32x2xf32>
    %c0_253 = arith.constant 0 : index
    %c4_254 = arith.constant 4 : index
    %c0_255 = arith.constant 0 : index
    %241 = vector.load %arg11[%c0_253, %c4_254, %c0_255] : memref<2x32x64xf32, #tpu.memory_space<vmem>>, vector<2x16x64xf32>
    %242 = vector.shape_cast %241 : vector<2x16x64xf32> to vector<32x64xf32>
    %c3_256 = arith.constant 3 : index
    %c0_257 = arith.constant 0 : index
    %c0_258 = arith.constant 0 : index
    %243 = vector.load %arg7[%c3_256, %c0_257, %c0_258] : memref<15x64x2xf32, #tpu.memory_space<vmem>>, vector<1x64x2xf32>
    %244 = vector.shape_cast %243 : vector<1x64x2xf32> to vector<64x2xf32>
    %cst_259 = arith.constant dense<0.000000e+00> : vector<32x2xf32>
    %245 = tpu.matmul %242, %244, %cst_259 {dimension_numbers = #tpu.dot_dimension_numbers<[1], [0], [0], [1], [0, 0, 1, 1], [], []>} : vector<32x64xf32>, vector<64x2xf32>, vector<32x2xf32> -> vector<32x2xf32>
    %246 = arith.addf %240, %245 : vector<32x2xf32>
    %c0_260 = arith.constant 0 : index
    %c5_261 = arith.constant 5 : index
    %c0_262 = arith.constant 0 : index
    %247 = vector.load %arg11[%c0_260, %c5_261, %c0_262] : memref<2x32x64xf32, #tpu.memory_space<vmem>>, vector<2x16x64xf32>
    %248 = vector.shape_cast %247 : vector<2x16x64xf32> to vector<32x64xf32>
    %c4_263 = arith.constant 4 : index
    %c0_264 = arith.constant 0 : index
    %c0_265 = arith.constant 0 : index
    %249 = vector.load %arg7[%c4_263, %c0_264, %c0_265] : memref<15x64x2xf32, #tpu.memory_space<vmem>>, vector<1x64x2xf32>
    %250 = vector.shape_cast %249 : vector<1x64x2xf32> to vector<64x2xf32>
    %cst_266 = arith.constant dense<0.000000e+00> : vector<32x2xf32>
    %251 = tpu.matmul %248, %250, %cst_266 {dimension_numbers = #tpu.dot_dimension_numbers<[1], [0], [0], [1], [0, 0, 1, 1], [], []>} : vector<32x64xf32>, vector<64x2xf32>, vector<32x2xf32> -> vector<32x2xf32>
    %252 = arith.addf %246, %251 : vector<32x2xf32>
    %c0_267 = arith.constant 0 : index
    %c6_268 = arith.constant 6 : index
    %c0_269 = arith.constant 0 : index
    %253 = vector.load %arg11[%c0_267, %c6_268, %c0_269] : memref<2x32x64xf32, #tpu.memory_space<vmem>>, vector<2x16x64xf32>
    %254 = vector.shape_cast %253 : vector<2x16x64xf32> to vector<32x64xf32>
    %c5_270 = arith.constant 5 : index
    %c0_271 = arith.constant 0 : index
    %c0_272 = arith.constant 0 : index
    %255 = vector.load %arg7[%c5_270, %c0_271, %c0_272] : memref<15x64x2xf32, #tpu.memory_space<vmem>>, vector<1x64x2xf32>
    %256 = vector.shape_cast %255 : vector<1x64x2xf32> to vector<64x2xf32>
    %cst_273 = arith.constant dense<0.000000e+00> : vector<32x2xf32>
    %257 = tpu.matmul %254, %256, %cst_273 {dimension_numbers = #tpu.dot_dimension_numbers<[1], [0], [0], [1], [0, 0, 1, 1], [], []>} : vector<32x64xf32>, vector<64x2xf32>, vector<32x2xf32> -> vector<32x2xf32>
    %258 = arith.addf %252, %257 : vector<32x2xf32>
    %c0_274 = arith.constant 0 : index
    %c7_275 = arith.constant 7 : index
    %c0_276 = arith.constant 0 : index
    %259 = vector.load %arg11[%c0_274, %c7_275, %c0_276] : memref<2x32x64xf32, #tpu.memory_space<vmem>>, vector<2x16x64xf32>
    %260 = vector.shape_cast %259 : vector<2x16x64xf32> to vector<32x64xf32>
    %c6_277 = arith.constant 6 : index
    %c0_278 = arith.constant 0 : index
    %c0_279 = arith.constant 0 : index
    %261 = vector.load %arg7[%c6_277, %c0_278, %c0_279] : memref<15x64x2xf32, #tpu.memory_space<vmem>>, vector<1x64x2xf32>
    %262 = vector.shape_cast %261 : vector<1x64x2xf32> to vector<64x2xf32>
    %cst_280 = arith.constant dense<0.000000e+00> : vector<32x2xf32>
    %263 = tpu.matmul %260, %262, %cst_280 {dimension_numbers = #tpu.dot_dimension_numbers<[1], [0], [0], [1], [0, 0, 1, 1], [], []>} : vector<32x64xf32>, vector<64x2xf32>, vector<32x2xf32> -> vector<32x2xf32>
    %264 = arith.addf %258, %263 : vector<32x2xf32>
    %c0_281 = arith.constant 0 : index
    %c8_282 = arith.constant 8 : index
    %c0_283 = arith.constant 0 : index
    %265 = vector.load %arg11[%c0_281, %c8_282, %c0_283] : memref<2x32x64xf32, #tpu.memory_space<vmem>>, vector<2x16x64xf32>
    %266 = vector.shape_cast %265 : vector<2x16x64xf32> to vector<32x64xf32>
    %c7_284 = arith.constant 7 : index
    %c0_285 = arith.constant 0 : index
    %c0_286 = arith.constant 0 : index
    %267 = vector.load %arg7[%c7_284, %c0_285, %c0_286] : memref<15x64x2xf32, #tpu.memory_space<vmem>>, vector<1x64x2xf32>
    %268 = vector.shape_cast %267 : vector<1x64x2xf32> to vector<64x2xf32>
    %cst_287 = arith.constant dense<0.000000e+00> : vector<32x2xf32>
    %269 = tpu.matmul %266, %268, %cst_287 {dimension_numbers = #tpu.dot_dimension_numbers<[1], [0], [0], [1], [0, 0, 1, 1], [], []>} : vector<32x64xf32>, vector<64x2xf32>, vector<32x2xf32> -> vector<32x2xf32>
    %270 = arith.addf %264, %269 : vector<32x2xf32>
    %c0_288 = arith.constant 0 : index
    %c9_289 = arith.constant 9 : index
    %c0_290 = arith.constant 0 : index
    %271 = vector.load %arg11[%c0_288, %c9_289, %c0_290] : memref<2x32x64xf32, #tpu.memory_space<vmem>>, vector<2x16x64xf32>
    %272 = vector.shape_cast %271 : vector<2x16x64xf32> to vector<32x64xf32>
    %c8_291 = arith.constant 8 : index
    %c0_292 = arith.constant 0 : index
    %c0_293 = arith.constant 0 : index
    %273 = vector.load %arg7[%c8_291, %c0_292, %c0_293] : memref<15x64x2xf32, #tpu.memory_space<vmem>>, vector<1x64x2xf32>
    %274 = vector.shape_cast %273 : vector<1x64x2xf32> to vector<64x2xf32>
    %cst_294 = arith.constant dense<0.000000e+00> : vector<32x2xf32>
    %275 = tpu.matmul %272, %274, %cst_294 {dimension_numbers = #tpu.dot_dimension_numbers<[1], [0], [0], [1], [0, 0, 1, 1], [], []>} : vector<32x64xf32>, vector<64x2xf32>, vector<32x2xf32> -> vector<32x2xf32>
    %276 = arith.addf %270, %275 : vector<32x2xf32>
    %c0_295 = arith.constant 0 : index
    %c10_296 = arith.constant 10 : index
    %c0_297 = arith.constant 0 : index
    %277 = vector.load %arg11[%c0_295, %c10_296, %c0_297] : memref<2x32x64xf32, #tpu.memory_space<vmem>>, vector<2x16x64xf32>
    %278 = vector.shape_cast %277 : vector<2x16x64xf32> to vector<32x64xf32>
    %c9_298 = arith.constant 9 : index
    %c0_299 = arith.constant 0 : index
    %c0_300 = arith.constant 0 : index
    %279 = vector.load %arg7[%c9_298, %c0_299, %c0_300] : memref<15x64x2xf32, #tpu.memory_space<vmem>>, vector<1x64x2xf32>
    %280 = vector.shape_cast %279 : vector<1x64x2xf32> to vector<64x2xf32>
    %cst_301 = arith.constant dense<0.000000e+00> : vector<32x2xf32>
    %281 = tpu.matmul %278, %280, %cst_301 {dimension_numbers = #tpu.dot_dimension_numbers<[1], [0], [0], [1], [0, 0, 1, 1], [], []>} : vector<32x64xf32>, vector<64x2xf32>, vector<32x2xf32> -> vector<32x2xf32>
    %282 = arith.addf %276, %281 : vector<32x2xf32>
    %c0_302 = arith.constant 0 : index
    %c11_303 = arith.constant 11 : index
    %c0_304 = arith.constant 0 : index
    %283 = vector.load %arg11[%c0_302, %c11_303, %c0_304] : memref<2x32x64xf32, #tpu.memory_space<vmem>>, vector<2x16x64xf32>
    %284 = vector.shape_cast %283 : vector<2x16x64xf32> to vector<32x64xf32>
    %c10_305 = arith.constant 10 : index
    %c0_306 = arith.constant 0 : index
    %c0_307 = arith.constant 0 : index
    %285 = vector.load %arg7[%c10_305, %c0_306, %c0_307] : memref<15x64x2xf32, #tpu.memory_space<vmem>>, vector<1x64x2xf32>
    %286 = vector.shape_cast %285 : vector<1x64x2xf32> to vector<64x2xf32>
    %cst_308 = arith.constant dense<0.000000e+00> : vector<32x2xf32>
    %287 = tpu.matmul %284, %286, %cst_308 {dimension_numbers = #tpu.dot_dimension_numbers<[1], [0], [0], [1], [0, 0, 1, 1], [], []>} : vector<32x64xf32>, vector<64x2xf32>, vector<32x2xf32> -> vector<32x2xf32>
    %288 = arith.addf %282, %287 : vector<32x2xf32>
    %c0_309 = arith.constant 0 : index
    %c12_310 = arith.constant 12 : index
    %c0_311 = arith.constant 0 : index
    %289 = vector.load %arg11[%c0_309, %c12_310, %c0_311] : memref<2x32x64xf32, #tpu.memory_space<vmem>>, vector<2x16x64xf32>
    %290 = vector.shape_cast %289 : vector<2x16x64xf32> to vector<32x64xf32>
    %c11_312 = arith.constant 11 : index
    %c0_313 = arith.constant 0 : index
    %c0_314 = arith.constant 0 : index
    %291 = vector.load %arg7[%c11_312, %c0_313, %c0_314] : memref<15x64x2xf32, #tpu.memory_space<vmem>>, vector<1x64x2xf32>
    %292 = vector.shape_cast %291 : vector<1x64x2xf32> to vector<64x2xf32>
    %cst_315 = arith.constant dense<0.000000e+00> : vector<32x2xf32>
    %293 = tpu.matmul %290, %292, %cst_315 {dimension_numbers = #tpu.dot_dimension_numbers<[1], [0], [0], [1], [0, 0, 1, 1], [], []>} : vector<32x64xf32>, vector<64x2xf32>, vector<32x2xf32> -> vector<32x2xf32>
    %294 = arith.addf %288, %293 : vector<32x2xf32>
    %c0_316 = arith.constant 0 : index
    %c13_317 = arith.constant 13 : index
    %c0_318 = arith.constant 0 : index
    %295 = vector.load %arg11[%c0_316, %c13_317, %c0_318] : memref<2x32x64xf32, #tpu.memory_space<vmem>>, vector<2x16x64xf32>
    %296 = vector.shape_cast %295 : vector<2x16x64xf32> to vector<32x64xf32>
    %c12_319 = arith.constant 12 : index
    %c0_320 = arith.constant 0 : index
    %c0_321 = arith.constant 0 : index
    %297 = vector.load %arg7[%c12_319, %c0_320, %c0_321] : memref<15x64x2xf32, #tpu.memory_space<vmem>>, vector<1x64x2xf32>
    %298 = vector.shape_cast %297 : vector<1x64x2xf32> to vector<64x2xf32>
    %cst_322 = arith.constant dense<0.000000e+00> : vector<32x2xf32>
    %299 = tpu.matmul %296, %298, %cst_322 {dimension_numbers = #tpu.dot_dimension_numbers<[1], [0], [0], [1], [0, 0, 1, 1], [], []>} : vector<32x64xf32>, vector<64x2xf32>, vector<32x2xf32> -> vector<32x2xf32>
    %300 = arith.addf %294, %299 : vector<32x2xf32>
    %c0_323 = arith.constant 0 : index
    %c14_324 = arith.constant 14 : index
    %c0_325 = arith.constant 0 : index
    %301 = vector.load %arg11[%c0_323, %c14_324, %c0_325] : memref<2x32x64xf32, #tpu.memory_space<vmem>>, vector<2x16x64xf32>
    %302 = vector.shape_cast %301 : vector<2x16x64xf32> to vector<32x64xf32>
    %c13_326 = arith.constant 13 : index
    %c0_327 = arith.constant 0 : index
    %c0_328 = arith.constant 0 : index
    %303 = vector.load %arg7[%c13_326, %c0_327, %c0_328] : memref<15x64x2xf32, #tpu.memory_space<vmem>>, vector<1x64x2xf32>
    %304 = vector.shape_cast %303 : vector<1x64x2xf32> to vector<64x2xf32>
    %cst_329 = arith.constant dense<0.000000e+00> : vector<32x2xf32>
    %305 = tpu.matmul %302, %304, %cst_329 {dimension_numbers = #tpu.dot_dimension_numbers<[1], [0], [0], [1], [0, 0, 1, 1], [], []>} : vector<32x64xf32>, vector<64x2xf32>, vector<32x2xf32> -> vector<32x2xf32>
    %306 = arith.addf %300, %305 : vector<32x2xf32>
    %c0_330 = arith.constant 0 : index
    %c15_331 = arith.constant 15 : index
    %c0_332 = arith.constant 0 : index
    %307 = vector.load %arg11[%c0_330, %c15_331, %c0_332] : memref<2x32x64xf32, #tpu.memory_space<vmem>>, vector<2x16x64xf32>
    %308 = vector.shape_cast %307 : vector<2x16x64xf32> to vector<32x64xf32>
    %c14_333 = arith.constant 14 : index
    %c0_334 = arith.constant 0 : index
    %c0_335 = arith.constant 0 : index
    %309 = vector.load %arg7[%c14_333, %c0_334, %c0_335] : memref<15x64x2xf32, #tpu.memory_space<vmem>>, vector<1x64x2xf32>
    %310 = vector.shape_cast %309 : vector<1x64x2xf32> to vector<64x2xf32>
    %cst_336 = arith.constant dense<0.000000e+00> : vector<32x2xf32>
    %311 = tpu.matmul %308, %310, %cst_336 {dimension_numbers = #tpu.dot_dimension_numbers<[1], [0], [0], [1], [0, 0, 1, 1], [], []>} : vector<32x64xf32>, vector<64x2xf32>, vector<32x2xf32> -> vector<32x2xf32>
    %312 = arith.addf %306, %311 : vector<32x2xf32>
    %c0_337 = arith.constant 0 : index
    %c0_338 = arith.constant 0 : index
    %313 = vector.load %arg8[%c0_337, %c0_338] : memref<1x2xf32, #tpu.memory_space<vmem>>, vector<1x2xf32>
    %314 = vector.broadcast %313 : vector<1x2xf32> to vector<32x2xf32>
    %315 = arith.addf %312, %314 : vector<32x2xf32>
    %316 = arith.negf %315 : vector<32x2xf32>
    %317 = math.exp %316 : vector<32x2xf32>
    %cst_339 = arith.constant 1.000000e+00 : f32
    %318 = vector.broadcast %cst_339 : f32 to vector<32x2xf32>
    %319 = arith.addf %318, %317 : vector<32x2xf32>
    %320 = arith.divf %318, %319 : vector<32x2xf32>
    %c0_340 = arith.constant 0 : index
    %c0_341 = arith.constant 0 : index
    %321 = vector.load %arg10[%c0_340, %c0_341] : memref<32x2xf32, #tpu.memory_space<vmem>>, vector<32x2xf32>
    tpu.vector_store %arg10[%c0_340, %c0_341], %320 {strides = array<i32>} : memref<32x2xf32, #tpu.memory_space<vmem>>, vector<32x2xf32>,
    return
  }
}

</mosaic_0001>

<bundles_post_ra>
// kernel: tpu_custom_call.1
= control target key start
LH: loop header
LB: loop body
LE: loop exit
PB: predicated region body
PF: predicated region fallthrough
CT: control target
= control target key end

     0   :  { %15 = vsyncpa [#allocation4], 0  ;;  %s8383_s13 = smov [#allocation3]   ;;  %s9640_s0 = inlined_call_operand.vmem [shape: f32[32,120], index: 0, kind: input, shape index: {}]   ;;  %s9641_s1 = inlined_call_operand.vmem [shape: f32[120,64], index: 1, kind: input, shape index: {}]   ;;  %s9642_s2 = inlined_call_operand.vmem [shape: f32[1,64], index: 2, kind: input, shape index: {}]   ;;  %s9643_s3 = inlined_call_operand.vmem [shape: f32[15,64,64], index: 3, kind: input, shape index: {}]   ;;  %s9644_s4 = inlined_call_operand.vmem [shape: f32[1,64], index: 4, kind: input, shape index: {}]   ;;  %s9645_s5 = inlined_call_operand.hbm [shape: f32[15,64,64], index: 5, kind: input, shape index: {}]   ;;  %s9646_s6 = inlined_call_operand.vmem [shape: f32[1,64], index: 6, kind: input, shape index: {}]   ;;  %s9647_s7 = inlined_call_operand.vmem [shape: f32[15,64,2], index: 7, kind: input, shape index: {}]   ;;  %s9648_s8 = inlined_call_operand.vmem [shape: f32[1,2], index: 8, kind: input, shape index: {}]   ;;  %s9649_s9 = inlined_call_operand.vmem [shape: f32[3,64], index: 9, kind: input, shape index: {}]   ;;  %s9650_s10 = inlined_call_operand.vmem [shape: f32[32,2], index: 10, kind: output, shape index: {}]  }
   0x1   :  { %s31_s14 = sshll.u32 %s8383_s13, 4  ;;  %s8359_s17 = scalar_lea.hbm %s9645_s5, 15360  ;;  %s32_s14 = int_to_ptr.vmem [resolvable:$true] %s31_s14 }
   0x2   :  { %p8360_p0 = scmp.ne.s32.totalorder %s9645_s5, %s8359_s17  ;;  %p8363_p1 = scmp.lt.u32.totalorder %s8359_s17, %s9645_s5 }
   0x4   :  { %p8365_p2 = pnand %p8363_p1, %p8360_p0 }
   0x6   :  { %8368 = shalt.err (!%p8365_p2)
}
   0x7   :  { %s8369_s22 = scalar_lea.vmem %s32_s14, 15360  ;;  %p8374_p4 = scmp.lt.s32.totalorder %s32_s14, %s32_s14 }
   0x8   :  { %p8370_p3 = scmp.ne.s32.totalorder %s32_s14, %s8369_s22  ;;  %p8375_p5 = scmp.lt.s32.totalorder %s8369_s22, %s8369_s22 }
   0xa   :  { %p8376_p6 = por %p8375_p5, %p8374_p4 }
   0xc   :  { %p8377_p7 = pnand %p8376_p6, %p8370_p3 }
   0xe   :  { %8380 = shalt.err (!%p8377_p7)
}
   0xf   :  { %s8384_s23 = smov 128   ;;  %s8385_s24 = smov 8  }
  0x10   :  { %37 = dma.hbm_to_vmem [thread:$0]  %s9645_s5, 15360, %s32_s14, [#allocation4], %s8384_s23, %s8384_s23, %s8385_s24  }
  0x11   :  { %8381 = dma.done.wait [#allocation4], 15360  }
  0x12   :  { %8382 = vsyncadd [#allocation4], 4294951936  ;;  %v58_v0 = vld [vmem:[%s9641_s1] sm:$0xff]  ;;  %v59_v1 = vld [vmem:[%s9641_s1 + $0x8] sm:$0xff]  ;;  %vm80_vm0 = vcmask 982016   ;;  %vm49_vm1 = vcmask 523264  }
  0x13   :  { %v60_v2 = vld [vmem:[%s9641_s1 + $0x10] sm:$0xff]  ;;  %v7415_v3 = vpack.c.bf16 %v59_v1, %v58_v0  ;;  %v61_v4 = vld [vmem:[%s9641_s1 + $0x18] sm:$0xff]  ;;  %v62_v6 = vld [vmem:[%s9641_s1 + $0x20] sm:$0xff]  ;;  %v8386_v44 = vmov 0.0   ;;  %vm5401_vm14 = vcmask 15360  }
  0x14   :  { %v7419_v5 = vpack.c.bf16 %v61_v4, %v60_v2  ;;  %v63_v7 = vld [vmem:[%s9641_s1 + $0x28] sm:$0xff]  ;;  %v54_v9 = vld [vmem:[%s9640_s0] sm:$0xff]  ;;  %v64_v10 = vld [vmem:[%s9641_s1 + $0x30] sm:$0xff]  ;;  %50 = vst.msk [vmem:[#allocation2] sm:$0xff] %vm49_vm1, %v8386_v44 }
  0x15   :  { %7416 = vmatprep.subr.bf16.mxu0 %v7415_v3  ;;  %v7423_v8 = vpack.c.bf16 %v63_v7, %v62_v6  ;;  %v65_v11 = vld [vmem:[%s9641_s1 + $0x38] sm:$0xff]  ;;  %6419 = vmatprep.mubr.msk.f32.mxu0 %vm80_vm0, %v54_v9  ;;  %v5481_v12 = vld [vmem:[%s9643_s3 + $0x180] sm:$0xff]  ;;  %v5482_v13 = vld [vmem:[%s9643_s3 + $0x188] sm:$0xff]  ;;  %51 = vst.msk [vmem:[#allocation2 + $0x20] sm:$0xff] %vm49_vm1, %v8386_v44 }
  0x16   :  { %7418 = vmatpush3.bf16.msra.mxu0 %v7415_v3  ;;  %v7539_v14 = vpack.c.bf16 %v5482_v13, %v5481_v12  ;;  %v7427_v15 = vpack.c.bf16 %v65_v11, %v64_v10  ;;  %v66_v16 = vld [vmem:[%s9641_s1 + $0x40] sm:$0xff]  ;;  %v67_v17 = vld [vmem:[%s9641_s1 + $0x48] sm:$0xff]  ;;  %v68_v19 = vld [vmem:[%s9641_s1 + $0x50] sm:$0xff]  ;;  %52 = vst.msk [vmem:[#allocation2 + $0x18] sm:$0xff] %vm49_vm1, %v8386_v44 }
  0x17   :  { %7420 = vmatprep.subr.bf16.mxu0 %v7419_v5  ;;  %v7431_v18 = vpack.c.bf16 %v67_v17, %v66_v16  ;;  %v69_v20 = vld [vmem:[%s9641_s1 + $0x58] sm:$0xff]  ;;  %v70_v22 = vld [vmem:[%s9641_s1 + $0x60] sm:$0xff]  ;;  %v71_v23 = vld [vmem:[%s9641_s1 + $0x68] sm:$0xff]  ;;  %53 = vst.msk [vmem:[#allocation2 + $0x38] sm:$0xff] %vm49_vm1, %v8386_v44 }
  0x18   :  { %7540 = vmatprep.subr.bf16.mxu1 %v7539_v14  ;;  %v7435_v21 = vpack.c.bf16 %v69_v20, %v68_v19  ;;  %v7439_v24 = vpack.c.bf16 %v71_v23, %v70_v22  ;;  %v72_v25 = vld [vmem:[%s9641_s1 + $0x70] sm:$0xff]  ;;  %v5417_v26 = vld [vmem:[%s9643_s3 + $0x40] sm:$0xff]  ;;  %v5418_v27 = vld [vmem:[%s9643_s3 + $0x48] sm:$0xff] }
  0x19   :  { %7542 = vmatpush3.bf16.msra.mxu1 %v7539_v14  ;;  %v7443_v28 = vpack.c.bf16 %v5418_v27, %v5417_v26  ;;  %v55_v29 = vld [vmem:[%s9640_s0 + $0x8] sm:$0xff]  ;;  %v56_v30 = vld [vmem:[%s9640_s0 + $0x10] sm:$0xff]  ;;  %v57_v31 = vld [vmem:[%s9640_s0 + $0x18] sm:$0xff] }
  0x1a   :  { %7422 = vmatpush3.bf16.msra.mxu0 %v7419_v5  ;;  %v5419_v32 = vld [vmem:[%s9643_s3 + $0x50] sm:$0xff]  ;;  %v5420_v33 = vld [vmem:[%s9643_s3 + $0x58] sm:$0xff]  ;;  %v5421_v38 = vld [vmem:[%s9643_s3 + $0x60] sm:$0xff] }
  0x1b   :  { %7424 = vmatprep.subr.bf16.mxu0 %v7423_v8  ;;  %v7447_v34 = vpack.c.bf16 %v5420_v33, %v5419_v32  ;;  %v5483_v35 = vld [vmem:[%s9643_s3 + $0x190] sm:$0xff]  ;;  %v5484_v36 = vld [vmem:[%s9643_s3 + $0x198] sm:$0xff]  ;;  %v5422_v39 = vld [vmem:[%s9643_s3 + $0x68] sm:$0xff] }
  0x1c   :  { %v7543_v37 = vpack.c.bf16 %v5484_v36, %v5483_v35  ;;  %v5485_v40 = vld [vmem:[%s9643_s3 + $0x1a0] sm:$0xff]  ;;  %v7451_v41 = vpack.c.bf16 %v5422_v39, %v5421_v38  ;;  %v5486_v42 = vld [vmem:[%s9643_s3 + $0x1a8] sm:$0xff]  ;;  %v5423_v45 = vld [vmem:[%s9643_s3 + $0x70] sm:$0xff] }
  0x1d   :  { %v7547_v43 = vpack.c.bf16 %v5486_v42, %v5485_v40  ;;  %v5424_v46 = vld [vmem:[%s9643_s3 + $0x78] sm:$0xff]  ;;  %v5487_v47 = vld [vmem:[%s9643_s3 + $0x1b0] sm:$0xff]  ;;  %v203_v51 = vld [vmem:[%s9643_s3] sm:$0xff] }
  0x1e   :  { %7426 = vmatpush3.bf16.msra.mxu0 %v7423_v8  ;;  %7544 = vmatprep.subr.bf16.mxu1 %v7543_v37  ;;  %v7455_v48 = vpack.c.bf16 %v5424_v46, %v5423_v45  ;;  %v5488_v49 = vld [vmem:[%s9643_s3 + $0x1b8] sm:$0xff]  ;;  %v204_v52 = vld [vmem:[%s9643_s3 + $0x8] sm:$0xff]  ;;  %v5493_v53 = vld [vmem:[%s9643_s3 + $0x1c0] sm:$0xff] }
  0x1f   :  { %7428 = vmatprep.subr.bf16.mxu0 %v7427_v15  ;;  %7546 = vmatpush3.bf16.msra.mxu1 %v7543_v37  ;;  %v7551_v50 = vpack.c.bf16 %v5488_v49, %v5487_v47  ;;  %v7459_v54 = vpack.c.bf16 %v204_v52, %v203_v51  ;;  %v5494_v55 = vld [vmem:[%s9643_s3 + $0x1c8] sm:$0xff]  ;;  %v5411_v57 = vld [vmem:[%s9642_s2] ss:$0 sm:$0xff]  ;;  %v205_v11 = vld [vmem:[%s9643_s3 + $0x10] sm:$0xff] }
  0x20   :  { %7548 = vmatprep.subr.bf16.mxu1 %v7547_v43  ;;  %v7555_v56 = vpack.c.bf16 %v5494_v55, %v5493_v53  ;;  %v5416_v59 = vld [vmem:[%s9649_s9] ss:$0 sm:$0xff]  ;;  %v206_v12 = vld [vmem:[%s9643_s3 + $0x18] sm:$0xff]  ;;  %v5495_v13 = vld [vmem:[%s9643_s3 + $0x1d0] sm:$0xff] }
  0x21   :  { %v5496_v14 = vld [vmem:[%s9643_s3 + $0x1d8] sm:$0xff]  ;;  %v208_v22 = vld [vmem:[%s9643_s3 + $0x28] sm:$0xff]  ;;  %v5497_v23 = vld [vmem:[%s9643_s3 + $0x1e0] sm:$0xff] }
  0x22   :  { %7430 = vmatpush3.bf16.msra.mxu0 %v7427_v15  ;;  %v7559_v19 = vpack.c.bf16 %v5496_v14, %v5495_v13  ;;  %v210_v26 = vld [vmem:[%s9643_s3 + $0x38] sm:$0xff]  ;;  %v5499_v33 = vld [vmem:[%s9643_s3 + $0x1f0] sm:$0xff]  ;;  %v5433_v39 = vld [vmem:[%s9643_s3 + $0x80] sm:$0xff] }
  0x23   :  { %7432 = vmatprep.subr.bf16.mxu0 %v7431_v18  ;;  %7550 = vmatpush3.bf16.msra.mxu1 %v7547_v43  ;;  %v5434_v40 = vld [vmem:[%s9643_s3 + $0x88] sm:$0xff]  ;;  %v5435_v45 = vld [vmem:[%s9643_s3 + $0x90] sm:$0xff]  ;;  %v5436_v46 = vld [vmem:[%s9643_s3 + $0x98] sm:$0xff] }
  0x24   :  { %7552 = vmatprep.subr.bf16.mxu1 %v7551_v50  ;;  %v5506_v42 = vld [vmem:[%s9643_s3 + $0x208] sm:$0xff]  ;;  %v7475_v43 = vpack.c.bf16 %v5434_v40, %v5433_v39  ;;  %v5507_v47 = vld [vmem:[%s9643_s3 + $0x210] sm:$0xff]  ;;  %v5437_v49 = vld [vmem:[%s9643_s3 + $0xa0] sm:$0xff]  ;;  %v7479_v52 = vpack.c.bf16 %v5436_v46, %v5435_v45 }
  0x25   :  { %v5448_v13 = vld [vmem:[%s9643_s3 + $0xd8] sm:$0xff]  ;;  %v5519_v14 = vld [vmem:[%s9643_s3 + $0x250] sm:$0xff]  ;;  %v5457_v40 = vld [vmem:[%s9643_s3 + $0x100] sm:$0xff] }
  0x26   :  { %7434 = vmatpush3.bf16.msra.mxu0 %v7431_v18  ;;  %v7463_v18 = vpack.c.bf16 %v206_v12, %v205_v11  ;;  %v5447_v12 = vld [vmem:[%s9643_s3 + $0xd0] sm:$0xff]  ;;  %v5460_v46 = vld [vmem:[%s9643_s3 + $0x118] sm:$0xff] }
  0x27   :  { %7436 = vmatprep.subr.bf16.mxu0 %v7435_v21  ;;  %7554 = vmatpush3.bf16.msra.mxu1 %v7551_v50  ;;  %v5459_v45 = vld [vmem:[%s9643_s3 + $0x110] sm:$0xff] }
  0x28   :  { %7556 = vmatprep.subr.bf16.mxu1 %v7555_v56 }
  0x2a   :  { %7438 = vmatpush3.bf16.msra.mxu0 %v7435_v21  ;;  %v207_v21 = vld [vmem:[%s9643_s3 + $0x20] sm:$0xff] }
  0x2b   :  { %7440 = vmatprep.subr.bf16.mxu0 %v7439_v24 }
  0x2e   :  { %7442 = vmatpush3.bf16.msra.mxu0 %v7439_v24  ;;  %v5498_v24 = vld [vmem:[%s9643_s3 + $0x1e8] sm:$0xff] }
  0x2f   :  { %6417 = vmatprep.subr.mxu0 %v72_v25  ;;  %v7563_v32 = vpack.c.bf16 %v5498_v24, %v5497_v23  ;;  %v5450_v24 = vld [vmem:[%s9643_s3 + $0xe8] sm:$0xff] }
  0x32   :  { %6418 = vmatpush3.msra.mxu0 %v72_v25  ;;  %v209_v25 = vld [vmem:[%s9643_s3 + $0x30] sm:$0xff] }
  0x33   :  { %6420 = vmatmul.mubr.msk.f32.vlgmr.msra.gmra.mrb[0].mxu0 %vm80_vm0, %v55_v29  ;;  %7444 = vmatprep.subr.bf16.mxu0 %v7443_v28  ;;  %v7471_v37 = vpack.c.bf16 %v210_v26, %v209_v25  ;;  %v5521_v25 = vld [vmem:[%s9643_s3 + $0x260] sm:$0xff]  ;;  %v5522_v26 = vld [vmem:[%s9643_s3 + $0x268] sm:$0xff] }
  0x34   :  { %6422 = vmatprep.mubr.msk.f32.mxu0 %vm80_vm0, %v56_v30  ;;  %7446 = vmatpush3.bf16.msra.mxu0 %v7443_v28 }
  0x35   :  { %7448 = vmatprep.subr.bf16.mxu0 %v7447_v34 }
  0x37   :  { %6423 = vmatmul.mubr.msk.f32.gmra.mrb[2].mxu0 %vm80_vm0, %v57_v31  ;;  %v7467_v31 = vpack.c.bf16 %v208_v22, %v207_v21 }
  0x38   :  { %7450 = vmatpush3.bf16.msra.mxu0 %v7447_v34  ;;  %v5500_v34 = vld [vmem:[%s9643_s3 + $0x1f8] sm:$0xff] }
  0x39   :  { %7452 = vmatprep.subr.bf16.mxu0 %v7451_v41  ;;  %v7567_v38 = vpack.c.bf16 %v5500_v34, %v5499_v33  ;;  %v7595_v34 = vpack.c.bf16 %v5522_v26, %v5521_v25 }
  0x3c   :  { %7454 = vmatpush3.bf16.msra.mxu0 %v7451_v41  ;;  %v5505_v41 = vld [vmem:[%s9643_s3 + $0x200] sm:$0xff] }
  0x3d   :  { %7456 = vmatprep.subr.bf16.mxu0 %v7455_v48  ;;  %v7571_v44 = vpack.c.bf16 %v5506_v42, %v5505_v41  ;;  %v5458_v41 = vld [vmem:[%s9643_s3 + $0x108] sm:$0xff]  ;;  %v5529_v42 = vld [vmem:[%s9643_s3 + $0x280] sm:$0xff] }
  0x40   :  { %7458 = vmatpush3.bf16.msra.mxu0 %v7455_v48  ;;  %v5508_v48 = vld [vmem:[%s9643_s3 + $0x218] sm:$0xff] }
  0x41   :  { %7460 = vmatprep.subr.bf16.mxu0 %v7459_v54  ;;  %v7575_v53 = vpack.c.bf16 %v5508_v48, %v5507_v47  ;;  %v5531_v47 = vld [vmem:[%s9643_s3 + $0x290] sm:$0xff]  ;;  %v5532_v48 = vld [vmem:[%s9643_s3 + $0x298] sm:$0xff] }
 0x106   :  { %v6421_v58 = vpop.f32.mrb[0].mxu0 }
 0x107   :  { %v165_v60 = vadd.f32 %v6421_v58, %v5411_v57  ;;  %v159_v61 = vpop.f32.mrb[1].mxu0 }
 0x108   :  { %v160_v62 = vadd.f32 %v5411_v57, %v159_v61 }
 0x109   :  { %vm180_vm2 = vcmp.gt.f32.partialorder %v165_v60, 0.0  ;;  %v188_v63 = vmul.f32 %v5416_v59, %v165_v60 }
 0x10a   :  { %vm179_vm3 = vcmp.gt.f32.partialorder %v160_v62, 0.0  ;;  %v187_v0 = vmul.f32 %v5416_v59, %v160_v62  ;;  %v6424_v1 = vpop.f32.mrb[2].mxu0 }
 0x10b   :  { %v192_v2 = vsel %vm180_vm2, %v165_v60, %v188_v63  ;;  %v175_v3 = vadd.f32 %v6424_v1, %v5411_v57  ;;  %v169_v4 = vpop.f32.mrb[3].mxu0 }
 0x10c   :  { %196 = vst.msk [vmem:[#allocation2 + $0x10] sm:$0xff] %vm49_vm1, %v192_v2  ;;  %v191_v5 = vsel %vm179_vm3, %v160_v62, %v187_v0  ;;  %v170_v6 = vadd.f32 %v5411_v57, %v169_v4  ;;  %v5510_v57 = vld [vmem:[%s9643_s3 + $0x228] sm:$0xff]  ;;  %v5440_v0 = vld [vmem:[%s9643_s3 + $0xb8] sm:$0xff]  ;;  %v5511_v2 = vld [vmem:[%s9643_s3 + $0x230] sm:$0xff] }
 0x10d   :  { %195 = vst.msk [vmem:[#allocation2 + $0x8] sm:$0xff] %vm49_vm1, %v191_v5  ;;  %vm182_vm4 = vcmp.gt.f32.partialorder %v175_v3, 0.0  ;;  %v190_v7 = vmul.f32 %v5416_v59, %v175_v3 }
 0x10e   :  { %vm181_vm5 = vcmp.gt.f32.partialorder %v170_v6, 0.0  ;;  %v189_v8 = vmul.f32 %v5416_v59, %v170_v6  ;;  %v5439_v59 = vld [vmem:[%s9643_s3 + $0xb0] sm:$0xff] }
 0x10f   :  { %v194_v9 = vsel %vm182_vm4, %v175_v3, %v190_v7  ;;  %v5512_v3 = vld [vmem:[%s9643_s3 + $0x238] sm:$0xff]  ;;  %v7487_v4 = vpack.c.bf16 %v5440_v0, %v5439_v59  ;;  %v5446_v7 = vld [vmem:[%s9643_s3 + $0xc8] sm:$0xff]  ;;  %v5535_v0 = vld [vmem:[%s9643_s3 + $0x2b0] sm:$0xff] }
 0x110   :  { %198 = vst.msk [vmem:[#allocation2 + $0x30] sm:$0xff] %vm49_vm1, %v194_v9  ;;  %v193_v10 = vsel %vm181_vm5, %v170_v6, %v189_v8  ;;  %v7583_v5 = vpack.c.bf16 %v5512_v3, %v5511_v2  ;;  %v5445_v6 = vld [vmem:[%s9643_s3 + $0xc0] sm:$0xff]  ;;  %v5518_v9 = vld [vmem:[%s9643_s3 + $0x248] sm:$0xff] }
 0x111   :  { %197 = vst.msk [vmem:[#allocation2 + $0x28] sm:$0xff] %vm49_vm1, %v193_v10  ;;  %v5517_v8 = vld [vmem:[%s9643_s3 + $0x240] sm:$0xff]  ;;  %v7491_v10 = vpack.c.bf16 %v5446_v7, %v5445_v6  ;;  %v5542_v7 = vld [vmem:[%s9643_s3 + $0x2c8] sm:$0xff] }
 0x112   :  { %v7587_v11 = vpack.c.bf16 %v5518_v9, %v5517_v8  ;;  %v5541_v6 = vld [vmem:[%s9643_s3 + $0x2c0] sm:$0xff] }
 0x113   :  { %v989_v51 = vld [vmem:[#allocation2 + $0x10] sm:$0xff]  ;;  %v7619_v9 = vpack.c.bf16 %v5542_v7, %v5541_v6  ;;  %v5580_v7 = vld [vmem:[%s9643_s3 + $0x398] sm:$0xff] }
 0x114   :  { %v211_v15 = vld [vmem:[#allocation2 + $0x2] sm:$0xff]  ;;  %v8601_v17 = vld [vmem:[#allocation2 + $0xa] sm:$0xff] }
 0x115   :  { %v874_v16 = vld [vmem:[#allocation2 + $0x7] sm:$0xff]  ;;  %6441 = vmatprep.mubr.msk.f32.mxu0 %vm49_vm1, %v211_v15  ;;  %v8605_v20 = vld [vmem:[#allocation2 + $0xf] sm:$0xff]  ;;  %v5520_v15 = vld [vmem:[%s9643_s3 + $0x258] sm:$0xff] }
 0x116   :  { %6573 = vmatprep.mubr.msk.f32.mxu1 %vm49_vm1, %v874_v16  ;;  %6442 = vmatmul.mubr.msk.f32.vlgmr.msra.gmra.mrb[4].mxu0 %vm49_vm1, %v8601_v17  ;;  %v199_v35 = vld [vmem:[#allocation2 + $0x1] sm:$0xff]  ;;  %v200_v50 = vld [vmem:[#allocation2 + $0x9] sm:$0xff]  ;;  %v1103_v21 = vld [vmem:[#allocation2 + $0x11] sm:$0xff]  ;;  %v7591_v23 = vpack.c.bf16 %v5520_v15, %v5519_v14 }
 0x117   :  { %6574 = vmatmul.mubr.msk.f32.vlgmr.msra.gmra.mrb[0].mxu1 %vm49_vm1, %v8605_v20  ;;  %7462 = vmatpush3.bf16.msra.mxu0 %v7459_v54  ;;  %v988_v36 = vld [vmem:[#allocation2 + $0x8] sm:$0xff]  ;;  %v991_v61 = vld [vmem:[#allocation2 + $0x30] sm:$0xff] }
 0x118   :  { %7558 = vmatpush3.bf16.msra.mxu1 %v7555_v56  ;;  %v213_v27 = vld [vmem:[#allocation2 + $0x22] sm:$0xff]  ;;  %7464 = vmatprep.subr.bf16.mxu0 %v7463_v18  ;;  %v8629_v29 = vld [vmem:[#allocation2 + $0x2a] sm:$0xff] }
 0x119   :  { %v876_v28 = vld [vmem:[#allocation2 + $0x27] sm:$0xff]  ;;  %7560 = vmatprep.subr.bf16.mxu1 %v7559_v19  ;;  %6444 = vmatprep.mubr.msk.f32.mxu0 %vm49_vm1, %v213_v27  ;;  %v8633_v30 = vld [vmem:[#allocation2 + $0x2f] sm:$0xff] }
 0x11a   :  { %6576 = vmatprep.mubr.msk.f32.mxu1 %vm49_vm1, %v876_v28  ;;  %6445 = vmatmul.mubr.msk.f32.gmra.mrb[6].mxu0 %vm49_vm1, %v8629_v29  ;;  %v5438_v54 = vld [vmem:[%s9643_s3 + $0xa8] sm:$0xff]  ;;  %v5509_v56 = vld [vmem:[%s9643_s3 + $0x220] sm:$0xff]  ;;  %v5579_v6 = vld [vmem:[%s9643_s3 + $0x390] sm:$0xff] }
 0x11b   :  { %6577 = vmatmul.mubr.msk.f32.gmra.mrb[2].mxu1 %vm49_vm1, %v8633_v30  ;;  %7466 = vmatpush3.bf16.msra.mxu0 %v7463_v18  ;;  %v201_v55 = vld [vmem:[#allocation2 + $0x21] sm:$0xff]  ;;  %v202_v60 = vld [vmem:[#allocation2 + $0x29] sm:$0xff]  ;;  %v7483_v62 = vpack.c.bf16 %v5438_v54, %v5437_v49  ;;  %v7579_v63 = vpack.c.bf16 %v5510_v57, %v5509_v56  ;;  %v7495_v18 = vpack.c.bf16 %v5448_v13, %v5447_v12  ;;  %v5544_v13 = vld [vmem:[%s9643_s3 + $0x2d8] sm:$0xff] }
 0x11c   :  { %7562 = vmatpush3.bf16.msra.mxu1 %v7559_v19  ;;  %6463 = vmatprep.mubr.msk.f32.mxu0 %vm49_vm1, %v199_v35  ;;  %v990_v58 = vld [vmem:[#allocation2 + $0x28] sm:$0xff]  ;;  %v5449_v19 = vld [vmem:[%s9643_s3 + $0xe0] sm:$0xff]  ;;  %v5452_v35 = vld [vmem:[%s9643_s3 + $0xf8] sm:$0xff]  ;;  %v7607_v54 = vpack.c.bf16 %v5532_v48, %v5531_v47 }
 0x11d   :  { %6595 = vmatprep.mubr.msk.f32.mxu1 %vm49_vm1, %v988_v36  ;;  %7468 = vmatprep.subr.bf16.mxu0 %v7467_v31  ;;  %v418_v1 = vld [vmem:[#allocation2 + $0x3] sm:$0xff]  ;;  %v8727_v16 = vld [vmem:[#allocation2 + $0xb] sm:$0xff]  ;;  %v7499_v28 = vpack.c.bf16 %v5450_v24, %v5449_v19 }
 0x11e   :  { %7564 = vmatprep.subr.bf16.mxu1 %v7563_v32  ;;  %v420_v22 = vld [vmem:[#allocation2 + $0x23] sm:$0xff]  ;;  %v8746_v27 = vld [vmem:[#allocation2 + $0x2b] sm:$0xff] }
 0x11f   :  { %7470 = vmatpush3.bf16.msra.mxu0 %v7467_v31  ;;  %v5451_v31 = vld [vmem:[%s9643_s3 + $0xf0] sm:$0xff]  ;;  %v532_v33 = vld [vmem:[#allocation2 + $0x4] sm:$0xff] }
 0x120   :  { %7566 = vmatpush3.bf16.msra.mxu1 %v7563_v32  ;;  %7472 = vmatprep.subr.bf16.mxu0 %v7471_v37  ;;  %v1105_v32 = vld [vmem:[#allocation2 + $0x31] sm:$0xff]  ;;  %v5533_v56 = vld [vmem:[%s9643_s3 + $0x2a0] sm:$0xff]  ;;  %v5534_v57 = vld [vmem:[%s9643_s3 + $0x2a8] sm:$0xff] }
 0x121   :  { %7568 = vmatprep.subr.bf16.mxu1 %v7567_v38  ;;  %v5523_v36 = vld [vmem:[%s9643_s3 + $0x270] sm:$0xff]  ;;  %v648_v19 = vld [vmem:[#allocation2 + $0x25] sm:$0xff] }
 0x122   :  { %v8790_v49 = vld [vmem:[#allocation2 + $0xc] sm:$0xff] }
 0x123   :  { %7474 = vmatpush3.bf16.msra.mxu0 %v7471_v37  ;;  %v5524_v37 = vld [vmem:[%s9643_s3 + $0x278] sm:$0xff]  ;;  %v5543_v12 = vld [vmem:[%s9643_s3 + $0x2d0] sm:$0xff]  ;;  %v5546_v24 = vld [vmem:[%s9643_s3 + $0x2e8] sm:$0xff] }
 0x124   :  { %7570 = vmatpush3.bf16.msra.mxu1 %v7567_v38  ;;  %7476 = vmatprep.subr.bf16.mxu0 %v7475_v43  ;;  %v7503_v38 = vpack.c.bf16 %v5452_v35, %v5451_v31  ;;  %v7599_v39 = vpack.c.bf16 %v5524_v37, %v5523_v36  ;;  %v8854_v14 = vld [vmem:[#allocation2 + $0xd] sm:$0xff]  ;;  %v5548_v35 = vld [vmem:[%s9643_s3 + $0x2f8] sm:$0xff] }
 0x125   :  { %7572 = vmatprep.subr.bf16.mxu1 %v7571_v44  ;;  %v8874_v25 = vld [vmem:[#allocation2 + $0x2d] sm:$0xff] }
 0x126   :  { %6464 = vmatmul.mubr.msk.f32.vlgmr.msra.gmra.mrb[4].mxu0 %vm49_vm1, %v200_v50  ;;  %v1333_v31 = vld [vmem:[#allocation2 + $0x33] sm:$0xff]  ;;  %v5558_v47 = vld [vmem:[%s9643_s3 + $0x328] sm:$0xff] }
 0x127   :  { %6596 = vmatmul.mubr.msk.f32.vlgmr.msra.gmra.mrb[0].mxu1 %vm49_vm1, %v989_v51  ;;  %6466 = vmatprep.mubr.msk.f32.mxu0 %vm49_vm1, %v201_v55  ;;  %v5461_v51 = vld [vmem:[%s9643_s3 + $0x120] sm:$0xff]  ;;  %v5462_v55 = vld [vmem:[%s9643_s3 + $0x128] sm:$0xff] }
 0x128   :  { %7478 = vmatpush3.bf16.msra.mxu0 %v7475_v43  ;;  %6598 = vmatprep.mubr.msk.f32.mxu1 %vm49_vm1, %v990_v58  ;;  %v7507_v43 = vpack.c.bf16 %v5458_v41, %v5457_v40  ;;  %v8810_v58 = vld [vmem:[#allocation2 + $0x2c] sm:$0xff]  ;;  %v7515_v59 = vpack.c.bf16 %v5462_v55, %v5461_v51 }
 0x129   :  { %7574 = vmatpush3.bf16.msra.mxu1 %v7571_v44  ;;  %7480 = vmatprep.subr.bf16.mxu0 %v7479_v52  ;;  %v5555_v41 = vld [vmem:[%s9643_s3 + $0x310] sm:$0xff]  ;;  %v5566_v55 = vld [vmem:[%s9643_s3 + $0x348] sm:$0xff] }
 0x12a   :  { %7576 = vmatprep.subr.bf16.mxu1 %v7575_v53  ;;  %6467 = vmatmul.mubr.msk.f32.gmra.mrb[6].mxu0 %vm49_vm1, %v202_v60  ;;  %v763_v48 = vld [vmem:[#allocation2 + $0x2e] sm:$0xff] }
 0x12b   :  { %6599 = vmatmul.mubr.msk.f32.gmra.mrb[2].mxu1 %vm49_vm1, %v991_v61  ;;  %6485 = vmatprep.mubr.msk.f32.mxu0 %vm49_vm1, %v418_v1  ;;  %v1219_v61 = vld [vmem:[#allocation2 + $0x32] sm:$0xff] }
 0x12c   :  { %7482 = vmatpush3.bf16.msra.mxu0 %v7479_v52  ;;  %6617 = vmatprep.mubr.msk.f32.mxu1 %vm49_vm1, %v200_v50  ;;  %v7511_v50 = vpack.c.bf16 %v5460_v46, %v5459_v45  ;;  %v1217_v52 = vld [vmem:[#allocation2 + $0x12] sm:$0xff]  ;;  %v762_v46 = vld [vmem:[#allocation2 + $0x26] sm:$0xff] }
 0x12d   :  { %7578 = vmatpush3.bf16.msra.mxu1 %v7575_v53  ;;  %7484 = vmatprep.subr.bf16.mxu0 %v7483_v62  ;;  %v534_v53 = vld [vmem:[#allocation2 + $0x24] sm:$0xff]  ;;  %v5536_v1 = vld [vmem:[%s9643_s3 + $0x2b8] sm:$0xff]  ;;  %v5559_v51 = vld [vmem:[%s9643_s3 + $0x330] sm:$0xff] }
 0x12e   :  { %7580 = vmatprep.subr.bf16.mxu1 %v7579_v63  ;;  %v7615_v3 = vpack.c.bf16 %v5536_v1, %v5535_v0  ;;  %v1445_v45 = vld [vmem:[#allocation2 + $0x14] sm:$0xff] }
 0x12f   :  { %v5571_v0 = vld [vmem:[%s9643_s3 + $0x370] sm:$0xff]  ;;  %v5572_v1 = vld [vmem:[%s9643_s3 + $0x378] sm:$0xff] }
 0x130   :  { %7486 = vmatpush3.bf16.msra.mxu0 %v7483_v62  ;;  %v646_v62 = vld [vmem:[#allocation2 + $0x5] sm:$0xff] }
 0x131   :  { %7582 = vmatpush3.bf16.msra.mxu1 %v7579_v63  ;;  %7488 = vmatprep.subr.bf16.mxu0 %v7487_v4  ;;  %v7611_v63 = vpack.c.bf16 %v5534_v57, %v5533_v56  ;;  %v5567_v57 = vld [vmem:[%s9643_s3 + $0x350] sm:$0xff] }
 0x132   :  { %7584 = vmatprep.subr.bf16.mxu1 %v7583_v5 }
 0x134   :  { %7490 = vmatpush3.bf16.msra.mxu0 %v7487_v4  ;;  %v5469_v4 = vld [vmem:[%s9643_s3 + $0x140] sm:$0xff] }
 0x135   :  { %7586 = vmatpush3.bf16.msra.mxu1 %v7583_v5  ;;  %7492 = vmatprep.subr.bf16.mxu0 %v7491_v10  ;;  %v5470_v5 = vld [vmem:[%s9643_s3 + $0x148] sm:$0xff] }
 0x136   :  { %7588 = vmatprep.subr.bf16.mxu1 %v7587_v11  ;;  %v7523_v8 = vpack.c.bf16 %v5470_v5, %v5469_v4  ;;  %v5578_v4 = vld [vmem:[%s9643_s3 + $0x388] sm:$0xff] }
 0x137   :  { %6486 = vmatmul.mubr.msk.f32.vlgmr.msra.gmra.mrb[4].mxu0 %vm49_vm1, %v8727_v16 }
 0x138   :  { %6618 = vmatmul.mubr.msk.f32.vlgmr.msra.gmra.mrb[0].mxu1 %vm49_vm1, %v1103_v21  ;;  %6488 = vmatprep.mubr.msk.f32.mxu0 %vm49_vm1, %v420_v22  ;;  %v7623_v21 = vpack.c.bf16 %v5544_v13, %v5543_v12  ;;  %v5474_v22 = vld [vmem:[%s9643_s3 + $0x168] sm:$0xff]  ;;  %v1675_v13 = vld [vmem:[#allocation2 + $0x36] sm:$0xff] }
 0x139   :  { %7494 = vmatpush3.bf16.msra.mxu0 %v7491_v10  ;;  %6620 = vmatprep.mubr.msk.f32.mxu1 %vm49_vm1, %v202_v60  ;;  %v5463_v60 = vld [vmem:[%s9643_s3 + $0x130] sm:$0xff] }
 0x13a   :  { %7590 = vmatpush3.bf16.msra.mxu1 %v7587_v11  ;;  %7496 = vmatprep.subr.bf16.mxu0 %v7495_v18  ;;  %v5471_v10 = vld [vmem:[%s9643_s3 + $0x150] sm:$0xff]  ;;  %v5472_v11 = vld [vmem:[%s9643_s3 + $0x158] sm:$0xff] }
 0x13b   :  { %6489 = vmatmul.mubr.msk.f32.gmra.mrb[6].mxu0 %vm49_vm1, %v8746_v27  ;;  %7592 = vmatprep.subr.bf16.mxu1 %v7591_v23  ;;  %v7527_v15 = vpack.c.bf16 %v5472_v11, %v5471_v10  ;;  %v5581_v10 = vld [vmem:[%s9643_s3 + $0x3a0] sm:$0xff]  ;;  %v5582_v11 = vld [vmem:[%s9643_s3 + $0x3a8] sm:$0xff] }
 0x13c   :  { %6621 = vmatmul.mubr.msk.f32.gmra.mrb[2].mxu1 %vm49_vm1, %v1105_v32  ;;  %6507 = vmatprep.mubr.msk.f32.mxu0 %vm49_vm1, %v532_v33  ;;  %v760_v32 = vld [vmem:[#allocation2 + $0x6] sm:$0xff]  ;;  %v7675_v12 = vpack.c.bf16 %v5582_v11, %v5581_v10 }
 0x13d   :  { %7498 = vmatpush3.bf16.msra.mxu0 %v7495_v18  ;;  %6639 = vmatprep.mubr.msk.f32.mxu1 %vm49_vm1, %v8601_v17  ;;  %v5530_v17 = vld [vmem:[%s9643_s3 + $0x288] sm:$0xff]  ;;  %v1331_v18 = vld [vmem:[#allocation2 + $0x13] sm:$0xff]  ;;  %v2156_v10 = vld [vmem:[#allocation3 + $0x80] sm:$0xff] }
 0x13e   :  { %7594 = vmatpush3.bf16.msra.mxu1 %v7591_v23  ;;  %7500 = vmatprep.subr.bf16.mxu0 %v7499_v28  ;;  %v7603_v44 = vpack.c.bf16 %v5530_v17, %v5529_v42  ;;  %v5545_v23 = vld [vmem:[%s9643_s3 + $0x2e0] sm:$0xff]  ;;  %v5556_v42 = vld [vmem:[%s9643_s3 + $0x318] sm:$0xff]  ;;  %v761_v17 = vld [vmem:[#allocation2 + $0xe] sm:$0xff] }
 0x13f   :  { %7596 = vmatprep.subr.bf16.mxu1 %v7595_v34  ;;  %v7627_v33 = vpack.c.bf16 %v5546_v24, %v5545_v23  ;;  %v1952_v24 = vld [vmem:[#allocation3 + $0x58] sm:$0xff]  ;;  %v2157_v11 = vld [vmem:[#allocation3 + $0x88] sm:$0xff] }
 0x141   :  { %7502 = vmatpush3.bf16.msra.mxu0 %v7499_v28  ;;  %v5475_v28 = vld [vmem:[%s9643_s3 + $0x170] sm:$0xff] }
 0x142   :  { %7598 = vmatpush3.bf16.msra.mxu1 %v7595_v34  ;;  %7504 = vmatprep.subr.bf16.mxu0 %v7503_v38  ;;  %v5547_v34 = vld [vmem:[%s9643_s3 + $0x2f0] sm:$0xff] }
 0x143   :  { %7600 = vmatprep.subr.bf16.mxu1 %v7599_v39  ;;  %v7631_v37 = vpack.c.bf16 %v5548_v35, %v5547_v34  ;;  %v1937_v34 = vld [vmem:[#allocation3 + $0x8] sm:$0xff] }
 0x145   :  { %7506 = vmatpush3.bf16.msra.mxu0 %v7503_v38  ;;  %v5553_v38 = vld [vmem:[%s9643_s3 + $0x300] sm:$0xff] }
 0x146   :  { %7602 = vmatpush3.bf16.msra.mxu1 %v7599_v39  ;;  %7508 = vmatprep.subr.bf16.mxu0 %v7507_v43  ;;  %v5554_v39 = vld [vmem:[%s9643_s3 + $0x308] sm:$0xff] }
 0x147   :  { %7604 = vmatprep.subr.bf16.mxu1 %v7603_v44  ;;  %v7635_v40 = vpack.c.bf16 %v5554_v39, %v5553_v38 }
 0x148   :  { %6508 = vmatmul.mubr.msk.f32.vlgmr.msra.gmra.mrb[4].mxu0 %vm49_vm1, %v8790_v49 }
 0x149   :  { %6640 = vmatmul.mubr.msk.f32.vlgmr.msra.gmra.mrb[0].mxu1 %vm49_vm1, %v1217_v52  ;;  %6510 = vmatprep.mubr.msk.f32.mxu0 %vm49_vm1, %v534_v53  ;;  %v5560_v52 = vld [vmem:[%s9643_s3 + $0x338] sm:$0xff] }
 0x14a   :  { %7510 = vmatpush3.bf16.msra.mxu0 %v7507_v43  ;;  %6642 = vmatprep.mubr.msk.f32.mxu1 %vm49_vm1, %v8629_v29  ;;  %v5464_v29 = vld [vmem:[%s9643_s3 + $0x138] sm:$0xff]  ;;  %v7639_v43 = vpack.c.bf16 %v5556_v42, %v5555_v41  ;;  %v7647_v53 = vpack.c.bf16 %v5560_v52, %v5559_v51  ;;  %v5589_v41 = vld [vmem:[%s9644_s4] ss:$0 sm:$0xff] }
 0x14b   :  { %7606 = vmatpush3.bf16.msra.mxu1 %v7603_v44  ;;  %7512 = vmatprep.subr.bf16.mxu0 %v7511_v50  ;;  %v7519_v2 = vpack.c.bf16 %v5464_v29, %v5463_v60  ;;  %v5557_v44 = vld [vmem:[%s9643_s3 + $0x320] sm:$0xff]  ;;  %v1559_v60 = vld [vmem:[#allocation2 + $0x15] sm:$0xff] }
 0x14c   :  { %6511 = vmatmul.mubr.msk.f32.gmra.mrb[6].mxu0 %vm49_vm1, %v8810_v58  ;;  %7608 = vmatprep.subr.bf16.mxu1 %v7607_v54  ;;  %v1561_v29 = vld [vmem:[#allocation2 + $0x35] sm:$0xff] }
 0x14d   :  { %6643 = vmatmul.mubr.msk.f32.gmra.mrb[2].mxu1 %vm49_vm1, %v1219_v61  ;;  %6529 = vmatprep.mubr.msk.f32.mxu0 %vm49_vm1, %v646_v62  ;;  %v5569_v61 = vld [vmem:[%s9643_s3 + $0x360] sm:$0xff]  ;;  %v5570_v62 = vld [vmem:[%s9643_s3 + $0x368] sm:$0xff] }
 0x14e   :  { %7514 = vmatpush3.bf16.msra.mxu0 %v7511_v50  ;;  %6661 = vmatprep.mubr.msk.f32.mxu1 %vm49_vm1, %v8727_v16  ;;  %v5473_v16 = vld [vmem:[%s9643_s3 + $0x160] sm:$0xff]  ;;  %v1447_v50 = vld [vmem:[#allocation2 + $0x34] sm:$0xff] }
 0x14f   :  { %7610 = vmatpush3.bf16.msra.mxu1 %v7607_v54  ;;  %7516 = vmatprep.subr.bf16.mxu0 %v7515_v59  ;;  %v7531_v26 = vpack.c.bf16 %v5474_v22, %v5473_v16  ;;  %v5565_v54 = vld [vmem:[%s9643_s3 + $0x340] sm:$0xff]  ;;  %v1950_v22 = vld [vmem:[#allocation3 + $0x48] sm:$0xff] }
 0x150   :  { %7612 = vmatprep.subr.bf16.mxu1 %v7611_v63  ;;  %v7651_v56 = vpack.c.bf16 %v5566_v55, %v5565_v54 }
 0x152   :  { %7518 = vmatpush3.bf16.msra.mxu0 %v7515_v59 }
 0x153   :  { %7614 = vmatpush3.bf16.msra.mxu1 %v7611_v63  ;;  %7520 = vmatprep.subr.bf16.mxu0 %v7519_v2  ;;  %v7659_v63 = vpack.c.bf16 %v5570_v62, %v5569_v61  ;;  %v1938_v61 = vld [vmem:[#allocation3 + $0x10] sm:$0xff]  ;;  %v1939_v62 = vld [vmem:[#allocation3 + $0x18] sm:$0xff] }
 0x154   :  { %7616 = vmatprep.subr.bf16.mxu1 %v7615_v3 }
 0x156   :  { %7522 = vmatpush3.bf16.msra.mxu0 %v7519_v2  ;;  %v7663_v2 = vpack.c.bf16 %v5572_v1, %v5571_v0  ;;  %v7703_v0 = vpack.c.bf16 %v1939_v62, %v1938_v61  ;;  %v1940_v1 = vld [vmem:[#allocation3 + $0x20] sm:$0xff]  ;;  %v2500_v62 = vld [vmem:[#allocation3 + $0x150] sm:$0xff] }
 0x157   :  { %7618 = vmatpush3.bf16.msra.mxu1 %v7615_v3  ;;  %7524 = vmatprep.subr.bf16.mxu0 %v7523_v8  ;;  %v5577_v3 = vld [vmem:[%s9643_s3 + $0x380] sm:$0xff] }
 0x158   :  { %7620 = vmatprep.subr.bf16.mxu1 %v7619_v9  ;;  %v7667_v5 = vpack.c.bf16 %v5578_v4, %v5577_v3 }
 0x159   :  { %6530 = vmatmul.mubr.msk.f32.vlgmr.msra.gmra.mrb[4].mxu0 %vm49_vm1, %v8854_v14 }
 0x15a   :  { %6662 = vmatmul.mubr.msk.f32.vlgmr.msra.gmra.mrb[0].mxu1 %vm49_vm1, %v1331_v18  ;;  %6532 = vmatprep.mubr.msk.f32.mxu0 %vm49_vm1, %v648_v19  ;;  %v1787_v18 = vld [vmem:[#allocation2 + $0x17] sm:$0xff] }
 0x15b   :  { %7526 = vmatpush3.bf16.msra.mxu0 %v7523_v8  ;;  %6664 = vmatprep.mubr.msk.f32.mxu1 %vm49_vm1, %v8746_v27  ;;  %v5476_v27 = vld [vmem:[%s9643_s3 + $0x178] sm:$0xff]  ;;  %v7671_v8 = vpack.c.bf16 %v5580_v7, %v5579_v6  ;;  %v1942_v6 = vld [vmem:[#allocation3 + $0x30] sm:$0xff] }
 0x15c   :  { %7622 = vmatpush3.bf16.msra.mxu1 %v7619_v9  ;;  %7528 = vmatprep.subr.bf16.mxu0 %v7527_v15  ;;  %v7535_v36 = vpack.c.bf16 %v5476_v27, %v5475_v28  ;;  %v1673_v9 = vld [vmem:[#allocation2 + $0x16] sm:$0xff]  ;;  %v1954_v28 = vld [vmem:[#allocation3 + $0x68] sm:$0xff]  ;;  %v1936_v27 = vld [vmem:[#allocation3] sm:$0xff] }
 0x15d   :  { %6533 = vmatmul.mubr.msk.f32.gmra.mrb[6].mxu0 %vm49_vm1, %v8874_v25  ;;  %7624 = vmatprep.subr.bf16.mxu1 %v7623_v21  ;;  %v1789_v19 = vld [vmem:[#allocation2 + $0x37] sm:$0xff]  ;;  %v7699_v35 = vpack.c.bf16 %v1937_v34, %v1936_v27 }
 0x15e   :  { %6665 = vmatmul.mubr.msk.f32.gmra.mrb[2].mxu1 %vm49_vm1, %v1333_v31  ;;  %6551 = vmatprep.mubr.msk.f32.mxu0 %vm49_vm1, %v760_v32  ;;  %v1955_v32 = vld [vmem:[#allocation3 + $0x70] sm:$0xff]  ;;  %v1943_v7 = vld [vmem:[#allocation3 + $0x38] sm:$0xff] }
 0x15f   :  { %7530 = vmatpush3.bf16.msra.mxu0 %v7527_v15  ;;  %6683 = vmatprep.mubr.msk.f32.mxu1 %vm49_vm1, %v8790_v49  ;;  %v7643_v49 = vpack.c.bf16 %v5558_v47, %v5557_v44  ;;  %v5584_v15 = vld [vmem:[%s9643_s3 + $0x3b8] sm:$0xff] }
 0x160   :  { %7626 = vmatpush3.bf16.msra.mxu1 %v7623_v21  ;;  %7532 = vmatprep.subr.bf16.mxu0 %v7531_v26  ;;  %v1949_v21 = vld [vmem:[#allocation3 + $0x40] sm:$0xff] }
 0x161   :  { %7628 = vmatprep.subr.bf16.mxu1 %v7627_v33  ;;  %v7683_v23 = vpack.c.bf16 %v1950_v22, %v1949_v21 }
 0x163   :  { %7534 = vmatpush3.bf16.msra.mxu0 %v7531_v26  ;;  %v1953_v26 = vld [vmem:[#allocation3 + $0x60] sm:$0xff] }
 0x164   :  { %7630 = vmatpush3.bf16.msra.mxu1 %v7627_v33  ;;  %7536 = vmatprep.subr.bf16.mxu0 %v7535_v36  ;;  %v7691_v31 = vpack.c.bf16 %v1954_v28, %v1953_v26  ;;  %v1956_v33 = vld [vmem:[#allocation3 + $0x78] sm:$0xff]  ;;  %v2270_v28 = vld [vmem:[#allocation3 + $0xc0] sm:$0xff] }
 0x165   :  { %7632 = vmatprep.subr.bf16.mxu1 %v7631_v37 }
 0x167   :  { %7538 = vmatpush3.bf16.msra.mxu0 %v7535_v36 }
 0x168   :  { %7634 = vmatpush3.bf16.msra.mxu1 %v7631_v37  ;;  %7684 = vmatprep.subr.bf16.mxu0 %v7683_v23 }
 0x169   :  { %7636 = vmatprep.subr.bf16.mxu1 %v7635_v40 }
 0x16a   :  { %6552 = vmatmul.mubr.msk.f32.vlgmr.msra.gmra.mrb[4].mxu0 %vm49_vm1, %v761_v17 }
 0x16b   :  { %6684 = vmatmul.mubr.msk.f32.vlgmr.msra.gmra.mrb[0].mxu1 %vm49_vm1, %v1445_v45  ;;  %6554 = vmatprep.mubr.msk.f32.mxu0 %vm49_vm1, %v762_v46 }
 0x16c   :  { %6686 = vmatprep.mubr.msk.f32.mxu1 %vm49_vm1, %v8810_v58  ;;  %7638 = vmatpush3.bf16.msra.mxu1 %v7635_v40  ;;  %v5568_v58 = vld [vmem:[%s9643_s3 + $0x358] sm:$0xff] }
 0x16d   :  { %7640 = vmatprep.subr.bf16.mxu1 %v7639_v43  ;;  %v7655_v59 = vpack.c.bf16 %v5568_v58, %v5567_v57  ;;  %7686 = vmatpush3.bf16.msra.mxu0 %v7683_v23 }
 0x16e   :  { %6555 = vmatmul.mubr.msk.f32.gmra.mrb[6].mxu0 %vm49_vm1, %v763_v48 }
 0x16f   :  { %6687 = vmatmul.mubr.msk.f32.gmra.mrb[2].mxu1 %vm49_vm1, %v1447_v50 }
 0x170   :  { %7642 = vmatpush3.bf16.msra.mxu1 %v7639_v43  ;;  %6705 = vmatprep.mubr.msk.f32.mxu1 %vm49_vm1, %v8854_v14  ;;  %v5583_v14 = vld [vmem:[%s9643_s3 + $0x3b0] sm:$0xff]  ;;  %v5590_v43 = vld [vmem:[%s9649_s9 + $0x1] ss:$0 sm:$0xff] }
 0x171   :  { %7644 = vmatprep.subr.bf16.mxu1 %v7643_v49  ;;  %v7679_v16 = vpack.c.bf16 %v5584_v15, %v5583_v14  ;;  %v2159_v14 = vld [vmem:[#allocation3 + $0x98] sm:$0xff] }
 0x174   :  { %7646 = vmatpush3.bf16.msra.mxu1 %v7643_v49 }
 0x175   :  { %7648 = vmatprep.subr.bf16.mxu1 %v7647_v53 }
 0x178   :  { %7650 = vmatpush3.bf16.msra.mxu1 %v7647_v53 }
 0x179   :  { %7652 = vmatprep.subr.bf16.mxu1 %v7651_v56 }
 0x17b   :  { %6706 = vmatmul.mubr.msk.f32.vlgmr.msra.gmra.mrb[0].mxu1 %vm49_vm1, %v1559_v60 }
 0x17c   :  { %6708 = vmatprep.mubr.msk.f32.mxu1 %vm49_vm1, %v8874_v25  ;;  %7654 = vmatpush3.bf16.msra.mxu1 %v7651_v56 }
 0x17d   :  { %7656 = vmatprep.subr.bf16.mxu1 %v7655_v59 }
 0x17f   :  { %6709 = vmatmul.mubr.msk.f32.gmra.mrb[2].mxu1 %vm49_vm1, %v1561_v29 }
 0x180   :  { %7658 = vmatpush3.bf16.msra.mxu1 %v7655_v59  ;;  %6727 = vmatprep.mubr.msk.f32.mxu1 %vm49_vm1, %v761_v17 }
 0x181   :  { %7660 = vmatprep.subr.bf16.mxu1 %v7659_v63 }
 0x184   :  { %7662 = vmatpush3.bf16.msra.mxu1 %v7659_v63 }
 0x185   :  { %7664 = vmatprep.subr.bf16.mxu1 %v7663_v2 }
 0x188   :  { %7666 = vmatpush3.bf16.msra.mxu1 %v7663_v2  ;;  %v1941_v2 = vld [vmem:[#allocation3 + $0x28] sm:$0xff] }
 0x189   :  { %7668 = vmatprep.subr.bf16.mxu1 %v7667_v5 }
 0x18b   :  { %6728 = vmatmul.mubr.msk.f32.vlgmr.msra.gmra.mrb[0].mxu1 %vm49_vm1, %v1673_v9  ;;  %v7711_v9 = vpack.c.bf16 %v1943_v7, %v1942_v6 }
 0x18c   :  { %6730 = vmatprep.mubr.msk.f32.mxu1 %vm49_vm1, %v763_v48  ;;  %7670 = vmatpush3.bf16.msra.mxu1 %v7667_v5  ;;  %v7707_v5 = vpack.c.bf16 %v1941_v2, %v1940_v1  ;;  %v2502_v2 = vld [vmem:[#allocation3 + $0x160] sm:$0xff] }
 0x18d   :  { %7672 = vmatprep.subr.bf16.mxu1 %v7671_v8 }
 0x18f   :  { %6731 = vmatmul.mubr.msk.f32.gmra.mrb[2].mxu1 %vm49_vm1, %v1675_v13  ;;  %v2158_v13 = vld [vmem:[#allocation3 + $0x90] sm:$0xff] }
 0x190   :  { %7674 = vmatpush3.bf16.msra.mxu1 %v7671_v8  ;;  %6749 = vmatprep.mubr.msk.f32.mxu1 %vm49_vm1, %v8605_v20  ;;  %v1951_v20 = vld [vmem:[#allocation3 + $0x50] sm:$0xff]  ;;  %v7719_v15 = vpack.c.bf16 %v2159_v14, %v2158_v13  ;;  %v2613_v13 = vld [vmem:[#allocation3 + $0x188] sm:$0xff] }
 0x191   :  { %7676 = vmatprep.subr.bf16.mxu1 %v7675_v12  ;;  %v7687_v25 = vpack.c.bf16 %v1952_v24, %v1951_v20  ;;  %v2162_v20 = vld [vmem:[#allocation3 + $0xb0] sm:$0xff]  ;;  %v2163_v24 = vld [vmem:[#allocation3 + $0xb8] sm:$0xff] }
 0x192   :  { %v7727_v26 = vpack.c.bf16 %v2163_v24, %v2162_v20  ;;  %v2617_v20 = vld [vmem:[#allocation3 + $0x1a8] sm:$0xff] }
 0x193   :  { %7688 = vmatprep.subr.bf16.mxu0 %v7687_v25 }
 0x194   :  { %7678 = vmatpush3.bf16.msra.mxu1 %v7675_v12  ;;  %7690 = vmatpush3.bf16.msra.mxu0 %v7687_v25  ;;  %v7715_v12 = vpack.c.bf16 %v2157_v11, %v2156_v10 }
 0x195   :  { %7680 = vmatprep.subr.bf16.mxu1 %v7679_v16  ;;  %7692 = vmatprep.subr.bf16.mxu0 %v7691_v31 }
 0x198   :  { %7682 = vmatpush3.bf16.msra.mxu1 %v7679_v16  ;;  %7694 = vmatpush3.bf16.msra.mxu0 %v7691_v31  ;;  %v2271_v31 = vld [vmem:[#allocation3 + $0xc8] sm:$0xff] }
 0x19b   :  { %6750 = vmatmul.mubr.msk.f32.vlgmr.msra.gmra.mrb[0].mxu1 %vm49_vm1, %v1787_v18  ;;  %v2160_v18 = vld [vmem:[#allocation3 + $0xa0] sm:$0xff] }
 0x19c   :  { %6752 = vmatprep.mubr.msk.f32.mxu1 %vm49_vm1, %v8633_v30  ;;  %v7695_v30 = vpack.c.bf16 %v1956_v33, %v1955_v32  ;;  %v7731_v32 = vpack.c.bf16 %v2271_v31, %v2270_v28  ;;  %v2272_v33 = vld [vmem:[#allocation3 + $0xd0] sm:$0xff]  ;;  %v2619_v31 = vld [vmem:[#allocation3 + $0x1b8] sm:$0xff] }
 0x19d   :  { %v2618_v28 = vld [vmem:[#allocation3 + $0x1b0] sm:$0xff] }
 0x19e   :  { %7696 = vmatprep.subr.bf16.mxu0 %v7695_v30 }
 0x19f   :  { %6753 = vmatmul.mubr.msk.f32.gmra.mrb[2].mxu1 %vm49_vm1, %v1789_v19  ;;  %7698 = vmatpush3.bf16.msra.mxu0 %v7695_v30  ;;  %v2161_v19 = vld [vmem:[#allocation3 + $0xa8] sm:$0xff]  ;;  %v2273_v30 = vld [vmem:[#allocation3 + $0xd8] sm:$0xff] }
 0x1a0   :  { %7700 = vmatprep.subr.bf16.mxu0 %v7699_v35  ;;  %v7723_v22 = vpack.c.bf16 %v2161_v19, %v2160_v18  ;;  %v7735_v27 = vpack.c.bf16 %v2273_v30, %v2272_v33  ;;  %v2615_v18 = vld [vmem:[#allocation3 + $0x198] sm:$0xff]  ;;  %v7791_v33 = vpack.c.bf16 %v2619_v31, %v2618_v28  ;;  %v2726_v30 = vld [vmem:[#allocation3 + $0x1c0] sm:$0xff]  ;;  %v3069_v28 = vld [vmem:[#allocation3 + $0x288] sm:$0xff] }
 0x23d   :  { %v6553_v36 = vpop.f32.mrb[4].mxu0 }
 0x23e   :  { %v851_v37 = vpop.f32.mrb[5].mxu0 }
 0x241   :  { %v6556_v38 = vpop.f32.mrb[6].mxu0 }
 0x242   :  { %v861_v39 = vpop.f32.mrb[7].mxu0 }
 0x26e   :  { %v6751_v40 = vpop.f32.mrb[0].mxu1 }
 0x26f   :  { %v8171_v42 = vadd.f32 %v6751_v40, %v6553_v36  ;;  %v1877_v17 = vpop.f32.mrb[1].mxu1  ;;  %v2275_v36 = vld [vmem:[#allocation3 + $0xe8] sm:$0xff]  ;;  %v2276_v40 = vld [vmem:[#allocation3 + $0xf0] sm:$0xff] }
 0x270   :  { %v8172_v44 = vadd.f32 %v1877_v17, %v851_v37 }
 0x271   :  { %v1908_v45 = vadd.f32 %v8171_v42, %v5589_v41 }
 0x272   :  { %v1907_v46 = vadd.f32 %v8172_v44, %v5589_v41  ;;  %v6754_v47 = vpop.f32.mrb[2].mxu1  ;;  %v2385_v44 = vld [vmem:[#allocation3 + $0x108] sm:$0xff] }
 0x273   :  { %vm1913_vm6 = vcmp.gt.f32.partialorder %v1908_v45, 0.0  ;;  %v1921_v48 = vmul.f32 %v5590_v43, %v1908_v45  ;;  %v8173_v49 = vadd.f32 %v6754_v47, %v6556_v38  ;;  %v1887_v50 = vpop.f32.mrb[3].mxu1  ;;  %v2387_v47 = vld [vmem:[#allocation3 + $0x118] sm:$0xff] }
 0x274   :  { %vm1912_vm7 = vcmp.gt.f32.partialorder %v1907_v46, 0.0  ;;  %v1920_v51 = vmul.f32 %v5590_v43, %v1907_v46  ;;  %v8174_v52 = vadd.f32 %v1887_v50, %v861_v39  ;;  %v2388_v50 = vld [vmem:[#allocation3 + $0x120] sm:$0xff] }
 0x275   :  { %v1925_v53 = vsel %vm1913_vm6, %v1908_v45, %v1921_v48  ;;  %v1910_v54 = vadd.f32 %v8173_v49, %v5589_v41 }
 0x276   :  { %1929 = vst.msk [vmem:[#allocation2 + $0x10] sm:$0xff] %vm49_vm1, %v1925_v53  ;;  %v1924_v55 = vsel %vm1912_vm7, %v1907_v46, %v1920_v51  ;;  %v1909_v56 = vadd.f32 %v8174_v52, %v5589_v41  ;;  %v2277_v41 = vld [vmem:[#allocation3 + $0xf8] sm:$0xff]  ;;  %v2386_v46 = vld [vmem:[#allocation3 + $0x110] sm:$0xff]  ;;  %v2389_v51 = vld [vmem:[#allocation3 + $0x128] sm:$0xff] }
 0x277   :  { %1928 = vst.msk [vmem:[#allocation2 + $0x8] sm:$0xff] %vm49_vm1, %v1924_v55  ;;  %vm1915_vm8 = vcmp.gt.f32.partialorder %v1910_v54, 0.0  ;;  %v1923_v57 = vmul.f32 %v5590_v43, %v1910_v54  ;;  %v7743_v17 = vpack.c.bf16 %v2277_v41, %v2276_v40  ;;  %v7751_v48 = vpack.c.bf16 %v2387_v47, %v2386_v46  ;;  %v2390_v55 = vld [vmem:[#allocation3 + $0x130] sm:$0xff]  ;;  %v2730_v41 = vld [vmem:[#allocation3 + $0x1e0] sm:$0xff]  ;;  %v2733_v46 = vld [vmem:[#allocation3 + $0x1f8] sm:$0xff] }
 0x278   :  { %vm1914_vm9 = vcmp.gt.f32.partialorder %v1909_v56, 0.0  ;;  %v1922_v58 = vmul.f32 %v5590_v43, %v1909_v56  ;;  %v2384_v43 = vld [vmem:[#allocation3 + $0x100] sm:$0xff]  ;;  %v7755_v53 = vpack.c.bf16 %v2389_v51, %v2388_v50  ;;  %v5654_v50 = vld [vmem:[%s9647_s7 + $0x48] sm:$0xff] }
 0x279   :  { %v1927_v59 = vsel %vm1915_vm8, %v1910_v54, %v1923_v57  ;;  %v7747_v45 = vpack.c.bf16 %v2385_v44, %v2384_v43 }
 0x27a   :  { %1931 = vst.msk [vmem:[#allocation2 + $0x30] sm:$0xff] %vm49_vm1, %v1927_v59  ;;  %v1926_v60 = vsel %vm1914_vm9, %v1909_v56, %v1922_v58  ;;  %v2391_v56 = vld [vmem:[#allocation3 + $0x138] sm:$0xff]  ;;  %v2498_v59 = vld [vmem:[#allocation3 + $0x140] sm:$0xff] }
 0x27b   :  { %1930 = vst.msk [vmem:[#allocation2 + $0x28] sm:$0xff] %vm49_vm1, %v1926_v60  ;;  %v7759_v58 = vpack.c.bf16 %v2391_v56, %v2390_v55  ;;  %v2499_v60 = vld [vmem:[#allocation3 + $0x148] sm:$0xff] }
 0x27c   :  { %v7763_v61 = vpack.c.bf16 %v2499_v60, %v2498_v59  ;;  %v2841_v55 = vld [vmem:[#allocation3 + $0x208] sm:$0xff] }
 0x27d   :  { %v2722_v60 = vld [vmem:[#allocation2 + $0x10] sm:$0xff] }
 0x27e   :  { %v1944_v63 = vld [vmem:[#allocation2 + $0x2] sm:$0xff]  ;;  %v8999_v29 = vld [vmem:[#allocation2 + $0xa] sm:$0xff] }
 0x27f   :  { %6771 = vmatprep.mubr.msk.f32.mxu0 %vm49_vm1, %v1944_v63  ;;  %v1932_v8 = vld [vmem:[#allocation2 + $0x1] sm:$0xff]  ;;  %v9010_v16 = vld [vmem:[#allocation2 + $0x9] sm:$0xff]  ;;  %v2501_v63 = vld [vmem:[#allocation3 + $0x158] sm:$0xff] }
 0x280   :  { %6772 = vmatmul.mubr.msk.f32.vlgmr.msra.gmra.mrb[8].mxu0 %vm49_vm1, %v8999_v29  ;;  %v2151_v25 = vld [vmem:[#allocation2 + $0x3] sm:$0xff]  ;;  %v9020_v34 = vld [vmem:[#allocation2 + $0xb] sm:$0xff] }
 0x281   :  { %7702 = vmatpush3.bf16.msra.mxu0 %v7699_v35  ;;  %v2274_v35 = vld [vmem:[#allocation3 + $0xe0] sm:$0xff]  ;;  %v9030_v49 = vld [vmem:[#allocation2 + $0xc] sm:$0xff] }
 0x282   :  { %v1946_v3 = vld [vmem:[#allocation2 + $0x22] sm:$0xff]  ;;  %7704 = vmatprep.subr.bf16.mxu0 %v7703_v0  ;;  %v9004_v4 = vld [vmem:[#allocation2 + $0x2a] sm:$0xff]  ;;  %v7739_v38 = vpack.c.bf16 %v2275_v36, %v2274_v35 }
 0x283   :  { %6774 = vmatprep.mubr.msk.f32.mxu0 %vm49_vm1, %v1946_v3  ;;  %v1934_v21 = vld [vmem:[#allocation2 + $0x21] sm:$0xff]  ;;  %v9015_v23 = vld [vmem:[#allocation2 + $0x29] sm:$0xff] }
 0x284   :  { %6775 = vmatmul.mubr.msk.f32.gmra.mrb[10].mxu0 %vm49_vm1, %v9004_v4  ;;  %v2153_v37 = vld [vmem:[#allocation2 + $0x23] sm:$0xff]  ;;  %v9025_v39 = vld [vmem:[#allocation2 + $0x2b] sm:$0xff] }
 0x285   :  { %7706 = vmatpush3.bf16.msra.mxu0 %v7703_v0  ;;  %6793 = vmatprep.mubr.msk.f32.mxu0 %vm49_vm1, %v1932_v8  ;;  %v2265_v42 = vld [vmem:[#allocation2 + $0x4] sm:$0xff]  ;;  %v9035_v54 = vld [vmem:[#allocation2 + $0x2c] sm:$0xff]  ;;  %v7767_v0 = vpack.c.bf16 %v2501_v63, %v2500_v62 }
 0x286   :  { %7708 = vmatprep.subr.bf16.mxu0 %v7707_v5  ;;  %v2267_v52 = vld [vmem:[#allocation2 + $0x24] sm:$0xff]  ;;  %v9040_v1 = vld [vmem:[#allocation2 + $0xd] sm:$0xff] }
 0x287   :  { %v2379_v57 = vld [vmem:[#allocation2 + $0x5] sm:$0xff]  ;;  %v9045_v7 = vld [vmem:[#allocation2 + $0x2d] sm:$0xff] }
 0x288   :  { %v2503_v3 = vld [vmem:[#allocation3 + $0x168] sm:$0xff]  ;;  %v2504_v8 = vld [vmem:[#allocation3 + $0x170] sm:$0xff] }
 0x289   :  { %7710 = vmatpush3.bf16.msra.mxu0 %v7707_v5  ;;  %v2381_v5 = vld [vmem:[#allocation2 + $0x25] sm:$0xff]  ;;  %v7771_v6 = vpack.c.bf16 %v2503_v3, %v2502_v2  ;;  %v2728_v36 = vld [vmem:[#allocation3 + $0x1d0] sm:$0xff] }
 0x28a   :  { %7712 = vmatprep.subr.bf16.mxu0 %v7711_v9  ;;  %v2493_v10 = vld [vmem:[#allocation2 + $0x6] sm:$0xff]  ;;  %v9060_v40 = vld [vmem:[#allocation2 + $0xf] sm:$0xff] }
 0x28b   :  { %v2495_v24 = vld [vmem:[#allocation2 + $0x26] sm:$0xff]  ;;  %v9065_v44 = vld [vmem:[#allocation2 + $0x2f] sm:$0xff] }
 0x28c   :  { %v2721_v47 = vld [vmem:[#allocation2 + $0x8] sm:$0xff]  ;;  %v2724_v2 = vld [vmem:[#allocation2 + $0x30] sm:$0xff] }
 0x28d   :  { %7714 = vmatpush3.bf16.msra.mxu0 %v7711_v9  ;;  %v2505_v9 = vld [vmem:[#allocation3 + $0x178] sm:$0xff]  ;;  %v2845_v62 = vld [vmem:[#allocation3 + $0x228] sm:$0xff]  ;;  %v2846_v3 = vld [vmem:[#allocation3 + $0x230] sm:$0xff] }
 0x28e   :  { %7716 = vmatprep.subr.bf16.mxu0 %v7715_v12  ;;  %v7775_v11 = vpack.c.bf16 %v2505_v9, %v2504_v8  ;;  %v2723_v63 = vld [vmem:[#allocation2 + $0x28] sm:$0xff]  ;;  %v2954_v8 = vld [vmem:[#allocation3 + $0x240] sm:$0xff] }
 0x28f   :  { %v2955_v9 = vld [vmem:[#allocation3 + $0x248] sm:$0xff] }
 0x290   :  { %6794 = vmatmul.mubr.msk.f32.vlgmr.msra.gmra.mrb[8].mxu0 %vm49_vm1, %v9010_v16 }
 0x291   :  { %6796 = vmatprep.mubr.msk.f32.mxu0 %vm49_vm1, %v1934_v21  ;;  %7718 = vmatpush3.bf16.msra.mxu0 %v7715_v12  ;;  %v2612_v12 = vld [vmem:[#allocation3 + $0x180] sm:$0xff]  ;;  %v9050_v21 = vld [vmem:[#allocation2 + $0xe] sm:$0xff] }
 0x292   :  { %7720 = vmatprep.subr.bf16.mxu0 %v7719_v15  ;;  %v7779_v14 = vpack.c.bf16 %v2613_v13, %v2612_v12  ;;  %v2957_v12 = vld [vmem:[#allocation3 + $0x258] sm:$0xff] }
 0x294   :  { %6797 = vmatmul.mubr.msk.f32.gmra.mrb[10].mxu0 %vm49_vm1, %v9015_v23 }
 0x295   :  { %7722 = vmatpush3.bf16.msra.mxu0 %v7719_v15  ;;  %6815 = vmatprep.mubr.msk.f32.mxu0 %vm49_vm1, %v2151_v25  ;;  %v2614_v15 = vld [vmem:[#allocation3 + $0x190] sm:$0xff] }
 0x296   :  { %7724 = vmatprep.subr.bf16.mxu0 %v7723_v22  ;;  %v7783_v19 = vpack.c.bf16 %v2615_v18, %v2614_v15  ;;  %v2958_v15 = vld [vmem:[#allocation3 + $0x260] sm:$0xff]  ;;  %v2959_v18 = vld [vmem:[#allocation3 + $0x268] sm:$0xff] }
 0x299   :  { %7726 = vmatpush3.bf16.msra.mxu0 %v7723_v22  ;;  %v2616_v22 = vld [vmem:[#allocation3 + $0x1a0] sm:$0xff] }
 0x29a   :  { %7728 = vmatprep.subr.bf16.mxu0 %v7727_v26  ;;  %v7787_v25 = vpack.c.bf16 %v2617_v20, %v2616_v22  ;;  %v2960_v22 = vld [vmem:[#allocation3 + $0x270] sm:$0xff]  ;;  %v2961_v20 = vld [vmem:[#allocation3 + $0x278] sm:$0xff] }
 0x29d   :  { %7730 = vmatpush3.bf16.msra.mxu0 %v7727_v26  ;;  %v9055_v26 = vld [vmem:[#allocation2 + $0x2e] sm:$0xff] }
 0x29e   :  { %7732 = vmatprep.subr.bf16.mxu0 %v7731_v32 }
 0x2a0   :  { %6816 = vmatmul.mubr.msk.f32.vlgmr.msra.gmra.mrb[8].mxu0 %vm49_vm1, %v9020_v34 }
 0x2a1   :  { %6818 = vmatprep.mubr.msk.f32.mxu0 %vm49_vm1, %v2153_v37  ;;  %7734 = vmatpush3.bf16.msra.mxu0 %v7731_v32  ;;  %v2607_v32 = vld [vmem:[#allocation2 + $0x7] sm:$0xff]  ;;  %v2729_v37 = vld [vmem:[#allocation3 + $0x1d8] sm:$0xff] }
 0x2a2   :  { %7736 = vmatprep.subr.bf16.mxu0 %v7735_v27 }
 0x2a4   :  { %6819 = vmatmul.mubr.msk.f32.gmra.mrb[10].mxu0 %vm49_vm1, %v9025_v39 }
 0x2a5   :  { %7738 = vmatpush3.bf16.msra.mxu0 %v7735_v27  ;;  %6837 = vmatprep.mubr.msk.f32.mxu0 %vm49_vm1, %v2265_v42  ;;  %v2727_v27 = vld [vmem:[#allocation3 + $0x1c8] sm:$0xff] }
 0x2a6   :  { %7740 = vmatprep.subr.bf16.mxu0 %v7739_v38  ;;  %v7795_v35 = vpack.c.bf16 %v2727_v27, %v2726_v30  ;;  %v2731_v42 = vld [vmem:[#allocation3 + $0x1e8] sm:$0xff]  ;;  %v2950_v30 = vld [vmem:[#allocation2 + $0x12] sm:$0xff]  ;;  %v3072_v27 = vld [vmem:[#allocation3 + $0x2a0] sm:$0xff] }
 0x2a7   :  { %v7803_v43 = vpack.c.bf16 %v2731_v42, %v2730_v41  ;;  %v3182_v42 = vld [vmem:[#allocation3 + $0x2c0] sm:$0xff] }
 0x2a9   :  { %7742 = vmatpush3.bf16.msra.mxu0 %v7739_v38  ;;  %v7799_v38 = vpack.c.bf16 %v2729_v37, %v2728_v36  ;;  %v2952_v36 = vld [vmem:[#allocation2 + $0x32] sm:$0xff] }
 0x2aa   :  { %7744 = vmatprep.subr.bf16.mxu0 %v7743_v17  ;;  %v3074_v37 = vld [vmem:[#allocation3 + $0x2b0] sm:$0xff] }
 0x2ad   :  { %7746 = vmatpush3.bf16.msra.mxu0 %v7743_v17  ;;  %v2609_v17 = vld [vmem:[#allocation2 + $0x27] sm:$0xff] }
 0x2ae   :  { %7748 = vmatprep.subr.bf16.mxu0 %v7747_v45 }
 0x2b0   :  { %6838 = vmatmul.mubr.msk.f32.vlgmr.msra.gmra.mrb[8].mxu0 %vm49_vm1, %v9030_v49 }
 0x2b1   :  { %6840 = vmatprep.mubr.msk.f32.mxu0 %vm49_vm1, %v2267_v52  ;;  %7750 = vmatpush3.bf16.msra.mxu0 %v7747_v45  ;;  %v2732_v45 = vld [vmem:[#allocation3 + $0x1f0] sm:$0xff] }
 0x2b2   :  { %7752 = vmatprep.subr.bf16.mxu0 %v7751_v48  ;;  %v7807_v52 = vpack.c.bf16 %v2733_v46, %v2732_v45  ;;  %v3185_v45 = vld [vmem:[#allocation3 + $0x2d8] sm:$0xff] }
 0x2b4   :  { %6841 = vmatmul.mubr.msk.f32.gmra.mrb[10].mxu0 %vm49_vm1, %v9035_v54 }
 0x2b5   :  { %7754 = vmatpush3.bf16.msra.mxu0 %v7751_v48  ;;  %6859 = vmatprep.mubr.msk.f32.mxu0 %vm49_vm1, %v2379_v57  ;;  %v5653_v48 = vld [vmem:[%s9647_s7 + $0x40] sm:$0xff]  ;;  %v2842_v57 = vld [vmem:[#allocation3 + $0x210] sm:$0xff] }
 0x2b6   :  { %7756 = vmatprep.subr.bf16.mxu0 %v7755_v53  ;;  %v7923_v51 = vpack.c.bf16 %v5654_v50, %v5653_v48  ;;  %v3186_v48 = vld [vmem:[#allocation3 + $0x2e0] sm:$0xff]  ;;  %v3187_v50 = vld [vmem:[#allocation3 + $0x2e8] sm:$0xff] }
 0x2b8   :  { %7924 = vmatprep.subr.bf16.mxu1 %v7923_v51 }
 0x2b9   :  { %7758 = vmatpush3.bf16.msra.mxu0 %v7755_v53  ;;  %v2840_v53 = vld [vmem:[#allocation3 + $0x200] sm:$0xff]  ;;  %7926 = vmatpush3.bf16.msra.mxu1 %v7923_v51  ;;  %v3066_v51 = vld [vmem:[#allocation2 + $0x33] sm:$0xff] }
 0x2ba   :  { %7760 = vmatprep.subr.bf16.mxu0 %v7759_v58  ;;  %v7811_v56 = vpack.c.bf16 %v2841_v55, %v2840_v53  ;;  %v3189_v53 = vld [vmem:[#allocation3 + $0x2f8] sm:$0xff] }
 0x2bd   :  { %7762 = vmatpush3.bf16.msra.mxu0 %v7759_v58  ;;  %v2843_v58 = vld [vmem:[#allocation3 + $0x218] sm:$0xff] }
 0x2be   :  { %7764 = vmatprep.subr.bf16.mxu0 %v7763_v61  ;;  %v7815_v59 = vpack.c.bf16 %v2843_v58, %v2842_v57  ;;  %v3297_v57 = vld [vmem:[#allocation3 + $0x308] sm:$0xff] }
 0x2c0   :  { %6860 = vmatmul.mubr.msk.f32.vlgmr.msra.gmra.mrb[8].mxu0 %vm49_vm1, %v9040_v1 }
 0x2c1   :  { %6862 = vmatprep.mubr.msk.f32.mxu0 %vm49_vm1, %v2381_v5  ;;  %7766 = vmatpush3.bf16.msra.mxu0 %v7763_v61  ;;  %v2844_v61 = vld [vmem:[#allocation3 + $0x220] sm:$0xff]  ;;  %v2847_v5 = vld [vmem:[#allocation3 + $0x238] sm:$0xff] }
 0x2c2   :  { %7768 = vmatprep.subr.bf16.mxu0 %v7767_v0 }
 0x2c4   :  { %6863 = vmatmul.mubr.msk.f32.gmra.mrb[10].mxu0 %vm49_vm1, %v9045_v7 }
 0x2c5   :  { %7770 = vmatpush3.bf16.msra.mxu0 %v7767_v0  ;;  %6881 = vmatprep.mubr.msk.f32.mxu0 %vm49_vm1, %v2493_v10  ;;  %v7819_v0 = vpack.c.bf16 %v2845_v62, %v2844_v61  ;;  %v7827_v10 = vpack.c.bf16 %v2955_v9, %v2954_v8  ;;  %v3178_v61 = vld [vmem:[#allocation2 + $0x14] sm:$0xff]  ;;  %v3300_v62 = vld [vmem:[#allocation3 + $0x320] sm:$0xff]  ;;  %v3411_v8 = vld [vmem:[#allocation3 + $0x348] sm:$0xff] }
 0x2c6   :  { %7772 = vmatprep.subr.bf16.mxu0 %v7771_v6 }
 0x2c9   :  { %7774 = vmatpush3.bf16.msra.mxu0 %v7771_v6  ;;  %v7823_v6 = vpack.c.bf16 %v2847_v5, %v2846_v3  ;;  %v3303_v3 = vld [vmem:[#allocation3 + $0x338] sm:$0xff] }
 0x2ca   :  { %7776 = vmatprep.subr.bf16.mxu0 %v7775_v11 }
 0x2cd   :  { %7778 = vmatpush3.bf16.msra.mxu0 %v7775_v11  ;;  %v2956_v11 = vld [vmem:[#allocation3 + $0x250] sm:$0xff] }
 0x2ce   :  { %7780 = vmatprep.subr.bf16.mxu0 %v7779_v14  ;;  %v7831_v13 = vpack.c.bf16 %v2957_v12, %v2956_v11  ;;  %v3292_v12 = vld [vmem:[#allocation2 + $0x15] sm:$0xff] }
 0x2d0   :  { %6882 = vmatmul.mubr.msk.f32.vlgmr.msra.gmra.mrb[8].mxu0 %vm49_vm1, %v9050_v21 }
 0x2d1   :  { %6884 = vmatprep.mubr.msk.f32.mxu0 %vm49_vm1, %v2495_v24  ;;  %7782 = vmatpush3.bf16.msra.mxu0 %v7779_v14  ;;  %v2836_v14 = vld [vmem:[#allocation2 + $0x11] sm:$0xff]  ;;  %v7839_v24 = vpack.c.bf16 %v2961_v20, %v2960_v22  ;;  %v3524_v22 = vld [vmem:[#allocation3 + $0x380] sm:$0xff]  ;;  %v3525_v20 = vld [vmem:[#allocation3 + $0x388] sm:$0xff] }
 0x2d2   :  { %7784 = vmatprep.subr.bf16.mxu0 %v7783_v19 }
 0x2d4   :  { %6885 = vmatmul.mubr.msk.f32.gmra.mrb[10].mxu0 %vm49_vm1, %v9055_v26 }
 0x2d5   :  { %7786 = vmatpush3.bf16.msra.mxu0 %v7783_v19  ;;  %6903 = vmatprep.mubr.msk.f32.mxu0 %vm49_vm1, %v2607_v32  ;;  %v2838_v19 = vld [vmem:[#allocation2 + $0x31] sm:$0xff] }
 0x2d6   :  { %7788 = vmatprep.subr.bf16.mxu0 %v7787_v25  ;;  %v3071_v32 = vld [vmem:[#allocation3 + $0x298] sm:$0xff] }
 0x2d9   :  { %7790 = vmatpush3.bf16.msra.mxu0 %v7787_v25  ;;  %v3068_v25 = vld [vmem:[#allocation3 + $0x280] sm:$0xff] }
 0x2da   :  { %7792 = vmatprep.subr.bf16.mxu0 %v7791_v33  ;;  %v7843_v31 = vpack.c.bf16 %v3069_v28, %v3068_v25  ;;  %v3527_v25 = vld [vmem:[#allocation3 + $0x398] sm:$0xff] }
 0x2dd   :  { %7794 = vmatpush3.bf16.msra.mxu0 %v7791_v33 }
 0x2de   :  { %7796 = vmatprep.subr.bf16.mxu0 %v7795_v35 }
 0x2e0   :  { %6904 = vmatmul.mubr.msk.f32.vlgmr.msra.gmra.mrb[8].mxu0 %vm49_vm1, %v9060_v40 }
 0x2e1   :  { %6906 = vmatprep.mubr.msk.f32.mxu0 %vm49_vm1, %v2609_v17  ;;  %7798 = vmatpush3.bf16.msra.mxu0 %v7795_v35  ;;  %v3073_v35 = vld [vmem:[#allocation3 + $0x2a8] sm:$0xff] }
 0x2e2   :  { %7800 = vmatprep.subr.bf16.mxu0 %v7799_v38  ;;  %v3183_v17 = vld [vmem:[#allocation3 + $0x2c8] sm:$0xff] }
 0x2e4   :  { %6907 = vmatmul.mubr.msk.f32.gmra.mrb[10].mxu0 %vm49_vm1, %v9065_v44 }
 0x2e5   :  { %7802 = vmatpush3.bf16.msra.mxu0 %v7799_v38  ;;  %6925 = vmatprep.mubr.msk.f32.mxu0 %vm49_vm1, %v2721_v47  ;;  %v3075_v38 = vld [vmem:[#allocation3 + $0x2b8] sm:$0xff] }
 0x2e6   :  { %7804 = vmatprep.subr.bf16.mxu0 %v7803_v43  ;;  %v7855_v41 = vpack.c.bf16 %v3075_v38, %v3074_v37  ;;  %v3064_v47 = vld [vmem:[#allocation2 + $0x13] sm:$0xff] }
 0x2e7   :  { %v5655_v38 = vld [vmem:[%s9647_s7 + $0x50] sm:$0xff] }
 0x2e9   :  { %7806 = vmatpush3.bf16.msra.mxu0 %v7803_v43  ;;  %v7859_v43 = vpack.c.bf16 %v3183_v17, %v3182_v42  ;;  %v5815_v42 = vld [vmem:[%s9647_s7 + $0x390] sm:$0xff]  ;;  %v5816_v17 = vld [vmem:[%s9647_s7 + $0x398] sm:$0xff] }
 0x2ea   :  { %7808 = vmatprep.subr.bf16.mxu0 %v7807_v52 }
 0x2ed   :  { %7810 = vmatpush3.bf16.msra.mxu0 %v7807_v52  ;;  %v3188_v52 = vld [vmem:[#allocation3 + $0x2f0] sm:$0xff] }
 0x2ee   :  { %7812 = vmatprep.subr.bf16.mxu0 %v7811_v56  ;;  %v7871_v55 = vpack.c.bf16 %v3189_v53, %v3188_v52  ;;  %v5819_v53 = vld [vmem:[%s9647_s7 + $0x3b0] sm:$0xff] }
 0x2f0   :  { %6926 = vmatmul.mubr.msk.f32.vlgmr.msra.gmra.mrb[8].mxu0 %vm49_vm1, %v2722_v60 }
 0x2f1   :  { %6928 = vmatprep.mubr.msk.f32.mxu0 %vm49_vm1, %v2723_v63  ;;  %7814 = vmatpush3.bf16.msra.mxu0 %v7811_v56  ;;  %v3296_v56 = vld [vmem:[#allocation3 + $0x300] sm:$0xff]  ;;  %v3301_v63 = vld [vmem:[#allocation3 + $0x328] sm:$0xff] }
 0x2f2   :  { %7816 = vmatprep.subr.bf16.mxu0 %v7815_v59  ;;  %v7875_v58 = vpack.c.bf16 %v3297_v57, %v3296_v56  ;;  %v3669_v57 = vld [vmem:[%s9647_s7] sm:$0xff] }
 0x2f4   :  { %6929 = vmatmul.mubr.msk.f32.gmra.mrb[10].mxu0 %vm49_vm1, %v2724_v2  ;;  %v3302_v2 = vld [vmem:[#allocation3 + $0x330] sm:$0xff] }
 0x2f5   :  { %7818 = vmatpush3.bf16.msra.mxu0 %v7815_v59  ;;  %6947 = vmatprep.mubr.msk.f32.mxu0 %vm49_vm1, %v9010_v16  ;;  %v7835_v16 = vpack.c.bf16 %v2959_v18, %v2958_v15  ;;  %v3299_v59 = vld [vmem:[#allocation3 + $0x318] sm:$0xff]  ;;  %v7887_v5 = vpack.c.bf16 %v3303_v3, %v3302_v2  ;;  %v3416_v18 = vld [vmem:[#allocation3 + $0x370] sm:$0xff] }
 0x2f6   :  { %7820 = vmatprep.subr.bf16.mxu0 %v7819_v0  ;;  %v3294_v15 = vld [vmem:[#allocation2 + $0x35] sm:$0xff] }
 0x2f9   :  { %7822 = vmatpush3.bf16.msra.mxu0 %v7819_v0  ;;  %v3180_v0 = vld [vmem:[#allocation2 + $0x34] sm:$0xff] }
 0x2fa   :  { %7824 = vmatprep.subr.bf16.mxu0 %v7823_v6 }
 0x2fd   :  { %7826 = vmatpush3.bf16.msra.mxu0 %v7823_v6  ;;  %v3410_v6 = vld [vmem:[#allocation3 + $0x340] sm:$0xff] }
 0x2fe   :  { %7828 = vmatprep.subr.bf16.mxu0 %v7827_v10  ;;  %v7891_v9 = vpack.c.bf16 %v3411_v8, %v3410_v6 }
 0x300   :  { %6948 = vmatmul.mubr.msk.f32.vlgmr.msra.gmra.mrb[8].mxu0 %vm49_vm1, %v2836_v14  ;;  %v3415_v14 = vld [vmem:[#allocation3 + $0x368] sm:$0xff] }
 0x301   :  { %6950 = vmatprep.mubr.msk.f32.mxu0 %vm49_vm1, %v9015_v23  ;;  %7830 = vmatpush3.bf16.msra.mxu0 %v7827_v10  ;;  %v3070_v23 = vld [vmem:[#allocation3 + $0x290] sm:$0xff]  ;;  %v3413_v10 = vld [vmem:[#allocation3 + $0x358] sm:$0xff] }
 0x302   :  { %7832 = vmatprep.subr.bf16.mxu0 %v7831_v13  ;;  %v7847_v33 = vpack.c.bf16 %v3071_v32, %v3070_v23  ;;  %v3528_v23 = vld [vmem:[#allocation3 + $0x3a0] sm:$0xff]  ;;  %v3529_v32 = vld [vmem:[#allocation3 + $0x3a8] sm:$0xff] }
 0x304   :  { %6951 = vmatmul.mubr.msk.f32.gmra.mrb[10].mxu0 %vm49_vm1, %v2838_v19 }
 0x305   :  { %7834 = vmatpush3.bf16.msra.mxu0 %v7831_v13  ;;  %6969 = vmatprep.mubr.msk.f32.mxu0 %vm49_vm1, %v8999_v29  ;;  %v7851_v29 = vpack.c.bf16 %v3073_v35, %v3072_v27  ;;  %v3414_v13 = vld [vmem:[#allocation3 + $0x360] sm:$0xff]  ;;  %v3531_v27 = vld [vmem:[#allocation3 + $0x3b8] sm:$0xff] }
 0x306   :  { %7836 = vmatprep.subr.bf16.mxu0 %v7835_v16 }
 0x309   :  { %7838 = vmatpush3.bf16.msra.mxu0 %v7835_v16  ;;  %v3417_v16 = vld [vmem:[#allocation3 + $0x378] sm:$0xff] }
 0x30a   :  { %7840 = vmatprep.subr.bf16.mxu0 %v7839_v24  ;;  %v7903_v19 = vpack.c.bf16 %v3417_v16, %v3416_v18 }
 0x30d   :  { %7842 = vmatpush3.bf16.msra.mxu0 %v7839_v24  ;;  %v7907_v24 = vpack.c.bf16 %v3525_v20, %v3524_v22  ;;  %v3673_v20 = vld [vmem:[%s9647_s7 + $0x20] sm:$0xff] }
 0x30e   :  { %7844 = vmatprep.subr.bf16.mxu0 %v7843_v31 }
 0x310   :  { %6970 = vmatmul.mubr.msk.f32.vlgmr.msra.gmra.mrb[8].mxu0 %vm49_vm1, %v2950_v30  ;;  %v3530_v30 = vld [vmem:[#allocation3 + $0x3b0] sm:$0xff] }
 0x311   :  { %6972 = vmatprep.mubr.msk.f32.mxu0 %vm49_vm1, %v9004_v4  ;;  %7846 = vmatpush3.bf16.msra.mxu0 %v7843_v31  ;;  %v3184_v4 = vld [vmem:[#allocation3 + $0x2d0] sm:$0xff]  ;;  %v7919_v35 = vpack.c.bf16 %v3531_v27, %v3530_v30  ;;  %v5670_v30 = vld [vmem:[%s9647_s7 + $0x88] sm:$0xff] }
 0x312   :  { %7848 = vmatprep.subr.bf16.mxu0 %v7847_v33  ;;  %v7863_v46 = vpack.c.bf16 %v3185_v45, %v3184_v4  ;;  %v3406_v31 = vld [vmem:[#allocation2 + $0x16] sm:$0xff]  ;;  %v5657_v4 = vld [vmem:[%s9647_s7 + $0x60] sm:$0xff]  ;;  %v5658_v45 = vld [vmem:[%s9647_s7 + $0x68] sm:$0xff] }
 0x314   :  { %6973 = vmatmul.mubr.msk.f32.gmra.mrb[10].mxu0 %vm49_vm1, %v2952_v36  ;;  %v5813_v36 = vld [vmem:[%s9647_s7 + $0x380] sm:$0xff] }
 0x315   :  { %7850 = vmatpush3.bf16.msra.mxu0 %v7847_v33  ;;  %6991 = vmatprep.mubr.msk.f32.mxu0 %vm49_vm1, %v9020_v34  ;;  %v7867_v34 = vpack.c.bf16 %v3187_v50, %v3186_v48  ;;  %v3408_v33 = vld [vmem:[#allocation2 + $0x36] sm:$0xff]  ;;  %v5818_v48 = vld [vmem:[%s9647_s7 + $0x3a8] sm:$0xff] }
 0x316   :  { %7852 = vmatprep.subr.bf16.mxu0 %v7851_v29  ;;  %v5659_v50 = vld [vmem:[%s9647_s7 + $0x70] sm:$0xff] }
 0x319   :  { %7854 = vmatpush3.bf16.msra.mxu0 %v7851_v29  ;;  %v3520_v29 = vld [vmem:[#allocation2 + $0x17] sm:$0xff] }
 0x31a   :  { %7856 = vmatprep.subr.bf16.mxu0 %v7855_v41 }
 0x31d   :  { %7858 = vmatpush3.bf16.msra.mxu0 %v7855_v41 }
 0x31e   :  { %7860 = vmatprep.subr.bf16.mxu0 %v7859_v43 }
 0x320   :  { %6992 = vmatmul.mubr.msk.f32.vlgmr.msra.gmra.mrb[8].mxu0 %vm49_vm1, %v3064_v47  ;;  %v7931_v47 = vpack.c.bf16 %v5658_v45, %v5657_v4  ;;  %v5676_v4 = vld [vmem:[%s9647_s7 + $0xb8] sm:$0xff] }
 0x321   :  { %6994 = vmatprep.mubr.msk.f32.mxu0 %vm49_vm1, %v9025_v39  ;;  %7862 = vmatpush3.bf16.msra.mxu0 %v7859_v43  ;;  %v3298_v39 = vld [vmem:[#allocation3 + $0x310] sm:$0xff]  ;;  %v9143_v43 = vpack.c.bf16 %v5816_v17, %v5815_v42 }
 0x322   :  { %7864 = vmatprep.subr.bf16.mxu0 %v7863_v46  ;;  %v7879_v60 = vpack.c.bf16 %v3299_v59, %v3298_v39  ;;  %v5651_v59 = vld [vmem:[%s9646_s6] ss:$0 sm:$0xff]  ;;  %v5675_v17 = vld [vmem:[%s9647_s7 + $0xb0] sm:$0xff] }
 0x324   :  { %6995 = vmatmul.mubr.msk.f32.gmra.mrb[10].mxu0 %vm49_vm1, %v3066_v51 }
 0x325   :  { %7866 = vmatpush3.bf16.msra.mxu0 %v7863_v46  ;;  %7013 = vmatprep.mubr.msk.f32.mxu0 %vm49_vm1, %v9030_v49  ;;  %v7883_v49 = vpack.c.bf16 %v3301_v63, %v3300_v62  ;;  %v5817_v46 = vld [vmem:[%s9647_s7 + $0x3a0] sm:$0xff] }
 0x326   :  { %7868 = vmatprep.subr.bf16.mxu0 %v7867_v34  ;;  %v9164_v51 = vpack.c.bf16 %v5818_v48, %v5817_v46  ;;  %v7967_v46 = vpack.c.bf16 %v5676_v4, %v5675_v17  ;;  %v5682_v48 = vld [vmem:[%s9647_s7 + $0xc8] sm:$0xff]  ;;  %v5719_v17 = vld [vmem:[%s9647_s7 + $0x190] sm:$0xff]  ;;  %v5720_v4 = vld [vmem:[%s9647_s7 + $0x198] sm:$0xff] }
 0x329   :  { %7870 = vmatpush3.bf16.msra.mxu0 %v7867_v34  ;;  %v5660_v34 = vld [vmem:[%s9647_s7 + $0x78] sm:$0xff] }
 0x32a   :  { %7872 = vmatprep.subr.bf16.mxu0 %v7871_v55  ;;  %v7935_v52 = vpack.c.bf16 %v5660_v34, %v5659_v50  ;;  %v5683_v34 = vld [vmem:[%s9647_s7 + $0xd0] sm:$0xff] }
 0x32d   :  { %7874 = vmatpush3.bf16.msra.mxu0 %v7871_v55  ;;  %v5820_v55 = vld [vmem:[%s9647_s7 + $0x3b8] sm:$0xff] }
 0x32e   :  { %7876 = vmatprep.subr.bf16.mxu0 %v7875_v58  ;;  %v9174_v56 = vpack.c.bf16 %v5820_v55, %v5819_v53 }
 0x330   :  { %7014 = vmatmul.mubr.msk.f32.vlgmr.msra.gmra.mrb[8].mxu0 %vm49_vm1, %v3178_v61  ;;  %v5652_v61 = vld [vmem:[%s9649_s9 + $0x2] ss:$0 sm:$0xff] }
 0x331   :  { %7016 = vmatprep.mubr.msk.f32.mxu0 %vm49_vm1, %v9035_v54  ;;  %7878 = vmatpush3.bf16.msra.mxu0 %v7875_v58  ;;  %v3412_v54 = vld [vmem:[#allocation3 + $0x350] sm:$0xff]  ;;  %v3670_v58 = vld [vmem:[%s9647_s7 + $0x8] sm:$0xff] }
 0x332   :  { %7880 = vmatprep.subr.bf16.mxu0 %v7879_v60  ;;  %v7895_v11 = vpack.c.bf16 %v3413_v10, %v3412_v54  ;;  %v7939_v39 = vpack.c.bf16 %v3670_v58, %v3669_v57  ;;  %v5685_v57 = vld [vmem:[%s9647_s7 + $0xe0] sm:$0xff]  ;;  %v5686_v58 = vld [vmem:[%s9647_s7 + $0xe8] sm:$0xff] }
 0x334   :  { %7017 = vmatmul.mubr.msk.f32.gmra.mrb[10].mxu0 %vm49_vm1, %v3180_v0 }
 0x335   :  { %7882 = vmatpush3.bf16.msra.mxu0 %v7879_v60  ;;  %7035 = vmatprep.mubr.msk.f32.mxu0 %vm49_vm1, %v9040_v1  ;;  %v7899_v1 = vpack.c.bf16 %v3415_v14, %v3414_v13  ;;  %v3671_v14 = vld [vmem:[%s9647_s7 + $0x10] sm:$0xff] }
 0x336   :  { %7884 = vmatprep.subr.bf16.mxu0 %v7883_v49 }
 0x339   :  { %7886 = vmatpush3.bf16.msra.mxu0 %v7883_v49 }
 0x33a   :  { %7888 = vmatprep.subr.bf16.mxu0 %v7887_v5 }
 0x33d   :  { %7890 = vmatpush3.bf16.msra.mxu0 %v7887_v5 }
 0x33e   :  { %7892 = vmatprep.subr.bf16.mxu0 %v7891_v9 }
 0x340   :  { %7036 = vmatmul.mubr.msk.f32.vlgmr.msra.gmra.mrb[8].mxu0 %vm49_vm1, %v3292_v12 }
 0x341   :  { %7038 = vmatprep.mubr.msk.f32.mxu0 %vm49_vm1, %v9045_v7  ;;  %7894 = vmatpush3.bf16.msra.mxu0 %v7891_v9  ;;  %v3526_v7 = vld [vmem:[#allocation3 + $0x390] sm:$0xff] }
 0x342   :  { %7896 = vmatprep.subr.bf16.mxu0 %v7895_v11  ;;  %v7911_v28 = vpack.c.bf16 %v3527_v25, %v3526_v7 }
 0x344   :  { %7039 = vmatmul.mubr.msk.f32.gmra.mrb[10].mxu0 %vm49_vm1, %v3294_v15 }
 0x345   :  { %7898 = vmatpush3.bf16.msra.mxu0 %v7895_v11  ;;  %7057 = vmatprep.mubr.msk.f32.mxu0 %vm49_vm1, %v9050_v21  ;;  %v7915_v21 = vpack.c.bf16 %v3529_v32, %v3528_v23  ;;  %v3676_v23 = vld [vmem:[%s9647_s7 + $0x38] sm:$0xff] }
 0x346   :  { %7900 = vmatprep.subr.bf16.mxu0 %v7899_v1 }
 0x349   :  { %7902 = vmatpush3.bf16.msra.mxu0 %v7899_v1  ;;  %v3672_v1 = vld [vmem:[%s9647_s7 + $0x18] sm:$0xff] }
 0x34a   :  { %7904 = vmatprep.subr.bf16.mxu0 %v7903_v19 }
 0x34d   :  { %7906 = vmatpush3.bf16.msra.mxu0 %v7903_v19  ;;  %v7943_v19 = vpack.c.bf16 %v3672_v1, %v3671_v14  ;;  %v5699_v14 = vld [vmem:[%s9647_s7 + $0x130] sm:$0xff]  ;;  %v5700_v1 = vld [vmem:[%s9647_s7 + $0x138] sm:$0xff] }
 0x34e   :  { %7908 = vmatprep.subr.bf16.mxu0 %v7907_v24 }
 0x350   :  { %7058 = vmatmul.mubr.msk.f32.vlgmr.msra.gmra.mrb[8].mxu0 %vm49_vm1, %v3406_v31  ;;  %v3675_v31 = vld [vmem:[%s9647_s7 + $0x30] sm:$0xff] }
 0x351   :  { %7060 = vmatprep.mubr.msk.f32.mxu0 %vm49_vm1, %v9055_v26  ;;  %7910 = vmatpush3.bf16.msra.mxu0 %v7907_v24  ;;  %v3522_v26 = vld [vmem:[#allocation2 + $0x37] sm:$0xff]  ;;  %v3674_v24 = vld [vmem:[%s9647_s7 + $0x28] sm:$0xff] }
 0x352   :  { %7912 = vmatprep.subr.bf16.mxu0 %v7911_v28 }
 0x354   :  { %7061 = vmatmul.mubr.msk.f32.gmra.mrb[10].mxu0 %vm49_vm1, %v3408_v33  ;;  %v5669_v33 = vld [vmem:[%s9647_s7 + $0x80] sm:$0xff] }
 0x355   :  { %7914 = vmatpush3.bf16.msra.mxu0 %v7911_v28  ;;  %7079 = vmatprep.mubr.msk.f32.mxu0 %vm49_vm1, %v9060_v40  ;;  %v5814_v40 = vld [vmem:[%s9647_s7 + $0x388] sm:$0xff]  ;;  %v7947_v28 = vpack.c.bf16 %v3674_v24, %v3673_v20  ;;  %v7955_v27 = vpack.c.bf16 %v5670_v30, %v5669_v33 }
 0x356   :  { %7916 = vmatprep.subr.bf16.mxu0 %v7915_v21  ;;  %v9127_v37 = vpack.c.bf16 %v5814_v40, %v5813_v36  ;;  %v5673_v40 = vld [vmem:[%s9647_s7 + $0xa0] sm:$0xff]  ;;  %v5706_v20 = vld [vmem:[%s9647_s7 + $0x148] sm:$0xff] }
 0x359   :  { %7918 = vmatpush3.bf16.msra.mxu0 %v7915_v21  ;;  %v7951_v21 = vpack.c.bf16 %v3676_v23, %v3675_v31 }
 0x35a   :  { %7920 = vmatprep.subr.bf16.mxu0 %v7919_v35 }
 0x35d   :  { %7922 = vmatpush3.bf16.msra.mxu0 %v7919_v35  ;;  %v5671_v35 = vld [vmem:[%s9647_s7 + $0x90] sm:$0xff] }
 0x35e   :  { %8148 = vmatprep.subr.bf16.mxu0 %v9127_v37 }
 0x360   :  { %7080 = vmatmul.mubr.msk.f32.vlgmr.msra.gmra.mrb[8].mxu0 %vm49_vm1, %v3520_v29  ;;  %v5672_v29 = vld [vmem:[%s9647_s7 + $0x98] sm:$0xff] }
 0x361   :  { %7082 = vmatprep.mubr.msk.f32.mxu0 %vm49_vm1, %v9065_v44  ;;  %v5656_v44 = vld [vmem:[%s9647_s7 + $0x58] sm:$0xff]  ;;  %8150 = vmatpush3.bf16.msra.mxu0 %v9127_v37 }
 0x362   :  { %v7927_v41 = vpack.c.bf16 %v5656_v44, %v5655_v38  ;;  %8152 = vmatprep.subr.bf16.mxu0 %v9143_v43  ;;  %v5674_v38 = vld [vmem:[%s9647_s7 + $0xa8] sm:$0xff] }
 0x364   :  { %7083 = vmatmul.mubr.msk.f32.gmra.mrb[10].mxu0 %vm49_vm1, %v3522_v26  ;;  %7928 = vmatprep.subr.bf16.mxu1 %v7927_v41  ;;  %v7959_v26 = vpack.c.bf16 %v5672_v29, %v5671_v35  ;;  %v5711_v35 = vld [vmem:[%s9647_s7 + $0x170] sm:$0xff]  ;;  %v5712_v29 = vld [vmem:[%s9647_s7 + $0x178] sm:$0xff] }
 0x365   :  { %7930 = vmatpush3.bf16.msra.mxu1 %v7927_v41  ;;  %8154 = vmatpush3.bf16.msra.mxu0 %v9143_v43  ;;  %v7963_v41 = vpack.c.bf16 %v5674_v38, %v5673_v40  ;;  %v8015_v40 = vpack.c.bf16 %v5712_v29, %v5711_v35  ;;  %v5717_v38 = vld [vmem:[%s9647_s7 + $0x180] sm:$0xff]  ;;  %v5754_v29 = vld [vmem:[%s9647_s7 + $0x248] sm:$0xff] }
 0x366   :  { %7932 = vmatprep.subr.bf16.mxu1 %v7931_v47  ;;  %8156 = vmatprep.subr.bf16.mxu0 %v9164_v51  ;;  %v5753_v35 = vld [vmem:[%s9647_s7 + $0x240] sm:$0xff] }
 0x369   :  { %7934 = vmatpush3.bf16.msra.mxu1 %v7931_v47  ;;  %8158 = vmatpush3.bf16.msra.mxu0 %v9164_v51  ;;  %v5681_v47 = vld [vmem:[%s9647_s7 + $0xc0] sm:$0xff] }
 0x36a   :  { %7936 = vmatprep.subr.bf16.mxu1 %v7935_v52  ;;  %8160 = vmatprep.subr.bf16.mxu0 %v9174_v56  ;;  %v7971_v50 = vpack.c.bf16 %v5682_v48, %v5681_v47  ;;  %v5721_v47 = vld [vmem:[%s9647_s7 + $0x1a0] sm:$0xff]  ;;  %v5722_v48 = vld [vmem:[%s9647_s7 + $0x1a8] sm:$0xff] }
 0x36d   :  { %7938 = vmatpush3.bf16.msra.mxu1 %v7935_v52  ;;  %8162 = vmatpush3.bf16.msra.mxu0 %v9174_v56  ;;  %v5684_v52 = vld [vmem:[%s9647_s7 + $0xd8] sm:$0xff] }
 0x36e   :  { %7940 = vmatprep.subr.bf16.mxu1 %v7939_v39  ;;  %v7975_v53 = vpack.c.bf16 %v5684_v52, %v5683_v34  ;;  %v8027_v34 = vpack.c.bf16 %v5722_v48, %v5721_v47  ;;  %v5759_v47 = vld [vmem:[%s9647_s7 + $0x270] sm:$0xff]  ;;  %v5760_v48 = vld [vmem:[%s9647_s7 + $0x278] sm:$0xff] }
 0x433   :  { %v7081_v60 = vpop.f32.mrb[8].mxu0 }
 0x434   :  { %v3641_v62 = vadd.f32 %v7081_v60, %v5651_v59  ;;  %v3610_v63 = vpop.f32.mrb[9].mxu0 }
 0x435   :  { %v3640_v49 = vadd.f32 %v5651_v59, %v3610_v63 }
 0x436   :  { %vm3646_vm10 = vcmp.gt.f32.partialorder %v3641_v62, 0.0  ;;  %v3654_v0 = vmul.f32 %v5652_v61, %v3641_v62 }
 0x437   :  { %vm3645_vm11 = vcmp.gt.f32.partialorder %v3640_v49, 0.0  ;;  %v3653_v2 = vmul.f32 %v5652_v61, %v3640_v49  ;;  %v7084_v3 = vpop.f32.mrb[10].mxu0 }
 0x438   :  { %v3658_v5 = vsel %vm3646_vm10, %v3641_v62, %v3654_v0  ;;  %v3643_v6 = vadd.f32 %v7084_v3, %v5651_v59  ;;  %v3620_v8 = vpop.f32.mrb[11].mxu0  ;;  %v5688_v62 = vld [vmem:[%s9647_s7 + $0xf8] sm:$0xff]  ;;  %v5693_v0 = vld [vmem:[%s9647_s7 + $0x100] sm:$0xff] }
 0x439   :  { %3662 = vst.msk [vmem:[#allocation2 + $0x10] sm:$0xff] %vm49_vm1, %v3658_v5  ;;  %v3657_v9 = vsel %vm3645_vm11, %v3640_v49, %v3653_v2  ;;  %v3642_v54 = vadd.f32 %v5651_v59, %v3620_v8  ;;  %v7979_v59 = vpack.c.bf16 %v5686_v58, %v5685_v57  ;;  %v5694_v2 = vld [vmem:[%s9647_s7 + $0x108] sm:$0xff]  ;;  %v5695_v5 = vld [vmem:[%s9647_s7 + $0x110] sm:$0xff]  ;;  %v5724_v57 = vld [vmem:[%s9647_s7 + $0x1b8] sm:$0xff] }
 0x43a   :  { %3661 = vst.msk [vmem:[#allocation2 + $0x8] sm:$0xff] %vm49_vm1, %v3657_v9  ;;  %vm3648_vm12 = vcmp.gt.f32.partialorder %v3643_v6, 0.0  ;;  %v3656_v10 = vmul.f32 %v5652_v61, %v3643_v6  ;;  %v7987_v3 = vpack.c.bf16 %v5694_v2, %v5693_v0  ;;  %v5733_v2 = vld [vmem:[%s9647_s7 + $0x1e0] sm:$0xff] }
 0x43b   :  { %vm3647_vm13 = vcmp.gt.f32.partialorder %v3642_v54, 0.0  ;;  %v3655_v11 = vmul.f32 %v5652_v61, %v3642_v54  ;;  %v5687_v61 = vld [vmem:[%s9647_s7 + $0xf0] sm:$0xff] }
 0x43c   :  { %v3660_v12 = vsel %vm3648_vm12, %v3643_v6, %v3656_v10  ;;  %v7983_v49 = vpack.c.bf16 %v5688_v62, %v5687_v61  ;;  %v5696_v6 = vld [vmem:[%s9647_s7 + $0x118] sm:$0xff]  ;;  %v5698_v10 = vld [vmem:[%s9647_s7 + $0x128] sm:$0xff] }
 0x43d   :  { %3664 = vst.msk [vmem:[#allocation2 + $0x30] sm:$0xff] %vm49_vm1, %v3660_v12  ;;  %v3659_v13 = vsel %vm3647_vm13, %v3642_v54, %v3655_v11  ;;  %v7991_v8 = vpack.c.bf16 %v5696_v6, %v5695_v5  ;;  %v5697_v54 = vld [vmem:[%s9647_s7 + $0x120] sm:$0xff]  ;;  %v5730_v61 = vld [vmem:[%s9647_s7 + $0x1c8] sm:$0xff] }
 0x43e   :  { %3663 = vst.msk [vmem:[#allocation2 + $0x28] sm:$0xff] %vm49_vm1, %v3659_v13  ;;  %v7995_v12 = vpack.c.bf16 %v5698_v10, %v5697_v54  ;;  %v5735_v54 = vld [vmem:[%s9647_s7 + $0x1f0] sm:$0xff]  ;;  %v5736_v10 = vld [vmem:[%s9647_s7 + $0x1f8] sm:$0xff] }
 0x440   :  { %v5253_v22 = vld [vmem:[#allocation2 + $0x17] sm:$0xff] }
 0x441   :  { %v3677_v15 = vld [vmem:[#allocation2 + $0x2] sm:$0xff]  ;;  %v9201_v18 = vld [vmem:[#allocation2 + $0xf] sm:$0xff] }
 0x442   :  { %v9203_v16 = vld [vmem:[#allocation2 + $0xa] sm:$0xff]  ;;  %7101 = vmatprep.mubr.msk.f32.mxu1 %vm49_vm1, %v3677_v15  ;;  %7409 = vmatprep.mubr.msk.f32.mxu0 %vm49_vm1, %v9201_v18  ;;  %v3665_v32 = vld [vmem:[#allocation2 + $0x1] sm:$0xff] }
 0x443   :  { %7102 = vmatmul.mubr.msk.f32.vlgmr.msra.gmra.mrb[4].mxu1 %vm49_vm1, %v9203_v16  ;;  %7410 = vmatmul.mubr.msk.f32.vlgmr.msra.gmra.mrb[12].mxu0 %vm49_vm1, %v5253_v22  ;;  %v9241_v36 = vld [vmem:[#allocation2 + $0x9] sm:$0xff]  ;;  %v5705_v22 = vld [vmem:[%s9647_s7 + $0x140] sm:$0xff] }
 0x444   :  { %7942 = vmatpush3.bf16.msra.mxu1 %v7939_v39  ;;  %v3884_v45 = vld [vmem:[#allocation2 + $0x3] sm:$0xff]  ;;  %v9275_v55 = vld [vmem:[#allocation2 + $0xb] sm:$0xff]  ;;  %v8003_v24 = vpack.c.bf16 %v5706_v20, %v5705_v22 }
 0x445   :  { %v3679_v7 = vld [vmem:[#allocation2 + $0x22] sm:$0xff]  ;;  %7944 = vmatprep.subr.bf16.mxu1 %v7943_v19  ;;  %v9217_v25 = vld [vmem:[#allocation2 + $0x2a] sm:$0xff] }
 0x446   :  { %7104 = vmatprep.mubr.msk.f32.mxu1 %vm49_vm1, %v3679_v7  ;;  %v3667_v44 = vld [vmem:[#allocation2 + $0x21] sm:$0xff]  ;;  %v9252_v42 = vld [vmem:[#allocation2 + $0x29] sm:$0xff] }
 0x447   :  { %7105 = vmatmul.mubr.msk.f32.gmra.mrb[6].mxu1 %vm49_vm1, %v9217_v25  ;;  %v3886_v39 = vld [vmem:[#allocation2 + $0x23] sm:$0xff]  ;;  %v9286_v60 = vld [vmem:[#allocation2 + $0x2b] sm:$0xff] }
 0x448   :  { %7946 = vmatpush3.bf16.msra.mxu1 %v7943_v19  ;;  %7123 = vmatprep.mubr.msk.f32.mxu1 %vm49_vm1, %v3665_v32  ;;  %v3998_v63 = vld [vmem:[#allocation2 + $0x4] sm:$0xff]  ;;  %v9309_v9 = vld [vmem:[#allocation2 + $0xc] sm:$0xff]  ;;  %v7999_v19 = vpack.c.bf16 %v5700_v1, %v5699_v14 }
 0x449   :  { %7948 = vmatprep.subr.bf16.mxu1 %v7947_v28  ;;  %v4000_v11 = vld [vmem:[#allocation2 + $0x24] sm:$0xff]  ;;  %v9320_v13 = vld [vmem:[#allocation2 + $0x2c] sm:$0xff] }
 0x44a   :  { %v4112_v15 = vld [vmem:[#allocation2 + $0x5] sm:$0xff]  ;;  %v5707_v7 = vld [vmem:[%s9647_s7 + $0x150] sm:$0xff] }
 0x44b   :  { %v9343_v23 = vld [vmem:[#allocation2 + $0xd] sm:$0xff]  ;;  %v5709_v32 = vld [vmem:[%s9647_s7 + $0x160] sm:$0xff] }
 0x44c   :  { %7950 = vmatpush3.bf16.msra.mxu1 %v7947_v28  ;;  %v5708_v28 = vld [vmem:[%s9647_s7 + $0x158] sm:$0xff]  ;;  %v4114_v33 = vld [vmem:[#allocation2 + $0x25] sm:$0xff]  ;;  %v9388_v52 = vld [vmem:[#allocation2 + $0x2e] sm:$0xff] }
 0x44d   :  { %7952 = vmatprep.subr.bf16.mxu1 %v7951_v21  ;;  %v8007_v31 = vpack.c.bf16 %v5708_v28, %v5707_v7  ;;  %v4340_v58 = vld [vmem:[#allocation2 + $0x7] sm:$0xff]  ;;  %v4455_v20 = vld [vmem:[#allocation2 + $0x10] sm:$0xff] }
 0x44e   :  { %v4342_v5 = vld [vmem:[#allocation2 + $0x27] sm:$0xff] }
 0x44f   :  { %v5742_v14 = vld [vmem:[%s9647_s7 + $0x208] sm:$0xff] }
 0x450   :  { %7954 = vmatpush3.bf16.msra.mxu1 %v7951_v21  ;;  %v5710_v21 = vld [vmem:[%s9647_s7 + $0x168] sm:$0xff] }
 0x451   :  { %7956 = vmatprep.subr.bf16.mxu1 %v7955_v27  ;;  %v8011_v30 = vpack.c.bf16 %v5710_v21, %v5709_v32  ;;  %v5746_v7 = vld [vmem:[%s9647_s7 + $0x228] sm:$0xff]  ;;  %v4457_v32 = vld [vmem:[#allocation2 + $0x30] sm:$0xff] }
 0x452   :  { %v4456_v28 = vld [vmem:[#allocation2 + $0x28] sm:$0xff]  ;;  %v5747_v21 = vld [vmem:[%s9647_s7 + $0x230] sm:$0xff] }
 0x453   :  { %7124 = vmatmul.mubr.msk.f32.vlgmr.msra.gmra.mrb[4].mxu1 %vm49_vm1, %v9241_v36 }
 0x454   :  { %7126 = vmatprep.mubr.msk.f32.mxu1 %vm49_vm1, %v3667_v44  ;;  %7958 = vmatpush3.bf16.msra.mxu1 %v7955_v27  ;;  %v9354_v27 = vld [vmem:[#allocation2 + $0x2d] sm:$0xff] }
 0x455   :  { %7960 = vmatprep.subr.bf16.mxu1 %v7959_v26  ;;  %v5718_v44 = vld [vmem:[%s9647_s7 + $0x188] sm:$0xff] }
 0x457   :  { %7127 = vmatmul.mubr.msk.f32.gmra.mrb[6].mxu1 %vm49_vm1, %v9252_v42 }
 0x458   :  { %7962 = vmatpush3.bf16.msra.mxu1 %v7959_v26  ;;  %7145 = vmatprep.mubr.msk.f32.mxu1 %vm49_vm1, %v3884_v45  ;;  %v4226_v26 = vld [vmem:[#allocation2 + $0x6] sm:$0xff]  ;;  %v8023_v45 = vpack.c.bf16 %v5720_v4, %v5719_v17 }
 0x459   :  { %7964 = vmatprep.subr.bf16.mxu1 %v7963_v41  ;;  %v5758_v17 = vld [vmem:[%s9647_s7 + $0x268] sm:$0xff] }
 0x45c   :  { %7966 = vmatpush3.bf16.msra.mxu1 %v7963_v41  ;;  %v8019_v41 = vpack.c.bf16 %v5718_v44, %v5717_v38  ;;  %v4569_v44 = vld [vmem:[#allocation2 + $0x11] sm:$0xff] }
 0x45d   :  { %7968 = vmatprep.subr.bf16.mxu1 %v7967_v46 }
 0x460   :  { %7970 = vmatpush3.bf16.msra.mxu1 %v7967_v46  ;;  %v9377_v46 = vld [vmem:[#allocation2 + $0xe] sm:$0xff] }
 0x461   :  { %7972 = vmatprep.subr.bf16.mxu1 %v7971_v50 }
 0x463   :  { %7146 = vmatmul.mubr.msk.f32.vlgmr.msra.gmra.mrb[4].mxu1 %vm49_vm1, %v9275_v55 }
 0x464   :  { %7148 = vmatprep.mubr.msk.f32.mxu1 %vm49_vm1, %v3886_v39  ;;  %7974 = vmatpush3.bf16.msra.mxu1 %v7971_v50  ;;  %v4228_v50 = vld [vmem:[#allocation2 + $0x26] sm:$0xff] }
 0x465   :  { %7976 = vmatprep.subr.bf16.mxu1 %v7975_v53 }
 0x467   :  { %7149 = vmatmul.mubr.msk.f32.gmra.mrb[6].mxu1 %vm49_vm1, %v9286_v60 }
 0x468   :  { %7978 = vmatpush3.bf16.msra.mxu1 %v7975_v53  ;;  %7167 = vmatprep.mubr.msk.f32.mxu1 %vm49_vm1, %v3998_v63  ;;  %v5723_v53 = vld [vmem:[%s9647_s7 + $0x1b0] sm:$0xff] }
 0x469   :  { %7980 = vmatprep.subr.bf16.mxu1 %v7979_v59  ;;  %v8031_v39 = vpack.c.bf16 %v5724_v57, %v5723_v53  ;;  %v5731_v63 = vld [vmem:[%s9647_s7 + $0x1d0] sm:$0xff] }
 0x46a   :  { %v5767_v57 = vld [vmem:[%s9647_s7 + $0x290] sm:$0xff] }
 0x46c   :  { %7982 = vmatpush3.bf16.msra.mxu1 %v7979_v59  ;;  %v5729_v59 = vld [vmem:[%s9647_s7 + $0x1c0] sm:$0xff] }
 0x46d   :  { %7984 = vmatprep.subr.bf16.mxu1 %v7983_v49  ;;  %v8035_v62 = vpack.c.bf16 %v5730_v61, %v5729_v59  ;;  %v5769_v59 = vld [vmem:[%s9647_s7 + $0x2a0] sm:$0xff]  ;;  %v5770_v61 = vld [vmem:[%s9647_s7 + $0x2a8] sm:$0xff] }
 0x470   :  { %7986 = vmatpush3.bf16.msra.mxu1 %v7983_v49  ;;  %v5732_v49 = vld [vmem:[%s9647_s7 + $0x1d8] sm:$0xff] }
 0x471   :  { %7988 = vmatprep.subr.bf16.mxu1 %v7987_v3  ;;  %v8039_v0 = vpack.c.bf16 %v5732_v49, %v5731_v63  ;;  %v4685_v63 = vld [vmem:[#allocation2 + $0x32] sm:$0xff] }
 0x472   :  { %v5771_v49 = vld [vmem:[%s9647_s7 + $0x2b0] sm:$0xff] }
 0x473   :  { %7168 = vmatmul.mubr.msk.f32.vlgmr.msra.gmra.mrb[4].mxu1 %vm49_vm1, %v9309_v9 }
 0x474   :  { %7170 = vmatprep.mubr.msk.f32.mxu1 %vm49_vm1, %v4000_v11  ;;  %7990 = vmatpush3.bf16.msra.mxu1 %v7987_v3  ;;  %v5734_v3 = vld [vmem:[%s9647_s7 + $0x1e8] sm:$0xff]  ;;  %v8047_v11 = vpack.c.bf16 %v5736_v10, %v5735_v54  ;;  %v4797_v10 = vld [vmem:[#allocation2 + $0x13] sm:$0xff] }
 0x475   :  { %7992 = vmatprep.subr.bf16.mxu1 %v7991_v8  ;;  %v8043_v6 = vpack.c.bf16 %v5734_v3, %v5733_v2  ;;  %v5777_v2 = vld [vmem:[%s9647_s7 + $0x2c0] sm:$0xff]  ;;  %v5778_v3 = vld [vmem:[%s9647_s7 + $0x2c8] sm:$0xff] }
 0x477   :  { %7171 = vmatmul.mubr.msk.f32.gmra.mrb[6].mxu1 %vm49_vm1, %v9320_v13 }
 0x478   :  { %7994 = vmatpush3.bf16.msra.mxu1 %v7991_v8  ;;  %7189 = vmatprep.mubr.msk.f32.mxu1 %vm49_vm1, %v4112_v15  ;;  %v9420_v8 = vld [vmem:[#allocation2 + $0x2f] sm:$0xff] }
 0x479   :  { %7996 = vmatprep.subr.bf16.mxu1 %v7995_v12  ;;  %v5743_v15 = vld [vmem:[%s9647_s7 + $0x210] sm:$0xff] }
 0x47c   :  { %7998 = vmatpush3.bf16.msra.mxu1 %v7995_v12  ;;  %v5741_v12 = vld [vmem:[%s9647_s7 + $0x200] sm:$0xff] }
 0x47d   :  { %8000 = vmatprep.subr.bf16.mxu1 %v7999_v19  ;;  %v8051_v1 = vpack.c.bf16 %v5742_v14, %v5741_v12  ;;  %v4799_v14 = vld [vmem:[#allocation2 + $0x33] sm:$0xff] }
 0x480   :  { %8002 = vmatpush3.bf16.msra.mxu1 %v7999_v19  ;;  %v5744_v19 = vld [vmem:[%s9647_s7 + $0x218] sm:$0xff] }
 0x481   :  { %8004 = vmatprep.subr.bf16.mxu1 %v8003_v24  ;;  %v8055_v22 = vpack.c.bf16 %v5744_v19, %v5743_v15  ;;  %v5784_v15 = vld [vmem:[%s9647_s7 + $0x2f8] sm:$0xff]  ;;  %v5789_v19 = vld [vmem:[%s9647_s7 + $0x300] sm:$0xff] }
 0x483   :  { %7190 = vmatmul.mubr.msk.f32.vlgmr.msra.gmra.mrb[4].mxu1 %vm49_vm1, %v9343_v23 }
 0x484   :  { %7192 = vmatprep.mubr.msk.f32.mxu1 %vm49_vm1, %v4114_v33  ;;  %8006 = vmatpush3.bf16.msra.mxu1 %v8003_v24  ;;  %v5745_v24 = vld [vmem:[%s9647_s7 + $0x220] sm:$0xff]  ;;  %v5748_v33 = vld [vmem:[%s9647_s7 + $0x238] sm:$0xff] }
 0x485   :  { %8008 = vmatprep.subr.bf16.mxu1 %v8007_v31 }
 0x487   :  { %7193 = vmatmul.mubr.msk.f32.gmra.mrb[6].mxu1 %vm49_vm1, %v9354_v27 }
 0x488   :  { %8010 = vmatpush3.bf16.msra.mxu1 %v8007_v31  ;;  %7211 = vmatprep.mubr.msk.f32.mxu1 %vm49_vm1, %v4226_v26  ;;  %v8059_v31 = vpack.c.bf16 %v5746_v7, %v5745_v24  ;;  %v8067_v26 = vpack.c.bf16 %v5754_v29, %v5753_v35  ;;  %v5791_v24 = vld [vmem:[%s9647_s7 + $0x310] sm:$0xff]  ;;  %v5796_v35 = vld [vmem:[%s9647_s7 + $0x338] sm:$0xff]  ;;  %v5801_v29 = vld [vmem:[%s9647_s7 + $0x340] sm:$0xff] }
 0x489   :  { %8012 = vmatprep.subr.bf16.mxu1 %v8011_v30 }
 0x48c   :  { %8014 = vmatpush3.bf16.msra.mxu1 %v8011_v30  ;;  %v8063_v30 = vpack.c.bf16 %v5748_v33, %v5747_v21  ;;  %v4913_v33 = vld [vmem:[#allocation2 + $0x34] sm:$0xff] }
 0x48d   :  { %8016 = vmatprep.subr.bf16.mxu1 %v8015_v40 }
 0x490   :  { %8018 = vmatpush3.bf16.msra.mxu1 %v8015_v40  ;;  %v5755_v40 = vld [vmem:[%s9647_s7 + $0x250] sm:$0xff] }
 0x491   :  { %8020 = vmatprep.subr.bf16.mxu1 %v8019_v41 }
 0x493   :  { %7212 = vmatmul.mubr.msk.f32.vlgmr.msra.gmra.mrb[4].mxu1 %vm49_vm1, %v9377_v46 }
 0x494   :  { %7214 = vmatprep.mubr.msk.f32.mxu1 %vm49_vm1, %v4228_v50  ;;  %8022 = vmatpush3.bf16.msra.mxu1 %v8019_v41  ;;  %v5757_v41 = vld [vmem:[%s9647_s7 + $0x260] sm:$0xff] }
 0x495   :  { %8024 = vmatprep.subr.bf16.mxu1 %v8023_v45  ;;  %v8075_v4 = vpack.c.bf16 %v5758_v17, %v5757_v41  ;;  %v5765_v50 = vld [vmem:[%s9647_s7 + $0x280] sm:$0xff]  ;;  %v5806_v17 = vld [vmem:[%s9647_s7 + $0x368] sm:$0xff] }
 0x496   :  { %v5805_v41 = vld [vmem:[%s9647_s7 + $0x360] sm:$0xff] }
 0x497   :  { %7215 = vmatmul.mubr.msk.f32.gmra.mrb[6].mxu1 %vm49_vm1, %v9388_v52 }
 0x498   :  { %8026 = vmatpush3.bf16.msra.mxu1 %v8023_v45  ;;  %7233 = vmatprep.mubr.msk.f32.mxu1 %vm49_vm1, %v4340_v58  ;;  %v4571_v45 = vld [vmem:[#allocation2 + $0x31] sm:$0xff] }
 0x499   :  { %8028 = vmatprep.subr.bf16.mxu1 %v8027_v34 }
 0x49c   :  { %8030 = vmatpush3.bf16.msra.mxu1 %v8027_v34  ;;  %v5766_v34 = vld [vmem:[%s9647_s7 + $0x288] sm:$0xff] }
 0x49d   :  { %8032 = vmatprep.subr.bf16.mxu1 %v8031_v39  ;;  %v8083_v53 = vpack.c.bf16 %v5766_v34, %v5765_v50  ;;  %v5141_v50 = vld [vmem:[#allocation2 + $0x36] sm:$0xff] }
 0x4a0   :  { %8034 = vmatpush3.bf16.msra.mxu1 %v8031_v39  ;;  %v4683_v39 = vld [vmem:[#allocation2 + $0x12] sm:$0xff] }
 0x4a1   :  { %8036 = vmatprep.subr.bf16.mxu1 %v8035_v62 }
 0x4a3   :  { %7234 = vmatmul.mubr.msk.f32.vlgmr.msra.gmra.mrb[4].mxu1 %vm49_vm1, %v9201_v18  ;;  %v4454_v18 = vld [vmem:[#allocation2 + $0x8] sm:$0xff] }
 0x4a4   :  { %7236 = vmatprep.mubr.msk.f32.mxu1 %vm49_vm1, %v4342_v5  ;;  %8038 = vmatpush3.bf16.msra.mxu1 %v8035_v62  ;;  %v8091_v62 = vpack.c.bf16 %v5770_v61, %v5769_v59  ;;  %v8099_v5 = vpack.c.bf16 %v5778_v3, %v5777_v2 }
 0x4a5   :  { %8040 = vmatprep.subr.bf16.mxu1 %v8039_v0 }
 0x4a7   :  { %7237 = vmatmul.mubr.msk.f32.gmra.mrb[6].mxu1 %vm49_vm1, %v9420_v8 }
 0x4a8   :  { %8042 = vmatpush3.bf16.msra.mxu1 %v8039_v0  ;;  %7255 = vmatprep.mubr.msk.f32.mxu1 %vm49_vm1, %v4454_v18  ;;  %v5772_v0 = vld [vmem:[%s9647_s7 + $0x2b8] sm:$0xff]  ;;  %v5781_v18 = vld [vmem:[%s9647_s7 + $0x2e0] sm:$0xff] }
 0x4a9   :  { %8044 = vmatprep.subr.bf16.mxu1 %v8043_v6 }
 0x4ac   :  { %8046 = vmatpush3.bf16.msra.mxu1 %v8043_v6  ;;  %v5779_v6 = vld [vmem:[%s9647_s7 + $0x2d0] sm:$0xff] }
 0x4ad   :  { %8048 = vmatprep.subr.bf16.mxu1 %v8047_v11 }
 0x4b0   :  { %8050 = vmatpush3.bf16.msra.mxu1 %v8047_v11  ;;  %v5782_v11 = vld [vmem:[%s9647_s7 + $0x2e8] sm:$0xff] }
 0x4b1   :  { %8052 = vmatprep.subr.bf16.mxu1 %v8051_v1  ;;  %v8107_v12 = vpack.c.bf16 %v5782_v11, %v5781_v18 }
 0x4b3   :  { %7256 = vmatmul.mubr.msk.f32.vlgmr.msra.gmra.mrb[4].mxu1 %vm49_vm1, %v4455_v20 }
 0x4b4   :  { %7258 = vmatprep.mubr.msk.f32.mxu1 %vm49_vm1, %v4456_v28  ;;  %8054 = vmatpush3.bf16.msra.mxu1 %v8051_v1  ;;  %v5783_v1 = vld [vmem:[%s9647_s7 + $0x2f0] sm:$0xff] }
 0x4b5   :  { %8056 = vmatprep.subr.bf16.mxu1 %v8055_v22  ;;  %v4911_v28 = vld [vmem:[#allocation2 + $0x14] sm:$0xff] }
 0x4b7   :  { %7259 = vmatmul.mubr.msk.f32.gmra.mrb[6].mxu1 %vm49_vm1, %v4457_v32  ;;  %v5794_v32 = vld [vmem:[%s9647_s7 + $0x328] sm:$0xff] }
 0x4b8   :  { %8058 = vmatpush3.bf16.msra.mxu1 %v8055_v22  ;;  %7277 = vmatprep.mubr.msk.f32.mxu1 %vm49_vm1, %v9241_v36  ;;  %v5756_v36 = vld [vmem:[%s9647_s7 + $0x258] sm:$0xff]  ;;  %v5790_v22 = vld [vmem:[%s9647_s7 + $0x308] sm:$0xff] }
 0x4b9   :  { %8060 = vmatprep.subr.bf16.mxu1 %v8059_v31  ;;  %v8071_v38 = vpack.c.bf16 %v5756_v36, %v5755_v40  ;;  %v8115_v20 = vpack.c.bf16 %v5790_v22, %v5789_v19  ;;  %v5803_v36 = vld [vmem:[%s9647_s7 + $0x350] sm:$0xff] }
 0x4bc   :  { %8062 = vmatpush3.bf16.msra.mxu1 %v8059_v31  ;;  %v5793_v31 = vld [vmem:[%s9647_s7 + $0x320] sm:$0xff] }
 0x4bd   :  { %8064 = vmatprep.subr.bf16.mxu1 %v8063_v30  ;;  %v8123_v21 = vpack.c.bf16 %v5794_v32, %v5793_v31 }
 0x4c0   :  { %8066 = vmatpush3.bf16.msra.mxu1 %v8063_v30  ;;  %v5795_v30 = vld [vmem:[%s9647_s7 + $0x330] sm:$0xff] }
 0x4c1   :  { %8068 = vmatprep.subr.bf16.mxu1 %v8067_v26 }
 0x4c3   :  { %7278 = vmatmul.mubr.msk.f32.vlgmr.msra.gmra.mrb[4].mxu1 %vm49_vm1, %v4569_v44  ;;  %v5025_v44 = vld [vmem:[#allocation2 + $0x15] sm:$0xff] }
 0x4c4   :  { %7280 = vmatprep.mubr.msk.f32.mxu1 %vm49_vm1, %v9252_v42  ;;  %8070 = vmatpush3.bf16.msra.mxu1 %v8067_v26  ;;  %v8079_v42 = vpack.c.bf16 %v5760_v48, %v5759_v47  ;;  %v5802_v26 = vld [vmem:[%s9647_s7 + $0x348] sm:$0xff]  ;;  %v5807_v47 = vld [vmem:[%s9647_s7 + $0x370] sm:$0xff]  ;;  %v5808_v48 = vld [vmem:[%s9647_s7 + $0x378] sm:$0xff] }
 0x4c5   :  { %8072 = vmatprep.subr.bf16.mxu1 %v8071_v38  ;;  %v8131_v40 = vpack.c.bf16 %v5802_v26, %v5801_v29 }
 0x4c7   :  { %7281 = vmatmul.mubr.msk.f32.gmra.mrb[6].mxu1 %vm49_vm1, %v4571_v45  ;;  %v5027_v45 = vld [vmem:[#allocation2 + $0x35] sm:$0xff] }
 0x4c8   :  { %8074 = vmatpush3.bf16.msra.mxu1 %v8071_v38  ;;  %7299 = vmatprep.mubr.msk.f32.mxu1 %vm49_vm1, %v9203_v16  ;;  %v5768_v16 = vld [vmem:[%s9647_s7 + $0x298] sm:$0xff] }
 0x4c9   :  { %8076 = vmatprep.subr.bf16.mxu1 %v8075_v4  ;;  %v8087_v58 = vpack.c.bf16 %v5768_v16, %v5767_v57 }
 0x4cc   :  { %8078 = vmatpush3.bf16.msra.mxu1 %v8075_v4  ;;  %v8139_v4 = vpack.c.bf16 %v5806_v17, %v5805_v41 }
 0x4cd   :  { %8080 = vmatprep.subr.bf16.mxu1 %v8079_v42 }
 0x4d0   :  { %8082 = vmatpush3.bf16.msra.mxu1 %v8079_v42  ;;  %v5139_v42 = vld [vmem:[#allocation2 + $0x16] sm:$0xff] }
 0x4d1   :  { %8084 = vmatprep.subr.bf16.mxu1 %v8083_v53 }
 0x4d3   :  { %7300 = vmatmul.mubr.msk.f32.vlgmr.msra.gmra.mrb[4].mxu1 %vm49_vm1, %v4683_v39 }
 0x4d4   :  { %7302 = vmatprep.mubr.msk.f32.mxu1 %vm49_vm1, %v9217_v25  ;;  %8086 = vmatpush3.bf16.msra.mxu1 %v8083_v53  ;;  %v8095_v25 = vpack.c.bf16 %v5772_v0, %v5771_v49  ;;  %v5825_v53 = vld [vmem:[%s9648_s8] ss:$0 sm:$0xff] }
 0x4d5   :  { %8088 = vmatprep.subr.bf16.mxu1 %v8087_v58 }
 0x4d7   :  { %7303 = vmatmul.mubr.msk.f32.gmra.mrb[6].mxu1 %vm49_vm1, %v4685_v63 }
 0x4d8   :  { %8090 = vmatpush3.bf16.msra.mxu1 %v8087_v58  ;;  %7321 = vmatprep.mubr.msk.f32.mxu1 %vm49_vm1, %v9275_v55  ;;  %v5780_v55 = vld [vmem:[%s9647_s7 + $0x2d8] sm:$0xff] }
 0x4d9   :  { %8092 = vmatprep.subr.bf16.mxu1 %v8091_v62  ;;  %v8103_v54 = vpack.c.bf16 %v5780_v55, %v5779_v6 }
 0x4dc   :  { %8094 = vmatpush3.bf16.msra.mxu1 %v8091_v62 }
 0x4dd   :  { %8096 = vmatprep.subr.bf16.mxu1 %v8095_v25 }
 0x4e0   :  { %8098 = vmatpush3.bf16.msra.mxu1 %v8095_v25 }
 0x4e1   :  { %8100 = vmatprep.subr.bf16.mxu1 %v8099_v5 }
 0x4e3   :  { %7322 = vmatmul.mubr.msk.f32.vlgmr.msra.gmra.mrb[4].mxu1 %vm49_vm1, %v4797_v10 }
 0x4e4   :  { %7324 = vmatprep.mubr.msk.f32.mxu1 %vm49_vm1, %v9286_v60  ;;  %8102 = vmatpush3.bf16.msra.mxu1 %v8099_v5  ;;  %v8111_v60 = vpack.c.bf16 %v5784_v15, %v5783_v1 }
 0x4e5   :  { %8104 = vmatprep.subr.bf16.mxu1 %v8103_v54 }
 0x4e7   :  { %7325 = vmatmul.mubr.msk.f32.gmra.mrb[6].mxu1 %vm49_vm1, %v4799_v14 }
 0x4e8   :  { %8106 = vmatpush3.bf16.msra.mxu1 %v8103_v54  ;;  %7343 = vmatprep.mubr.msk.f32.mxu1 %vm49_vm1, %v9309_v9  ;;  %v5792_v9 = vld [vmem:[%s9647_s7 + $0x318] sm:$0xff] }
 0x4e9   :  { %8108 = vmatprep.subr.bf16.mxu1 %v8107_v12  ;;  %v8119_v7 = vpack.c.bf16 %v5792_v9, %v5791_v24 }
 0x4ec   :  { %8110 = vmatpush3.bf16.msra.mxu1 %v8107_v12 }
 0x4ed   :  { %8112 = vmatprep.subr.bf16.mxu1 %v8111_v60 }
 0x4f0   :  { %8114 = vmatpush3.bf16.msra.mxu1 %v8111_v60 }
 0x4f1   :  { %8116 = vmatprep.subr.bf16.mxu1 %v8115_v20 }
 0x4f3   :  { %7344 = vmatmul.mubr.msk.f32.vlgmr.msra.gmra.mrb[4].mxu1 %vm49_vm1, %v4911_v28 }
 0x4f4   :  { %7346 = vmatprep.mubr.msk.f32.mxu1 %vm49_vm1, %v9320_v13  ;;  %8118 = vmatpush3.bf16.msra.mxu1 %v8115_v20  ;;  %v8127_v13 = vpack.c.bf16 %v5796_v35, %v5795_v30 }
 0x4f5   :  { %8120 = vmatprep.subr.bf16.mxu1 %v8119_v7 }
 0x4f7   :  { %7347 = vmatmul.mubr.msk.f32.gmra.mrb[6].mxu1 %vm49_vm1, %v4913_v33 }
 0x4f8   :  { %8122 = vmatpush3.bf16.msra.mxu1 %v8119_v7  ;;  %7365 = vmatprep.mubr.msk.f32.mxu1 %vm49_vm1, %v9343_v23  ;;  %v5804_v23 = vld [vmem:[%s9647_s7 + $0x358] sm:$0xff] }
 0x4f9   :  { %8124 = vmatprep.subr.bf16.mxu1 %v8123_v21  ;;  %v8135_v38 = vpack.c.bf16 %v5804_v23, %v5803_v36 }
 0x4fc   :  { %8126 = vmatpush3.bf16.msra.mxu1 %v8123_v21 }
 0x4fd   :  { %8128 = vmatprep.subr.bf16.mxu1 %v8127_v13 }
 0x500   :  { %8130 = vmatpush3.bf16.msra.mxu1 %v8127_v13 }
 0x501   :  { %8132 = vmatprep.subr.bf16.mxu1 %v8131_v40 }
 0x503   :  { %7366 = vmatmul.mubr.msk.f32.vlgmr.msra.gmra.mrb[4].mxu1 %vm49_vm1, %v5025_v44 }
 0x504   :  { %7368 = vmatprep.mubr.msk.f32.mxu1 %vm49_vm1, %v9354_v27  ;;  %8134 = vmatpush3.bf16.msra.mxu1 %v8131_v40  ;;  %v8143_v27 = vpack.c.bf16 %v5808_v48, %v5807_v47 }
 0x505   :  { %8136 = vmatprep.subr.bf16.mxu1 %v8135_v38 }
 0x507   :  { %7369 = vmatmul.mubr.msk.f32.gmra.mrb[6].mxu1 %vm49_vm1, %v5027_v45 }
 0x508   :  { %8138 = vmatpush3.bf16.msra.mxu1 %v8135_v38  ;;  %7387 = vmatprep.mubr.msk.f32.mxu1 %vm49_vm1, %v9377_v46 }
 0x509   :  { %8140 = vmatprep.subr.bf16.mxu1 %v8139_v4 }
 0x50c   :  { %8142 = vmatpush3.bf16.msra.mxu1 %v8139_v4 }
 0x50d   :  { %8144 = vmatprep.subr.bf16.mxu1 %v8143_v27 }
 0x510   :  { %8146 = vmatpush3.bf16.msra.mxu1 %v8143_v27 }
 0x511   :  { %8163 = vmatprep.subr.bf16.mxu1 %v9127_v37 }
 0x513   :  { %7388 = vmatmul.mubr.msk.f32.vlgmr.msra.gmra.mrb[4].mxu1 %vm49_vm1, %v5139_v42 }
 0x514   :  { %7390 = vmatprep.mubr.msk.f32.mxu1 %vm49_vm1, %v9388_v52  ;;  %8167 = vmatpush3.bf16.msra.mxu1 %v9127_v37  ;;  %v5255_v37 = vld [vmem:[#allocation2 + $0x37] sm:$0xff] }
 0x515   :  { %8164 = vmatprep.subr.bf16.mxu1 %v9143_v43 }
 0x516   :  { %v7411_v34 = vpop.f32.mrb[12].mxu0 }
 0x517   :  { %7391 = vmatmul.mubr.msk.f32.gmra.mrb[6].mxu1 %vm49_vm1, %v5141_v50  ;;  %v5343_v46 = vpop.f32.mrb[13].mxu0 }
 0x518   :  { %8168 = vmatpush3.bf16.msra.mxu1 %v9143_v43  ;;  %7412 = vmatprep.mubr.msk.f32.mxu1 %vm49_vm1, %v9420_v8 }
 0x519   :  { %8165 = vmatprep.subr.bf16.mxu1 %v9164_v51 }
 0x51c   :  { %8169 = vmatpush3.bf16.msra.mxu1 %v9164_v51 }
 0x51d   :  { %8166 = vmatprep.subr.bf16.mxu1 %v9174_v56 }
 0x520   :  { %8170 = vmatpush3.bf16.msra.mxu1 %v9174_v56 }
 0x523   :  { %7413 = vmatmul.mubr.msk.f32.vlgmr.msra.gmra.mrb[6].mxu1 %vm49_vm1, %v5255_v37 }
 0x5e6   :  { %v7389_v52 = vpop.f32.mrb[4].mxu1 }
 0x5e7   :  { %v8175_v43 = vadd.f32 %v7411_v34, %v7389_v52  ;;  %v5229_v57 = vpop.f32.mrb[5].mxu1 }
 0x5e8   :  { %v8176_v16 = vadd.f32 %v5343_v46, %v5229_v57 }
 0x5e9   :  { %v5374_v8 = vadd.f32 %v8175_v43, %v5825_v53 }
 0x5ea   :  { %v5373_v58 = vadd.f32 %v8176_v16, %v5825_v53 }
 0x5eb   :  { %v5827_v39 = vmul.f32 -1.442695, %v5374_v8 }
 0x5ec   :  { %v5826_v59 = vmul.f32 -1.442695, %v5373_v58 }
 0x5ed   :  { %8343 = vpow2.f32 %v5827_v39 }
 0x5ee   :  { %8345 = vpow2.f32 %v5826_v59 }
 0x5f6   :  { %v7414_v51 = vpop.f32.mrb[6].mxu1 }
 0x5f7   :  { %v8344_v61 = vpop.eup %8343  ;;  %v5376_v56 = vadd.f32 %v7414_v51, %v5825_v53  ;;  %v5353_v62 = vpop.f32.mrb[7].mxu1 }
 0x5f8   :  { %v8346_v63 = vpop.eup %8345  ;;  %v5390_v49 = vadd.f32 1.0, %v8344_v61  ;;  %v5375_v0 = vadd.f32 %v5825_v53, %v5353_v62 }
 0x5f9   :  { %v5389_v25 = vadd.f32 1.0, %v8346_v63  ;;  %v5829_v2 = vmul.f32 -1.442695, %v5376_v56 }
 0x5fa   :  { %8347 = vrcp.f32 %v5390_v49  ;;  %v5828_v3 = vmul.f32 -1.442695, %v5375_v0 }
 0x5fb   :  { %8349 = vrcp.f32 %v5389_v25 }
 0x5fc   :  { %8351 = vpow2.f32 %v5829_v2 }
 0x5fd   :  { %8353 = vpow2.f32 %v5828_v3 }
 0x604   :  { %v8348_v5 = vpop.eup %8347 }
 0x605   :  { %v8350_v6 = vpop.eup %8349  ;;  %5403 = vst.msk [vmem:[%s9650_s10 + $0x8] sm:$0xff] %vm5401_vm14, %v8348_v5 }
 0x606   :  { %v8352_v55 = vpop.eup %8351  ;;  %5402 = vst.msk [vmem:[%s9650_s10] sm:$0xff] %vm5401_vm14, %v8350_v6 }
 0x607   :  { %v8354_v54 = vpop.eup %8353  ;;  %v5392_v10 = vadd.f32 1.0, %v8352_v55 }
 0x608   :  { %v5391_v18 = vadd.f32 1.0, %v8354_v54 }
 0x609   :  { %8355 = vrcp.f32 %v5392_v10 }
 0x60a   :  { %8357 = vrcp.f32 %v5391_v18 }
 0x613   :  { %v8356_v11 = vpop.eup %8355 }
 0x614   :  { %v8358_v12 = vpop.eup %8357  ;;  %5405 = vst.msk [vmem:[%s9650_s10 + $0x18] sm:$0xff] %vm5401_vm14, %v8356_v11 }
 0x615   :  { %5404 = vst.msk [vmem:[%s9650_s10 + $0x10] sm:$0xff] %vm5401_vm14, %v8358_v12 }
 0x616   :  { %5410 = vsyncpa [#allocation4], 1 }

</bundles_post_ra>
